<compile_context>
chip_gen: v5e
topology: v5e:2x2
jax: 0.10.0
libtpu: 0.0.40
codegen_flags: <defaults>
</compile_context>

<pallas_src>
import functools

import jax
import jax.numpy as jnp
from jax.experimental import pallas as pl
from jax.experimental.pallas import tpu as pltpu

_S = 128  # lane-block width reserved for the folded per-head score columns


def _macro_conv_kernel(x_ref, wcf_ref, rel_ref, wef_ref, ones_ref, o_ref, *,
                       num_rel, hdp, negative_slope):
    R = num_rel

    # Central transform + folded central-score columns in one bf16 matmul.
    cres = jnp.dot(x_ref[...], wcf_ref[...],
                   preferred_element_type=jnp.float32)        # (TN, HDp + S)
    s_c = cres[:, hdp:]                                       # (TN, S) f32

    ones_hd = ones_ref[...]                                   # (S, HDp) bf16

    typs = []
    scores = []
    for r in range(R):  # R is small & static: unrolled
        res = jnp.dot(rel_ref[r], wef_ref[r],
                      preferred_element_type=jnp.float32)     # (TN, HDp + S)
        s = s_c + res[:, hdp:]                                # (TN, S) f32
        s = jnp.where(s > 0, s, negative_slope * s)           # LeakyReLU (f32)
        typs.append(res[:, :hdp].astype(jnp.bfloat16))        # keep typ in bf16
        scores.append(s)

    # Softmax across the R relation types (per node, per head) — f32 elementwise.
    m = scores[0]
    for r in range(1, R):
        m = jnp.maximum(m, scores[r])
    exps = [jnp.exp(scores[r] - m) for r in range(R)]
    denom = exps[0]
    for r in range(1, R):
        denom = denom + exps[r]
    recip = pl.reciprocal(denom, approx=True)                 # denom >= 1, safe

    # Broadcast per-head weights to H*D width with a bf16 block-of-ones matmul
    # and accumulate the weighted relation features in f32.
    acc = None
    for r in range(R):
        w_hd = jnp.dot((exps[r] * recip).astype(jnp.bfloat16), ones_hd,
                       preferred_element_type=jnp.float32)    # (TN, HDp)
        contrib = w_hd * typs[r].astype(jnp.float32)
        acc = contrib if acc is None else acc + contrib

    # TODO(synk): dropout with p > 0 would need pltpu.prng_*; module default p=0 is identity.
    o_ref[...] = acc.astype(o_ref.dtype)


def _round_up(x, m):
    return ((x + m - 1) // m) * m


def _vmem_capacity_bytes():
    try:
        return int(pltpu.get_tpu_info().vmem_capacity_bytes)
    except Exception:
        return 64 * 1024 * 1024  # conservative (v7x per-TC) default


def _vmem_per_row_and_invariant(f_in, hd, hdp, r):
    hdout = hdp + _S
    per_row = (2 * (f_in + r * hd) * 2      # double-buffered bf16 x + rel tiles
               + 2 * hdp * 2                # double-buffered bf16 output tile
               + r * hdp * 2                # typ features kept in bf16
               + (r + 1) * _S * 4           # f32 score blocks
               + (hdout + 2 * hdp) * 4)     # live f32 matmul result / w_hd / acc
    invariant = 2 * ((f_in + r * hd) * hdout * 2 + _S * hdp * 2)  # folded weights + ones
    return per_row, invariant


def _choose_tile_n(n, f_in, hd, hdp, r, vmem_cap):
    per_row, invariant = _vmem_per_row_and_invariant(f_in, hd, hdp, r)
    budget = int(0.55 * vmem_cap)
    # Only grow to 1024-row tiles on big-VMEM parts (v5e/v6e) with modest HDp.
    cap_big = 1024 if (vmem_cap >= 96 * 1024 * 1024 and hdp <= 256) else 512
    tile = 8
    for cand in (16, 32, 64, 128, 256, 512, 1024):
        if cand > cap_big:
            break
        if invariant + cand * per_row <= budget:
            tile = cand
    if n >= 16:
        # Keep >= 2 grid steps so megacore chips (v7x) shard the node axis.
        tile = min(tile, _round_up(-(-n // 2), 8))
    tile = min(tile, _round_up(n, 8))
    return max(8, _round_up(tile, 8))


def _invariant_spec(shape, single_buffer):
    ndim = len(shape)
    index_map = lambda i, _n=ndim: (0,) * _n
    if single_buffer:
        return pl.BlockSpec(shape, index_map, pipeline_mode=pl.Buffered(1))
    return pl.BlockSpec(shape, index_map)


def macro_conv(x, rel_feats, wc, we, attn_w, *, num_heads, out_feats,
               negative_slope=0.2, tile_n=None):
    """Fused MacroConv forward for one destination node type.

    x         : (N, F_in)      destination node features
    rel_feats : (R, N, H*D)    stacked relation features targeting this ntype
    wc        : (F_in, H*D)    central_node_transformation_weight[ntype]
    we        : (R, H*D, H*D)  stacked edge_type_transformation_weight
    attn_w    : (H, 2*D)       edge_types_attention_weight
    returns   : (N, H*D) bfloat16 (caller upcasts if f32 is required)

    Handles both the multi-relation attention path and (trivially) the
    single-relation path (softmax over one element == 1, dropout == identity).
    Passing x / rel_feats already in bf16 skips the wrapper-side cast of the
    dominant HBM stream.
    """
    N, f_in = x.shape
    R = int(rel_feats.shape[0])
    H, D = num_heads, out_feats
    HD = H * D
    assert rel_feats.shape == (R, N, HD)
    assert wc.shape == (f_in, HD)
    assert we.shape == (R, HD, HD)
    assert attn_w.shape == (H, 2 * D)

    S = _S
    HDp = _round_up(HD, 128)      # lane-dense output width
    HDout = HDp + S               # main-matmul width incl. folded score block

    vmem_cap = _vmem_capacity_bytes()
    if tile_n is None:
        tile_n = _choose_tile_n(N, f_in, HD, HDp, R, vmem_cap)
    tile_n = max(8, _round_up(tile_n, 8))
    Np = _round_up(N, tile_n)
    grid_n = Np // tile_n

    # ---- Fold the attention selectors into the weights (f32 precompute). ----
    aw = attn_w.astype(jnp.float32)
    a_c = jnp.zeros((HD, S), jnp.float32)
    a_t = jnp.zeros((HD, S), jnp.float32)
    ones_m = jnp.zeros((S, HDp), jnp.float32)
    for h in range(H):
        a_c = a_c.at[h * D:(h + 1) * D, h].set(aw[h, :D])
        a_t = a_t.at[h * D:(h + 1) * D, h].set(aw[h, D:])
        ones_m = ones_m.at[h, h * D:(h + 1) * D].set(1.0)

    wc32 = wc.astype(jnp.float32)
    wcf = jnp.zeros((f_in, HDout), jnp.float32)
    wcf = wcf.at[:, :HD].set(wc32).at[:, HDp:].set(wc32 @ a_c)

    we32 = we.astype(jnp.float32)
    wef = jnp.zeros((R, HD, HDout), jnp.float32)
    wef = wef.at[:, :, :HD].set(we32).at[:, :, HDp:].set(
        jnp.einsum("rij,jk->rik", we32, a_t))

    wcf = wcf.astype(jnp.bfloat16)
    wef = wef.astype(jnp.bfloat16)
    ones_m = ones_m.astype(jnp.bfloat16)

    # ---- Node streams: bf16, pad only the node axis when ragged. ----
    xb = x if x.dtype == jnp.bfloat16 else x.astype(jnp.bfloat16)
    relb = (rel_feats if rel_feats.dtype == jnp.bfloat16
            else rel_feats.astype(jnp.bfloat16))
    if Np != N:
        xb = jnp.pad(xb, ((0, Np - N), (0, 0)))
        relb = jnp.pad(relb, ((0, 0), (0, Np - N), (0, 0)))

    per_row, invariant = _vmem_per_row_and_invariant(f_in, HD, HDp, R)
    vmem_est = invariant + tile_n * per_row
    vmem_limit = int(min(max(2 * vmem_est, 32 * 1024 * 1024),
                         int(0.85 * vmem_cap)))

    flops = int(2 * Np * HDout * (f_in + R * HD)      # folded main matmuls
                + 2 * Np * S * HDp * R)               # bf16 broadcast matmuls
    transcendentals = int(Np * S * R)
    bytes_accessed = int(2 * (Np * f_in + R * Np * HD
                              + f_in * HDout + R * HD * HDout + S * HDp)
                         + 2 * Np * HDp)              # bf16 output

    kernel = functools.partial(_macro_conv_kernel, num_rel=R, hdp=HDp,
                               negative_slope=negative_slope)

    def _call(single_buffer_invariants):
        in_specs = [
            pl.BlockSpec((tile_n, f_in), lambda i: (i, 0)),              # x
            _invariant_spec((f_in, HDout), single_buffer_invariants),    # folded Wc
            pl.BlockSpec((R, tile_n, HD), lambda i: (0, i, 0)),          # rel feats
            _invariant_spec((R, HD, HDout), single_buffer_invariants),   # folded We
            _invariant_spec((S, HDp), single_buffer_invariants),         # head->HD ones
        ]
        return pl.pallas_call(
            kernel,
            out_shape=jax.ShapeDtypeStruct((Np, HDp), jnp.bfloat16),
            grid_spec=pltpu.PrefetchScalarGridSpec(
                num_scalar_prefetch=0,
                grid=(grid_n,),
                in_specs=in_specs,
                out_specs=pl.BlockSpec((tile_n, HDp), lambda i: (i, 0)),
            ),
            compiler_params=pltpu.CompilerParams(
                dimension_semantics=("parallel",),
                vmem_limit_bytes=vmem_limit),
            cost_estimate=pl.CostEstimate(
                flops=flops, transcendentals=transcendentals,
                bytes_accessed=bytes_accessed),
        )(xb, wcf, relb, wef, ones_m)

    try:
        out = _call(True)
    except Exception:
        # Fallback if pipeline_mode=pl.Buffered(1) is unsupported in this jax.
        out = _call(False)

    return out[:N, :HD]


def macro_conv_reference(x, rel_feats, wc, we, attn_w, *, num_heads, out_feats,
                         negative_slope=0.2):
    """Pure-JAX reference mirroring the PyTorch forward (dropout p=0)."""
    N = x.shape[0]
    R = rel_feats.shape[0]
    H, D = num_heads, out_feats
    central = (x @ wc).reshape(N, H, D)
    typs = jnp.einsum("rnk,rkm->rnm", rel_feats, we).reshape(R, N, H, D)
    if R == 1:
        return typs[0].reshape(N, H * D)
    concat = jnp.concatenate(
        [jnp.broadcast_to(central[None], (R, N, H, D)), typs], axis=-1)
    scores = (attn_w * concat).sum(axis=-1, keepdims=True)
    scores = jnp.where(scores > 0, scores, negative_slope * scores)
    scores = jax.nn.softmax(scores, axis=0)
    return (scores * typs).sum(axis=0).reshape(N, H * D)


def _run_case(key, N, f_in, H, D, R, neg_slope=0.2):
    HD = H * D
    k0, k1, k2, k3, k4 = jax.random.split(key, 5)
    x = jax.random.normal(k0, (N, f_in), jnp.float32)
    rel = jax.random.normal(k1, (R, N, HD), jnp.float32)
    wc = jax.random.normal(k2, (f_in, HD), jnp.float32) * 0.1
    we = jax.random.normal(k3, (R, HD, HD), jnp.float32) * 0.1
    attn = jax.random.normal(k4, (H, 2 * D), jnp.float32) * 0.1

    out = macro_conv(x, rel, wc, we, attn, num_heads=H, out_feats=D,
                     negative_slope=neg_slope)
    out = jax.block_until_ready(out)
    assert out.shape == (N, HD)
    out = out.astype(jnp.float32)

    # Reference on the bf16-rounded inputs the kernel streams (weights are
    # folded in f32 then bf16-cast inside macro_conv, output is bf16 — hence
    # the modest tolerance).
    bf = lambda a: a.astype(jnp.bfloat16).astype(jnp.float32)
    ref = macro_conv_reference(bf(x), bf(rel), bf(wc), bf(we), attn,
                               num_heads=H, out_feats=D,
                               negative_slope=neg_slope)
    err = float(jnp.max(jnp.abs(out - ref)))
    assert jnp.allclose(out, ref, atol=5e-2, rtol=5e-2), err
    return err


if __name__ == "__main__":
    key = jax.random.PRNGKey(0)
    k_a, k_b = jax.random.split(key)

    # Case 1: lane-aligned head*feat width (HD = 128), multi-relation attention.
    _run_case(k_a, N=256, f_in=64, H=4, D=32, R=3)

    # Case 2: ragged node count and HD < 128 (exercises node-axis padding).
    _run_case(k_b, N=100, f_in=48, H=4, D=16, R=2)

    print("KERNEL_OK")
</pallas_src>

<mosaic_0001>
module attributes {stable_mosaic.version = 11 : i64} {
  func.func @_macro_conv_kernel(%arg0: i32, %arg1: memref<128x64xbf16, #tpu.memory_space<vmem>>, %arg2: memref<64x256xbf16, #tpu.memory_space<vmem>>, %arg3: memref<3x128x128xbf16, #tpu.memory_space<vmem>>, %arg4: memref<3x128x256xbf16, #tpu.memory_space<vmem>>, %arg5: memref<128x128xbf16, #tpu.memory_space<vmem>>, %arg6: memref<128x128xbf16, #tpu.memory_space<vmem>>) attributes {dimension_semantics = [#tpu.dimension_semantics<parallel>], iteration_bounds = array<i64: 2>, scalar_prefetch = 0 : i64, scratch_operands = 0 : i64, tpu.core_type = #tpu.core_type<tc>, window_params = [{transform_indices = @transform_0, window_bounds = array<i64: 128, 64>}, {pipeline_mode = #tpu.pipeline_mode<synchronous>, transform_indices = @transform_1, window_bounds = array<i64: 64, 256>}, {transform_indices = @transform_2, window_bounds = array<i64: 3, 128, 128>}, {pipeline_mode = #tpu.pipeline_mode<synchronous>, transform_indices = @transform_3, window_bounds = array<i64: 3, 128, 256>}, {pipeline_mode = #tpu.pipeline_mode<synchronous>, transform_indices = @transform_4, window_bounds = array<i64: 128, 128>}, {transform_indices = @transform_5, window_bounds = array<i64: 128, 128>}]} {
    %c0 = arith.constant 0 : index
    %c0_0 = arith.constant 0 : index
    %0 = vector.load %arg1[%c0, %c0_0] : memref<128x64xbf16, #tpu.memory_space<vmem>>, vector<128x64xbf16>
    %c0_1 = arith.constant 0 : index
    %c0_2 = arith.constant 0 : index
    %1 = vector.load %arg2[%c0_1, %c0_2] : memref<64x256xbf16, #tpu.memory_space<vmem>>, vector<64x256xbf16>
    %cst = arith.constant dense<0.000000e+00> : vector<128x256xf32>
    %2 = tpu.matmul %0, %1, %cst {dimension_numbers = #tpu.dot_dimension_numbers<[1], [0], [0], [1], [0, 0, 1, 1], [], []>} : vector<128x64xbf16>, vector<64x256xbf16>, vector<128x256xf32> -> vector<128x256xf32>
    %3 = vector.extract_strided_slice %2 {offsets = [0, 128], sizes = [128, 128], strides = [1, 1]} : vector<128x256xf32> to vector<128x128xf32>
    %c0_3 = arith.constant 0 : index
    %c0_4 = arith.constant 0 : index
    %4 = vector.load %arg5[%c0_3, %c0_4] : memref<128x128xbf16, #tpu.memory_space<vmem>>, vector<128x128xbf16>
    %c0_5 = arith.constant 0 : index
    %c0_6 = arith.constant 0 : index
    %c0_7 = arith.constant 0 : index
    %5 = vector.load %arg3[%c0_5, %c0_6, %c0_7] : memref<3x128x128xbf16, #tpu.memory_space<vmem>>, vector<1x128x128xbf16>
    %6 = vector.shape_cast %5 : vector<1x128x128xbf16> to vector<128x128xbf16>
    %c0_8 = arith.constant 0 : index
    %c0_9 = arith.constant 0 : index
    %c0_10 = arith.constant 0 : index
    %7 = vector.load %arg4[%c0_8, %c0_9, %c0_10] : memref<3x128x256xbf16, #tpu.memory_space<vmem>>, vector<1x128x256xbf16>
    %8 = vector.shape_cast %7 : vector<1x128x256xbf16> to vector<128x256xbf16>
    %cst_11 = arith.constant dense<0.000000e+00> : vector<128x256xf32>
    %9 = tpu.matmul %6, %8, %cst_11 {dimension_numbers = #tpu.dot_dimension_numbers<[1], [0], [0], [1], [0, 0, 1, 1], [], []>} : vector<128x128xbf16>, vector<128x256xbf16>, vector<128x256xf32> -> vector<128x256xf32>
    %10 = vector.extract_strided_slice %9 {offsets = [0, 128], sizes = [128, 128], strides = [1, 1]} : vector<128x256xf32> to vector<128x128xf32>
    %11 = arith.addf %3, %10 : vector<128x128xf32>
    %cst_12 = arith.constant 0.000000e+00 : f32
    %12 = vector.broadcast %cst_12 : f32 to vector<128x128xf32>
    %13 = arith.cmpf ogt, %11, %12 : vector<128x128xf32>
    %cst_13 = arith.constant 2.000000e-01 : f32
    %14 = vector.broadcast %cst_13 : f32 to vector<128x128xf32>
    %15 = arith.mulf %14, %11 : vector<128x128xf32>
    %16 = arith.select %13, %11, %15 : vector<128x128xi1>, vector<128x128xf32>
    %17 = vector.extract_strided_slice %9 {offsets = [0, 0], sizes = [128, 128], strides = [1, 1]} : vector<128x256xf32> to vector<128x128xf32>
    %18 = arith.truncf %17 : vector<128x128xf32> to vector<128x128xbf16>
    %c1 = arith.constant 1 : index
    %c0_14 = arith.constant 0 : index
    %c0_15 = arith.constant 0 : index
    %19 = vector.load %arg3[%c1, %c0_14, %c0_15] : memref<3x128x128xbf16, #tpu.memory_space<vmem>>, vector<1x128x128xbf16>
    %20 = vector.shape_cast %19 : vector<1x128x128xbf16> to vector<128x128xbf16>
    %c1_16 = arith.constant 1 : index
    %c0_17 = arith.constant 0 : index
    %c0_18 = arith.constant 0 : index
    %21 = vector.load %arg4[%c1_16, %c0_17, %c0_18] : memref<3x128x256xbf16, #tpu.memory_space<vmem>>, vector<1x128x256xbf16>
    %22 = vector.shape_cast %21 : vector<1x128x256xbf16> to vector<128x256xbf16>
    %cst_19 = arith.constant dense<0.000000e+00> : vector<128x256xf32>
    %23 = tpu.matmul %20, %22, %cst_19 {dimension_numbers = #tpu.dot_dimension_numbers<[1], [0], [0], [1], [0, 0, 1, 1], [], []>} : vector<128x128xbf16>, vector<128x256xbf16>, vector<128x256xf32> -> vector<128x256xf32>
    %24 = vector.extract_strided_slice %23 {offsets = [0, 128], sizes = [128, 128], strides = [1, 1]} : vector<128x256xf32> to vector<128x128xf32>
    %25 = arith.addf %3, %24 : vector<128x128xf32>
    %cst_20 = arith.constant 0.000000e+00 : f32
    %26 = vector.broadcast %cst_20 : f32 to vector<128x128xf32>
    %27 = arith.cmpf ogt, %25, %26 : vector<128x128xf32>
    %cst_21 = arith.constant 2.000000e-01 : f32
    %28 = vector.broadcast %cst_21 : f32 to vector<128x128xf32>
    %29 = arith.mulf %28, %25 : vector<128x128xf32>
    %30 = arith.select %27, %25, %29 : vector<128x128xi1>, vector<128x128xf32>
    %31 = vector.extract_strided_slice %23 {offsets = [0, 0], sizes = [128, 128], strides = [1, 1]} : vector<128x256xf32> to vector<128x128xf32>
    %32 = arith.truncf %31 : vector<128x128xf32> to vector<128x128xbf16>
    %c2 = arith.constant 2 : index
    %c0_22 = arith.constant 0 : index
    %c0_23 = arith.constant 0 : index
    %33 = vector.load %arg3[%c2, %c0_22, %c0_23] : memref<3x128x128xbf16, #tpu.memory_space<vmem>>, vector<1x128x128xbf16>
    %34 = vector.shape_cast %33 : vector<1x128x128xbf16> to vector<128x128xbf16>
    %c2_24 = arith.constant 2 : index
    %c0_25 = arith.constant 0 : index
    %c0_26 = arith.constant 0 : index
    %35 = vector.load %arg4[%c2_24, %c0_25, %c0_26] : memref<3x128x256xbf16, #tpu.memory_space<vmem>>, vector<1x128x256xbf16>
    %36 = vector.shape_cast %35 : vector<1x128x256xbf16> to vector<128x256xbf16>
    %cst_27 = arith.constant dense<0.000000e+00> : vector<128x256xf32>
    %37 = tpu.matmul %34, %36, %cst_27 {dimension_numbers = #tpu.dot_dimension_numbers<[1], [0], [0], [1], [0, 0, 1, 1], [], []>} : vector<128x128xbf16>, vector<128x256xbf16>, vector<128x256xf32> -> vector<128x256xf32>
    %38 = vector.extract_strided_slice %37 {offsets = [0, 128], sizes = [128, 128], strides = [1, 1]} : vector<128x256xf32> to vector<128x128xf32>
    %39 = arith.addf %3, %38 : vector<128x128xf32>
    %cst_28 = arith.constant 0.000000e+00 : f32
    %40 = vector.broadcast %cst_28 : f32 to vector<128x128xf32>
    %41 = arith.cmpf ogt, %39, %40 : vector<128x128xf32>
    %cst_29 = arith.constant 2.000000e-01 : f32
    %42 = vector.broadcast %cst_29 : f32 to vector<128x128xf32>
    %43 = arith.mulf %42, %39 : vector<128x128xf32>
    %44 = arith.select %41, %39, %43 : vector<128x128xi1>, vector<128x128xf32>
    %45 = vector.extract_strided_slice %37 {offsets = [0, 0], sizes = [128, 128], strides = [1, 1]} : vector<128x256xf32> to vector<128x128xf32>
    %46 = arith.truncf %45 : vector<128x128xf32> to vector<128x128xbf16>
    %47 = arith.maximumf %16, %30 : vector<128x128xf32>
    %48 = arith.maximumf %47, %44 : vector<128x128xf32>
    %49 = arith.subf %16, %48 : vector<128x128xf32>
    %50 = math.exp %49 : vector<128x128xf32>
    %51 = arith.subf %30, %48 : vector<128x128xf32>
    %52 = math.exp %51 : vector<128x128xf32>
    %53 = arith.subf %44, %48 : vector<128x128xf32>
    %54 = math.exp %53 : vector<128x128xf32>
    %55 = arith.addf %50, %52 : vector<128x128xf32>
    %56 = arith.addf %55, %54 : vector<128x128xf32>
    %57 = tpu.reciprocal %56 {approx = true} : vector<128x128xf32> -> vector<128x128xf32>
    %58 = arith.mulf %50, %57 : vector<128x128xf32>
    %59 = arith.truncf %58 : vector<128x128xf32> to vector<128x128xbf16>
    %cst_30 = arith.constant dense<0.000000e+00> : vector<128x128xf32>
    %60 = tpu.matmul %59, %4, %cst_30 {dimension_numbers = #tpu.dot_dimension_numbers<[1], [0], [0], [1], [0, 0, 1, 1], [], []>} : vector<128x128xbf16>, vector<128x128xbf16>, vector<128x128xf32> -> vector<128x128xf32>
    %61 = arith.extf %18 : vector<128x128xbf16> to vector<128x128xf32>
    %62 = arith.mulf %60, %61 : vector<128x128xf32>
    %63 = arith.mulf %52, %57 : vector<128x128xf32>
    %64 = arith.truncf %63 : vector<128x128xf32> to vector<128x128xbf16>
    %cst_31 = arith.constant dense<0.000000e+00> : vector<128x128xf32>
    %65 = tpu.matmul %64, %4, %cst_31 {dimension_numbers = #tpu.dot_dimension_numbers<[1], [0], [0], [1], [0, 0, 1, 1], [], []>} : vector<128x128xbf16>, vector<128x128xbf16>, vector<128x128xf32> -> vector<128x128xf32>
    %66 = arith.extf %32 : vector<128x128xbf16> to vector<128x128xf32>
    %67 = arith.mulf %65, %66 : vector<128x128xf32>
    %68 = arith.addf %62, %67 : vector<128x128xf32>
    %69 = arith.mulf %54, %57 : vector<128x128xf32>
    %70 = arith.truncf %69 : vector<128x128xf32> to vector<128x128xbf16>
    %cst_32 = arith.constant dense<0.000000e+00> : vector<128x128xf32>
    %71 = tpu.matmul %70, %4, %cst_32 {dimension_numbers = #tpu.dot_dimension_numbers<[1], [0], [0], [1], [0, 0, 1, 1], [], []>} : vector<128x128xbf16>, vector<128x128xbf16>, vector<128x128xf32> -> vector<128x128xf32>
    %72 = arith.extf %46 : vector<128x128xbf16> to vector<128x128xf32>
    %73 = arith.mulf %71, %72 : vector<128x128xf32>
    %74 = arith.addf %68, %73 : vector<128x128xf32>
    %75 = arith.truncf %74 : vector<128x128xf32> to vector<128x128xbf16>
    %c0_33 = arith.constant 0 : index
    %c0_34 = arith.constant 0 : index
    %76 = vector.load %arg6[%c0_33, %c0_34] : memref<128x128xbf16, #tpu.memory_space<vmem>>, vector<128x128xbf16>
    tpu.vector_store %arg6[%c0_33, %c0_34], %75 {strides = array<i32>} : memref<128x128xbf16, #tpu.memory_space<vmem>>, vector<128x128xbf16>,
    return
  }
  func.func @transform_0(%arg0: i32) -> (i32, i32) {
    %c0_i32 = arith.constant 0 : i32
    %c0_i32_0 = arith.constant 0 : i32
    return %arg0, %c0_i32 : i32, i32
  }
  func.func @transform_1(%arg0: i32) -> (i32, i32) {
    %c0_i32 = arith.constant 0 : i32
    %c0_i32_0 = arith.constant 0 : i32
    %c0_i32_1 = arith.constant 0 : i32
    return %c0_i32, %c0_i32_0 : i32, i32
  }
  func.func @transform_2(%arg0: i32) -> (i32, i32, i32) {
    %c0_i32 = arith.constant 0 : i32
    %c0_i32_0 = arith.constant 0 : i32
    %c0_i32_1 = arith.constant 0 : i32
    return %c0_i32, %arg0, %c0_i32_0 : i32, i32, i32
  }
  func.func @transform_3(%arg0: i32) -> (i32, i32, i32) {
    %c0_i32 = arith.constant 0 : i32
    %c0_i32_0 = arith.constant 0 : i32
    %c0_i32_1 = arith.constant 0 : i32
    %c0_i32_2 = arith.constant 0 : i32
    return %c0_i32, %c0_i32_0, %c0_i32_1 : i32, i32, i32
  }
  func.func @transform_4(%arg0: i32) -> (i32, i32) {
    %c0_i32 = arith.constant 0 : i32
    %c0_i32_0 = arith.constant 0 : i32
    %c0_i32_1 = arith.constant 0 : i32
    return %c0_i32, %c0_i32_0 : i32, i32
  }
  func.func @transform_5(%arg0: i32) -> (i32, i32) {
    %c0_i32 = arith.constant 0 : i32
    %c0_i32_0 = arith.constant 0 : i32
    return %arg0, %c0_i32 : i32, i32
  }
}

module attributes {stable_mosaic.version = 11 : i64} {
  func.func @_macro_conv_kernel(%arg0: i32, %arg1: memref<128x64xbf16, #tpu.memory_space<vmem>>, %arg2: memref<64x256xbf16, #tpu.memory_space<vmem>>, %arg3: memref<3x128x128xbf16, #tpu.memory_space<vmem>>, %arg4: memref<3x128x256xbf16, #tpu.memory_space<vmem>>, %arg5: memref<128x128xbf16, #tpu.memory_space<vmem>>, %arg6: memref<128x128xbf16, #tpu.memory_space<vmem>>) attributes {dimension_semantics = [#tpu.dimension_semantics<parallel>], iteration_bounds = array<i64: 2>, scalar_prefetch = 0 : i64, scratch_operands = 0 : i64, tpu.core_type = #tpu.core_type<tc>, window_params = [{transform_indices = @transform_0, window_bounds = array<i64: 128, 64>}, {pipeline_mode = #tpu.pipeline_mode<synchronous>, transform_indices = @transform_1, window_bounds = array<i64: 64, 256>}, {transform_indices = @transform_2, window_bounds = array<i64: 3, 128, 128>}, {pipeline_mode = #tpu.pipeline_mode<synchronous>, transform_indices = @transform_3, window_bounds = array<i64: 3, 128, 256>}, {pipeline_mode = #tpu.pipeline_mode<synchronous>, transform_indices = @transform_4, window_bounds = array<i64: 128, 128>}, {transform_indices = @transform_5, window_bounds = array<i64: 128, 128>}]} {
    %c0 = arith.constant 0 : index
    %c0_0 = arith.constant 0 : index
    %0 = vector.load %arg1[%c0, %c0_0] : memref<128x64xbf16, #tpu.memory_space<vmem>>, vector<128x64xbf16>
    %c0_1 = arith.constant 0 : index
    %c0_2 = arith.constant 0 : index
    %1 = vector.load %arg2[%c0_1, %c0_2] : memref<64x256xbf16, #tpu.memory_space<vmem>>, vector<64x256xbf16>
    %cst = arith.constant dense<0.000000e+00> : vector<128x256xf32>
    %2 = tpu.matmul %0, %1, %cst {dimension_numbers = #tpu.dot_dimension_numbers<[1], [0], [0], [1], [0, 0, 1, 1], [], []>} : vector<128x64xbf16>, vector<64x256xbf16>, vector<128x256xf32> -> vector<128x256xf32>
    %3 = vector.extract_strided_slice %2 {offsets = [0, 128], sizes = [128, 128], strides = [1, 1]} : vector<128x256xf32> to vector<128x128xf32>
    %c0_3 = arith.constant 0 : index
    %c0_4 = arith.constant 0 : index
    %4 = vector.load %arg5[%c0_3, %c0_4] : memref<128x128xbf16, #tpu.memory_space<vmem>>, vector<128x128xbf16>
    %c0_5 = arith.constant 0 : index
    %c0_6 = arith.constant 0 : index
    %c0_7 = arith.constant 0 : index
    %5 = vector.load %arg3[%c0_5, %c0_6, %c0_7] : memref<3x128x128xbf16, #tpu.memory_space<vmem>>, vector<1x128x128xbf16>
    %6 = vector.shape_cast %5 : vector<1x128x128xbf16> to vector<128x128xbf16>
    %c0_8 = arith.constant 0 : index
    %c0_9 = arith.constant 0 : index
    %c0_10 = arith.constant 0 : index
    %7 = vector.load %arg4[%c0_8, %c0_9, %c0_10] : memref<3x128x256xbf16, #tpu.memory_space<vmem>>, vector<1x128x256xbf16>
    %8 = vector.shape_cast %7 : vector<1x128x256xbf16> to vector<128x256xbf16>
    %cst_11 = arith.constant dense<0.000000e+00> : vector<128x256xf32>
    %9 = tpu.matmul %6, %8, %cst_11 {dimension_numbers = #tpu.dot_dimension_numbers<[1], [0], [0], [1], [0, 0, 1, 1], [], []>} : vector<128x128xbf16>, vector<128x256xbf16>, vector<128x256xf32> -> vector<128x256xf32>
    %10 = vector.extract_strided_slice %9 {offsets = [0, 128], sizes = [128, 128], strides = [1, 1]} : vector<128x256xf32> to vector<128x128xf32>
    %11 = arith.addf %3, %10 : vector<128x128xf32>
    %cst_12 = arith.constant 0.000000e+00 : f32
    %12 = vector.broadcast %cst_12 : f32 to vector<128x128xf32>
    %13 = arith.cmpf ogt, %11, %12 : vector<128x128xf32>
    %cst_13 = arith.constant 2.000000e-01 : f32
    %14 = vector.broadcast %cst_13 : f32 to vector<128x128xf32>
    %15 = arith.mulf %14, %11 : vector<128x128xf32>
    %16 = arith.select %13, %11, %15 : vector<128x128xi1>, vector<128x128xf32>
    %17 = vector.extract_strided_slice %9 {offsets = [0, 0], sizes = [128, 128], strides = [1, 1]} : vector<128x256xf32> to vector<128x128xf32>
    %18 = arith.truncf %17 : vector<128x128xf32> to vector<128x128xbf16>
    %c1 = arith.constant 1 : index
    %c0_14 = arith.constant 0 : index
    %c0_15 = arith.constant 0 : index
    %19 = vector.load %arg3[%c1, %c0_14, %c0_15] : memref<3x128x128xbf16, #tpu.memory_space<vmem>>, vector<1x128x128xbf16>
    %20 = vector.shape_cast %19 : vector<1x128x128xbf16> to vector<128x128xbf16>
    %c1_16 = arith.constant 1 : index
    %c0_17 = arith.constant 0 : index
    %c0_18 = arith.constant 0 : index
    %21 = vector.load %arg4[%c1_16, %c0_17, %c0_18] : memref<3x128x256xbf16, #tpu.memory_space<vmem>>, vector<1x128x256xbf16>
    %22 = vector.shape_cast %21 : vector<1x128x256xbf16> to vector<128x256xbf16>
    %cst_19 = arith.constant dense<0.000000e+00> : vector<128x256xf32>
    %23 = tpu.matmul %20, %22, %cst_19 {dimension_numbers = #tpu.dot_dimension_numbers<[1], [0], [0], [1], [0, 0, 1, 1], [], []>} : vector<128x128xbf16>, vector<128x256xbf16>, vector<128x256xf32> -> vector<128x256xf32>
    %24 = vector.extract_strided_slice %23 {offsets = [0, 128], sizes = [128, 128], strides = [1, 1]} : vector<128x256xf32> to vector<128x128xf32>
    %25 = arith.addf %3, %24 : vector<128x128xf32>
    %cst_20 = arith.constant 0.000000e+00 : f32
    %26 = vector.broadcast %cst_20 : f32 to vector<128x128xf32>
    %27 = arith.cmpf ogt, %25, %26 : vector<128x128xf32>
    %cst_21 = arith.constant 2.000000e-01 : f32
    %28 = vector.broadcast %cst_21 : f32 to vector<128x128xf32>
    %29 = arith.mulf %28, %25 : vector<128x128xf32>
    %30 = arith.select %27, %25, %29 : vector<128x128xi1>, vector<128x128xf32>
    %31 = vector.extract_strided_slice %23 {offsets = [0, 0], sizes = [128, 128], strides = [1, 1]} : vector<128x256xf32> to vector<128x128xf32>
    %32 = arith.truncf %31 : vector<128x128xf32> to vector<128x128xbf16>
    %c2 = arith.constant 2 : index
    %c0_22 = arith.constant 0 : index
    %c0_23 = arith.constant 0 : index
    %33 = vector.load %arg3[%c2, %c0_22, %c0_23] : memref<3x128x128xbf16, #tpu.memory_space<vmem>>, vector<1x128x128xbf16>
    %34 = vector.shape_cast %33 : vector<1x128x128xbf16> to vector<128x128xbf16>
    %c2_24 = arith.constant 2 : index
    %c0_25 = arith.constant 0 : index
    %c0_26 = arith.constant 0 : index
    %35 = vector.load %arg4[%c2_24, %c0_25, %c0_26] : memref<3x128x256xbf16, #tpu.memory_space<vmem>>, vector<1x128x256xbf16>
    %36 = vector.shape_cast %35 : vector<1x128x256xbf16> to vector<128x256xbf16>
    %cst_27 = arith.constant dense<0.000000e+00> : vector<128x256xf32>
    %37 = tpu.matmul %34, %36, %cst_27 {dimension_numbers = #tpu.dot_dimension_numbers<[1], [0], [0], [1], [0, 0, 1, 1], [], []>} : vector<128x128xbf16>, vector<128x256xbf16>, vector<128x256xf32> -> vector<128x256xf32>
    %38 = vector.extract_strided_slice %37 {offsets = [0, 128], sizes = [128, 128], strides = [1, 1]} : vector<128x256xf32> to vector<128x128xf32>
    %39 = arith.addf %3, %38 : vector<128x128xf32>
    %cst_28 = arith.constant 0.000000e+00 : f32
    %40 = vector.broadcast %cst_28 : f32 to vector<128x128xf32>
    %41 = arith.cmpf ogt, %39, %40 : vector<128x128xf32>
    %cst_29 = arith.constant 2.000000e-01 : f32
    %42 = vector.broadcast %cst_29 : f32 to vector<128x128xf32>
    %43 = arith.mulf %42, %39 : vector<128x128xf32>
    %44 = arith.select %41, %39, %43 : vector<128x128xi1>, vector<128x128xf32>
    %45 = vector.extract_strided_slice %37 {offsets = [0, 0], sizes = [128, 128], strides = [1, 1]} : vector<128x256xf32> to vector<128x128xf32>
    %46 = arith.truncf %45 : vector<128x128xf32> to vector<128x128xbf16>
    %47 = arith.maximumf %16, %30 : vector<128x128xf32>
    %48 = arith.maximumf %47, %44 : vector<128x128xf32>
    %49 = arith.subf %16, %48 : vector<128x128xf32>
    %50 = math.exp %49 : vector<128x128xf32>
    %51 = arith.subf %30, %48 : vector<128x128xf32>
    %52 = math.exp %51 : vector<128x128xf32>
    %53 = arith.subf %44, %48 : vector<128x128xf32>
    %54 = math.exp %53 : vector<128x128xf32>
    %55 = arith.addf %50, %52 : vector<128x128xf32>
    %56 = arith.addf %55, %54 : vector<128x128xf32>
    %57 = tpu.reciprocal %56 {approx = true} : vector<128x128xf32> -> vector<128x128xf32>
    %58 = arith.mulf %50, %57 : vector<128x128xf32>
    %59 = arith.truncf %58 : vector<128x128xf32> to vector<128x128xbf16>
    %cst_30 = arith.constant dense<0.000000e+00> : vector<128x128xf32>
    %60 = tpu.matmul %59, %4, %cst_30 {dimension_numbers = #tpu.dot_dimension_numbers<[1], [0], [0], [1], [0, 0, 1, 1], [], []>} : vector<128x128xbf16>, vector<128x128xbf16>, vector<128x128xf32> -> vector<128x128xf32>
    %61 = arith.extf %18 : vector<128x128xbf16> to vector<128x128xf32>
    %62 = arith.mulf %60, %61 : vector<128x128xf32>
    %63 = arith.mulf %52, %57 : vector<128x128xf32>
    %64 = arith.truncf %63 : vector<128x128xf32> to vector<128x128xbf16>
    %cst_31 = arith.constant dense<0.000000e+00> : vector<128x128xf32>
    %65 = tpu.matmul %64, %4, %cst_31 {dimension_numbers = #tpu.dot_dimension_numbers<[1], [0], [0], [1], [0, 0, 1, 1], [], []>} : vector<128x128xbf16>, vector<128x128xbf16>, vector<128x128xf32> -> vector<128x128xf32>
    %66 = arith.extf %32 : vector<128x128xbf16> to vector<128x128xf32>
    %67 = arith.mulf %65, %66 : vector<128x128xf32>
    %68 = arith.addf %62, %67 : vector<128x128xf32>
    %69 = arith.mulf %54, %57 : vector<128x128xf32>
    %70 = arith.truncf %69 : vector<128x128xf32> to vector<128x128xbf16>
    %cst_32 = arith.constant dense<0.000000e+00> : vector<128x128xf32>
    %71 = tpu.matmul %70, %4, %cst_32 {dimension_numbers = #tpu.dot_dimension_numbers<[1], [0], [0], [1], [0, 0, 1, 1], [], []>} : vector<128x128xbf16>, vector<128x128xbf16>, vector<128x128xf32> -> vector<128x128xf32>
    %72 = arith.extf %46 : vector<128x128xbf16> to vector<128x128xf32>
    %73 = arith.mulf %71, %72 : vector<128x128xf32>
    %74 = arith.addf %68, %73 : vector<128x128xf32>
    %75 = arith.truncf %74 : vector<128x128xf32> to vector<128x128xbf16>
    %c0_33 = arith.constant 0 : index
    %c0_34 = arith.constant 0 : index
    %76 = vector.load %arg6[%c0_33, %c0_34] : memref<128x128xbf16, #tpu.memory_space<vmem>>, vector<128x128xbf16>
    tpu.vector_store %arg6[%c0_33, %c0_34], %75 {strides = array<i32>} : memref<128x128xbf16, #tpu.memory_space<vmem>>, vector<128x128xbf16>,
    return
  }
  func.func @transform_0(%arg0: i32) -> (i32, i32) {
    %c0_i32 = arith.constant 0 : i32
    %c0_i32_0 = arith.constant 0 : i32
    return %arg0, %c0_i32 : i32, i32
  }
  func.func @transform_1(%arg0: i32) -> (i32, i32) {
    %c0_i32 = arith.constant 0 : i32
    %c0_i32_0 = arith.constant 0 : i32
    %c0_i32_1 = arith.constant 0 : i32
    return %c0_i32, %c0_i32_0 : i32, i32
  }
  func.func @transform_2(%arg0: i32) -> (i32, i32, i32) {
    %c0_i32 = arith.constant 0 : i32
    %c0_i32_0 = arith.constant 0 : i32
    %c0_i32_1 = arith.constant 0 : i32
    return %c0_i32, %arg0, %c0_i32_0 : i32, i32, i32
  }
  func.func @transform_3(%arg0: i32) -> (i32, i32, i32) {
    %c0_i32 = arith.constant 0 : i32
    %c0_i32_0 = arith.constant 0 : i32
    %c0_i32_1 = arith.constant 0 : i32
    %c0_i32_2 = arith.constant 0 : i32
    return %c0_i32, %c0_i32_0, %c0_i32_1 : i32, i32, i32
  }
  func.func @transform_4(%arg0: i32) -> (i32, i32) {
    %c0_i32 = arith.constant 0 : i32
    %c0_i32_0 = arith.constant 0 : i32
    %c0_i32_1 = arith.constant 0 : i32
    return %c0_i32, %c0_i32_0 : i32, i32
  }
  func.func @transform_5(%arg0: i32) -> (i32, i32) {
    %c0_i32 = arith.constant 0 : i32
    %c0_i32_0 = arith.constant 0 : i32
    return %arg0, %c0_i32 : i32, i32
  }
}

</mosaic_0001>

<bundles_post_ra>
// kernel: tpu_custom_call.1
= control target key start
LH: loop header
LB: loop body
LE: loop exit
PB: predicated region body
PF: predicated region fallthrough
CT: control target
= control target key end

     0   :  { %10 = vsyncpa [#allocation3], 0  ;;  %s4071_s0 = inlined_call_operand.vmem [shape: bf16[256,64], index: 0, kind: input, shape index: {}]   ;;  %s4072_s1 = inlined_call_operand.vmem [shape: bf16[64,256], index: 1, kind: input, shape index: {}]   ;;  %s4073_s2 = inlined_call_operand.hbm [shape: bf16[3,256,128], index: 2, kind: input, shape index: {}]   ;;  %s4074_s3 = inlined_call_operand.hbm [shape: bf16[3,128,256], index: 3, kind: input, shape index: {}]   ;;  %s4075_s4 = inlined_call_operand.vmem [shape: bf16[128,128], index: 4, kind: input, shape index: {}]   ;;  %s4076_s5 = inlined_call_operand.hbm [shape: bf16[256,128], index: 5, kind: output, shape index: {}]  }
   0x1   :  { %12 = vsyncpa [#allocation3 + $0x1], 0 }
   0x2   :  { %13 = vsyncpa [#allocation6], 0 }
   0x3   :  { %14 = vsyncpa [#allocation4], 0 }
   0x4   :  { %16 = vsyncpa [#allocation4 + $0x1], 0  ;;  %s3191_s18 = smov 0   ;;  %s3193_s19 = smov 0  }
   0x5   :  { %s3195_s20 = smov 0   ;;  %s3197_s21 = smov 0  }
   0x6 LB: > { %s3212_s22 = sadd.s32 4294967295, %s3148_s21   ;;  %s2270_s23 = sadd.s32 4294967294, %s3148_s21   ;;  %s3148_s21 = sphi %s3197_s21, %s4118_s21   ;;  %s3144_s20 = sphi %s3195_s20, %s4117_s20   ;;  %s3140_s19 = sphi %s3193_s19, %s4116_s19   ;;  %s3136_s18 = sphi %s3191_s18, %s4115_s18  }
   0x7   : > { %s3216_s24 = sadd.s32 1, %s3148_s21   ;;  %s76_s25 = sadd.s32 1, %s3144_s20 }
   0x8   : > { %s73_s26 = ssub.s32 %s3148_s21, %s3216_s24  ;;  %p83_p0 = scmp.ne.s32.totalorder %s3144_s20, %s3140_s19 }
   0x9   : > { %p74_p1 = scmp.eq.s32.totalorder %s73_s26, 0  ;;  %p84_p2 = scmp.eq.s32.totalorder %s3148_s21, 0 }
   0xa   : > { %p89_p3 = scmp.ne.s32.totalorder %s3140_s19, %s3136_s18  ;;  %p90_p4 = scmp.eq.s32.totalorder %s3212_s22, 0 }
   0xb   : > { %s3228_s27 = scalar_select %p74_p1, %s3144_s20, %s76_s25  }
   0xc   : > { %p3230_p5 = por %p84_p2, %p83_p0  ;;  %p3236_p6 = por %p90_p4, %p89_p3 }
   0xd   : > { %p155_p7 = scmp.eq.s32.totalorder %s3212_s22, 1  ;;  %p161_p8 = scmp.eq.s32.totalorder %s2270_s23, 1 }
   0xe   : > { %p2271_p9 = scmp.ge.s32.totalorder %s3148_s21, 1  ;;  %p168_p10 = scmp.lt.s32.totalorder %s3148_s21, 3 }
   0xf   : > { %p3243_p11 = por %p155_p7, %p83_p0  ;;  %p3247_p12 = por %p161_p8, %p89_p3 }
  0x10   : > { %p3251_p13 = pnand %p2271_p9, %p168_p10  ;;  %s182_s10 = sshll.u32 %s4074_s3, 4  ;;  %s183_s10 = int_to_ptr.hbm [resolvable:$true] %s182_s10 }
  0x11   : > { %s3150_s11 = smov [#allocation5]   ;;  %s3151_s13 = smov 128  }
  0x12   : > { %p2866_p1 = pneg %p3251_p13  ;;  %s184_s12 = sshll.u32 %s3150_s11, 4  ;;  %s185_s12 = int_to_ptr.vmem [resolvable:$true] %s184_s12 }
  0x13   : > { %s3152_s14 = smov 8   ;;  %p2273_p2 = scmp.ge.s32.totalorder %s3148_s21, 2 }
  0x14   : > { %p2867_p0 = pnand %p2866_p1, %p90_p4 }
  0x15   : > { %197 = sbr.rel (%p2273_p2) target bundleno = 40 (0x28), region = 28 }
  0x16   : > { %2869 = dma.hbm_to_vmem [thread:$0]  (!%p2867_p0), %s183_s10, 6144, %s185_s12, [#allocation6], %s3151_s13, %s3151_s13, %s3152_s14  }
  0x1a   : > { %s210_s15 = sand.u32 1, %s3144_s20   ;;  %s2696_s16 = sshll.u32 %s3148_s21, 6 }
  0x1b   : > { %s2849_s17 = smul.u32 192, %s210_s15  ;;  %s219_s26 = scalar_lea.hbm %s4073_s2, %s2696_s16 }
  0x1c   : > { %s232_s8 = sshll.u32 %s219_s26, 4  ;;  %s3153_s13 = smov 2048   ;;  %s233_s8 = int_to_ptr.hbm [resolvable:$true] %s232_s8 }
  0x1d   : > { %s2853_s9 = scalar_select %p3230_p5, [#allocation0], [#allocation10] }
  0x1e   : > { %s214_s10 = scalar_lea.vmem [#allocation2], %s2849_s17  ;;  %2854 = sst [smem:[#allocation9]] (%p3230_p5), %s3153_s13 }
  0x1f   : > { %s234_s11 = sshll.u32 %s214_s10, 4  ;;  %s224_s12 = sld [smem:[%s2853_s9]]   ;;  %s235_s11 = int_to_ptr.vmem [resolvable:$true] %s234_s11 }
  0x20   : > { %s3154_s14 = smov 1024   ;;  %s3155_s23 = smov 16  }
  0x21   : > { %2855 = sst [smem:[#allocation9 + $0x1]] (%p3230_p5), %s3154_s14  ;;  %s3156_s16 = smov 64  }
  0x22   : > { %2856 = sst [smem:[#allocation9 + $0x2]] (%p3230_p5), %s3155_s23  ;;  %s3157_s17 = smov 4  }
  0x23   : > { %2857 = sst [smem:[#allocation9 + $0x3]] (%p3230_p5), %s3156_s16  ;;  %s211_s9 = scalar_lea.sflag [#allocation3], %s210_s15 }
  0x24   : > { %2858 = sst [smem:[#allocation9 + $0x4]] (%p3230_p5), %s3156_s16  ;;  %s3158_s10 = smov [#allocation8]  }
  0x25   : > { %s2276_s25 = sshll.u32 %s224_s12, 26  ;;  %2859 = sst [smem:[#allocation9 + $0x5]] (%p3230_p5), %s3157_s17 }
  0x26   : > { %s2277_s26 = sadd.s32 134217728, %s2276_s25 }
  0x27   : > { %2860 = dma.general (%p3230_p5), %s233_s8, 3072, %s235_s11, %s211_s9, %s3158_s10, [#allocation9], %s2277_s26, 0  }
  0x28 PF: > { %259 = sbr.rel (%p3251_p13) target bundleno = 717 (0x2cd), region = 40 }
  0x2d   : > { %s3289_s13 = sand.u32 1, %s3140_s19  }
  0x2e   : > { %s2850_s14 = smul.u32 192, %s3289_s13  ;;  %s262_s12 = scalar_lea.sflag [#allocation3], %s3289_s13 }
  0x30   : > { %s3293_s23 = scalar_lea.vmem [#allocation2], %s2850_s14 }
  0x31   : > { %3123 = dma.done.wait (%p3236_p6), %s262_s12, 3072  }
  0x32   : > { %3125 = vsyncadd (%p3236_p6), %s262_s12, 4294964224 }
  0x33   : > { %3127 = dma.done.wait (%p90_p4), [#allocation6], 6144  }
  0x34   : > { %3129 = vsyncadd (%p90_p4), [#allocation6], 4294961152  ;;  %s2281_s28 = sshll.u32 %s3212_s22, 4  ;;  %v2429_v0 = vld [vmem:[#allocation5 + $0x70] sm:$0xf]  ;;  %vm400_vm0 = vcmask 523264  }
  0x35   : > { %p3304_p3 = scmp.lt.s32.totalorder %s2281_s28, 31  ;;  %v2740_v1 = vld [vmem:[#allocation5 + $0x74] sm:$0xf0]  ;;  %v2421_v2 = vld [vmem:[#allocation5 + $0x60] sm:$0xf]  ;;  %s2280_s26 = sshll.u32 %s3289_s13, 6 }
  0x36   : > { %v2430_v3 = vor.u32 %v2740_v1, %v2429_v0  ;;  %v2738_v4 = vld [vmem:[#allocation5 + $0x64] sm:$0xf0]  ;;  %v2708_v5 = vld [vmem:[%s4072_s1 + $0x34] sm:$0xf]  ;;  %v2327_v6 = vld [vmem:[%s4072_s1 + $0x38] sm:$0xf0] }
  0x37   : > { %v2330_v7 = vor.u32 %v2708_v5, %v2327_v6  ;;  %v2707_v8 = vld [vmem:[%s4072_s1 + $0x24] sm:$0xf]  ;;  %v2422_v9 = vor.u32 %v2738_v4, %v2421_v2  ;;  %v2323_v10 = vld [vmem:[%s4072_s1 + $0x28] sm:$0xf0]  ;;  %v2413_v11 = vld [vmem:[#allocation5 + $0x50] sm:$0xf] }
  0x38   : > { %2841 = vmatpush.bf16.msra.mxu2 %v2430_v3  ;;  %650 = vmatpush.bf16.msra.mxu1 %v2430_v3  ;;  %v2736_v12 = vld [vmem:[#allocation5 + $0x54] sm:$0xf0]  ;;  %v2326_v13 = vor.u32 %v2707_v8, %v2323_v10  ;;  %v2706_v14 = vld [vmem:[%s4072_s1 + $0x14] sm:$0xf]  ;;  %v2319_v15 = vld [vmem:[%s4072_s1 + $0x18] sm:$0xf0] }
  0x39   : > { %429 = vmatpush.bf16.msra.mxu0 %v2330_v7  ;;  %2837 = vmatpush.bf16.msra.mxu3 %v2330_v7  ;;  %s4120_s28 = smov (!%p3304_p3, %s2281_s28), 31  ;;  %v2414_v16 = vor.u32 %v2736_v12, %v2413_v11  ;;  %v2405_v17 = vld [vmem:[#allocation5 + $0x40] sm:$0xf]  ;;  %v2734_v18 = vld [vmem:[#allocation5 + $0x44] sm:$0xf0]  ;;  %v2322_v19 = vor.u32 %v2706_v14, %v2319_v15  ;;  %s3949_s9 = scalar_lea.vmem [#allocation7], %s2280_s26 }
  0x3a   : > { %v2705_v20 = vld [vmem:[%s4072_s1 + $0x4] sm:$0xf]  ;;  %v2315_v21 = vld [vmem:[%s4072_s1 + $0x8] sm:$0xf0]  ;;  %s2282_s16 = sshll.u32 %s4120_s28, 2  ;;  %v2406_v22 = vor.u32 %v2734_v18, %v2405_v17  ;;  %s2789_s10 = sshll.u32 %s3212_s22, 6 }
  0x3b   : > { %v2397_v23 = vld [vmem:[#allocation5 + $0x30] sm:$0xf]  ;;  %v2732_v24 = vld [vmem:[#allocation5 + $0x34] sm:$0xf0]  ;;  %v2318_v25 = vor.u32 %v2705_v20, %v2315_v21  ;;  %s3337_s17 = scalar_lea.vmem %s4071_s0, %s2282_s16  ;;  %v2389_v28 = vld [vmem:[#allocation5 + $0x20] sm:$0xf]  ;;  %s2171_s15 = scalar_lea.hbm %s4076_s5, %s2789_s10 }
  0x3c   : > { %2842 = vmatpush.bf16.msra.mxu2 %v2422_v9  ;;  %651 = vmatpush.bf16.msra.mxu1 %v2422_v9  ;;  %v2398_v26 = vor.u32 %v2732_v24, %v2397_v23  ;;  %v2697_v27 = vld [vmem:[%s3337_s17] sm:$0xff]  ;;  %v2730_v29 = vld [vmem:[#allocation5 + $0x24] sm:$0xf0]  ;;  %v2381_v31 = vld [vmem:[#allocation5 + $0x10] sm:$0xf]  ;;  %s2172_s29 = sshll.u32 %s3949_s9, 4  ;;  %s2173_s29 = int_to_ptr.vmem [resolvable:$true] %s2172_s29 }
  0x3d   : > { %430 = vmatpush.bf16.msra.mxu0 %v2326_v13  ;;  %2838 = vmatpush.bf16.msra.mxu3 %v2326_v13  ;;  %v2390_v30 = vor.u32 %v2730_v29, %v2389_v28  ;;  %v2728_v32 = vld [vmem:[#allocation5 + $0x14] sm:$0xf0]  ;;  %v2373_v34 = vld [vmem:[#allocation5] sm:$0xf]  ;;  %v2726_v35 = vld [vmem:[#allocation5 + $0x4] sm:$0xf0] }
  0x3e   : > { %v2382_v33 = vor.u32 %v2728_v32, %v2381_v31  ;;  %v2739_v36 = vld [vmem:[#allocation5 + $0x74] sm:$0xf]  ;;  %v2431_v37 = vld [vmem:[#allocation5 + $0x78] sm:$0xf0]  ;;  %v2374_v38 = vor.u32 %v2726_v35, %v2373_v34  ;;  %v2737_v40 = vld [vmem:[#allocation5 + $0x64] sm:$0xf] }
  0x3f   : > { %v2434_v39 = vor.u32 %v2739_v36, %v2431_v37  ;;  %v2423_v41 = vld [vmem:[#allocation5 + $0x68] sm:$0xf0]  ;;  %v3342_v42 = vld [vmem:[%s3293_s23 + $0x20] sm:$0xff]  ;;  %v2735_v45 = vld [vmem:[#allocation5 + $0x54] sm:$0xf]  ;;  %s2174_s8 = sshll.u32 %s2171_s15, 4  ;;  %s2175_s8 = int_to_ptr.hbm [resolvable:$true] %s2174_s8 }
  0x40   : > { %2843 = vmatpush.bf16.msra.mxu2 %v2414_v16  ;;  %652 = vmatpush.bf16.msra.mxu1 %v2414_v16  ;;  %v2698_v43 = vld [vmem:[%s3337_s17 + $0x8] sm:$0xff]  ;;  %v2426_v44 = vor.u32 %v2737_v40, %v2423_v41  ;;  %v2415_v46 = vld [vmem:[#allocation5 + $0x58] sm:$0xf0]  ;;  %v2763_v47 = vld [vmem:[#allocation5 + $0xf4] sm:$0xf]  ;;  %s2160_s22 = scalar_lea.sflag [#allocation4], %s3289_s13 }
  0x41   : > { %431 = vmatpush.bf16.msra.mxu0 %v2322_v19  ;;  %2839 = vmatpush.bf16.msra.mxu3 %v2322_v19  ;;  %v2543_v48 = vld [vmem:[#allocation5 + $0xf8] sm:$0xf0]  ;;  %v2418_v49 = vor.u32 %v2735_v45, %v2415_v46  ;;  %v2761_v51 = vld [vmem:[#allocation5 + $0xe4] sm:$0xf]  ;;  %v2535_v52 = vld [vmem:[#allocation5 + $0xe8] sm:$0xf0] }
  0x42   : > { %v2546_v50 = vor.u32 %v2763_v47, %v2543_v48  ;;  %v2733_v53 = vld [vmem:[#allocation5 + $0x44] sm:$0xf]  ;;  %v2407_v54 = vld [vmem:[#allocation5 + $0x48] sm:$0xf0]  ;;  %v2538_v55 = vor.u32 %v2761_v51, %v2535_v52  ;;  %v2759_v56 = vld [vmem:[#allocation5 + $0xd4] sm:$0xf] }
  0x43   : > { %v2527_v57 = vld [vmem:[#allocation5 + $0xd8] sm:$0xf0]  ;;  %v2410_v58 = vor.u32 %v2733_v53, %v2407_v54  ;;  %v2731_v59 = vld [vmem:[#allocation5 + $0x34] sm:$0xf]  ;;  %v2729_v63 = vld [vmem:[#allocation5 + $0x24] sm:$0xf] }
  0x44   : > { %2844 = vmatpush.bf16.msra.mxu2 %v2406_v22  ;;  %653 = vmatpush.bf16.msra.mxu1 %v2406_v22  ;;  %v2399_v60 = vld [vmem:[#allocation5 + $0x38] sm:$0xf0]  ;;  %v2530_v61 = vor.u32 %v2759_v56, %v2527_v57  ;;  %v2391_v0 = vld [vmem:[#allocation5 + $0x28] sm:$0xf0]  ;;  %v2699_v2 = vld [vmem:[%s3337_s17 + $0x10] sm:$0xff]  ;;  %s3092_s11 = sshra.s32 %s2175_s8, 4  ;;  %s3093_s11 = int_to_ptr.hbm [resolvable:$true] %s3092_s11 }
  0x45   : > { %432 = vmatpush.bf16.msra.mxu0 %v2318_v25  ;;  %2840 = vmatpush.bf16.msra.mxu3 %v2318_v25  ;;  %v2402_v62 = vor.u32 %v2731_v59, %v2399_v60  ;;  %v3348_v1 = vld [vmem:[%s3293_s23 + $0x28] sm:$0xff]  ;;  %v2394_v3 = vor.u32 %v2729_v63, %v2391_v0  ;;  %v2727_v4 = vld [vmem:[#allocation5 + $0x14] sm:$0xf]  ;;  %v2383_v5 = vld [vmem:[#allocation5 + $0x18] sm:$0xf0]  ;;  %s3094_s16 = scalar_lea.hbm %s3093_s11, 64  ;;  %p3099_p7 = scmp.lt.s32.totalorder %s3093_s11, %s4076_s5 }
  0x46   : > { %v2757_v6 = vld [vmem:[#allocation5 + $0xc4] sm:$0xf]  ;;  %v2519_v7 = vld [vmem:[#allocation5 + $0xc8] sm:$0xf0]  ;;  %v2755_v8 = vld [vmem:[#allocation5 + $0xb4] sm:$0xf]  ;;  %v2386_v9 = vor.u32 %v2727_v4, %v2383_v5  ;;  %p3095_p4 = scmp.ne.s32.totalorder %s3093_s11, %s3094_s16 }
  0x47   : > { %v2522_v10 = vor.u32 %v2757_v6, %v2519_v7  ;;  %v2511_v11 = vld [vmem:[#allocation5 + $0xb8] sm:$0xf0]  ;;  %v2725_v12 = vld [vmem:[#allocation5 + $0x4] sm:$0xf]  ;;  %v2375_v13 = vld [vmem:[#allocation5 + $0x8] sm:$0xf0] }
  0x48   : > { %2845 = vmatpush.bf16.msra.mxu2 %v2398_v26  ;;  %2331 = vmatmul.msk.bf16.vlgmr.msra.gmra.mxu0 %vm400_vm0, %v2697_v27  ;;  %v2514_v14 = vor.u32 %v2755_v8, %v2511_v11  ;;  %v2717_v15 = vld [vmem:[%s3293_s23] sm:$0xff]  ;;  %v2503_v17 = vld [vmem:[#allocation5 + $0xa8] sm:$0xf0]  ;;  %v2378_v18 = vor.u32 %v2725_v12, %v2375_v13  ;;  %v2751_v20 = vld [vmem:[#allocation5 + $0x94] sm:$0xf]  ;;  %p3096_p5 = pnand %p3095_p4, %p3243_p11  ;;  %s3098_s25 = scalar_lea.hbm %s4076_s5, 128 }
  0x49   : > { %654 = vmatpush.bf16.msra.mxu1 %v2398_v26  ;;  %1039 = vmatpush.bf16.msrb.mxu0 %v2546_v50  ;;  %v2753_v16 = vld [vmem:[#allocation5 + $0xa4] sm:$0xf]  ;;  %v2495_v21 = vld [vmem:[#allocation5 + $0x98] sm:$0xf0]  ;;  %v3355_v22 = vld [vmem:[%s3293_s23 + $0x30] sm:$0xff]  ;;  %p3100_p8 = scmp.lt.s32.totalorder %s3098_s25, %s3094_s16 }
  0x4a   : > { %v2506_v19 = vor.u32 %v2753_v16, %v2503_v17  ;;  %v2498_v23 = vor.u32 %v2751_v20, %v2495_v21  ;;  %v2700_v24 = vld [vmem:[%s3337_s17 + $0x18] sm:$0xff]  ;;  %v2787_v25 = vld [vmem:[#allocation5 + $0x174] sm:$0xf]  ;;  %v2749_v27 = vld [vmem:[#allocation5 + $0x84] sm:$0xf]  ;;  %p3097_p6 = pneg %p3096_p5 }
  0x4b   : > { %v2655_v26 = vld [vmem:[#allocation5 + $0x178] sm:$0xf0]  ;;  %v2487_v29 = vld [vmem:[#allocation5 + $0x88] sm:$0xf0]  ;;  %v2785_v34 = vld [vmem:[#allocation5 + $0x164] sm:$0xf]  ;;  %p3101_p9 = por %p3100_p8, %p3099_p7 }
  0x4c   : > { %2846 = vmatpush.bf16.msra.mxu2 %v2390_v30  ;;  %v2658_v28 = vor.u32 %v2787_v25, %v2655_v26  ;;  %v2718_v31 = vld [vmem:[%s3293_s23 + $0x8] sm:$0xff]  ;;  %v3362_v32 = vld [vmem:[%s3293_s23 + $0x38] sm:$0xff]  ;;  %v2719_v37 = vld [vmem:[%s3293_s23 + $0x10] sm:$0xff] }
  0x4d   : > { %655 = vmatpush.bf16.msra.mxu1 %v2390_v30  ;;  %1040 = vmatpush.bf16.msrb.mxu0 %v2538_v55  ;;  %v2490_v30 = vor.u32 %v2749_v27, %v2487_v29  ;;  %v2647_v35 = vld [vmem:[#allocation5 + $0x168] sm:$0xf0]  ;;  %v2639_v40 = vld [vmem:[#allocation5 + $0x158] sm:$0xf0]  ;;  %v2781_v45 = vld [vmem:[#allocation5 + $0x144] sm:$0xf]  ;;  %p3102_p10 = pnand %p3101_p9, %p3097_p6 }
  0x4e   : > { %v2650_v36 = vor.u32 %v2785_v34, %v2647_v35  ;;  %v2631_v46 = vld [vmem:[#allocation5 + $0x148] sm:$0xf0]  ;;  %v3378_v48 = vld [vmem:[%s3293_s23 + $0x50] sm:$0xff]  ;;  %v2623_v50 = vld [vmem:[#allocation5 + $0x138] sm:$0xf0] }
  0x4f   : > { %v2634_v47 = vor.u32 %v2781_v45, %v2631_v46  ;;  %v3382_v52 = vld [vmem:[%s3293_s23 + $0x58] sm:$0xff]  ;;  %v2702_v53 = vld [vmem:[%s3337_s17 + $0x28] sm:$0xff]  ;;  %v2777_v54 = vld [vmem:[#allocation5 + $0x124] sm:$0xf] }
  0x50   : > { %2847 = vmatpush.bf16.msra.mxu2 %v2382_v33  ;;  %2336 = vmatmul.msk.bf16.vlgmr.msra.gmra.mxu3 %vm400_vm0, %v2702_v53  ;;  %v2615_v55 = vld [vmem:[#allocation5 + $0x128] sm:$0xf0]  ;;  %v3388_v57 = vld [vmem:[%s3293_s23 + $0x60] sm:$0xff]  ;;  %v2775_v59 = vld [vmem:[#allocation5 + $0x114] sm:$0xf] }
  0x51   : > { %656 = vmatpush.bf16.msra.mxu1 %v2382_v33  ;;  %1041 = vmatpush.bf16.msrb.mxu0 %v2530_v61  ;;  %v2701_v33 = vld [vmem:[%s3337_s17 + $0x20] sm:$0xff]  ;;  %v2618_v56 = vor.u32 %v2777_v54, %v2615_v55  ;;  %v2607_v60 = vld [vmem:[#allocation5 + $0x118] sm:$0xf0]  ;;  %v3399_v0 = vld [vmem:[%s3293_s23 + $0x68] sm:$0xff] }
  0x52   : > { %v2610_v61 = vor.u32 %v2775_v59, %v2607_v60  ;;  %v2653_v6 = vld [vmem:[#allocation5 + $0x170] sm:$0xf]  ;;  %v2788_v7 = vld [vmem:[#allocation5 + $0x174] sm:$0xf0]  ;;  %v2645_v12 = vld [vmem:[#allocation5 + $0x160] sm:$0xf] }
  0x53   : > { %v2654_v8 = vor.u32 %v2788_v7, %v2653_v6  ;;  %v2541_v11 = vld [vmem:[#allocation5 + $0xf0] sm:$0xf]  ;;  %v2760_v26 = vld [vmem:[#allocation5 + $0xd4] sm:$0xf0]  ;;  %v2517_v29 = vld [vmem:[#allocation5 + $0xc0] sm:$0xf] }
  0x54   : > { %2848 = vmatpush.bf16.msra.mxu2 %v2374_v38  ;;  %v2637_v21 = vld [vmem:[#allocation5 + $0x150] sm:$0xf]  ;;  %v2629_v34 = vld [vmem:[#allocation5 + $0x140] sm:$0xf]  ;;  %v2782_v35 = vld [vmem:[#allocation5 + $0x144] sm:$0xf0] }
  0x55   : > { %657 = vmatpush.bf16.msra.mxu1 %v2374_v38  ;;  %1042 = vmatpush.bf16.msrb.mxu0 %v2522_v10  ;;  %v3369_v38 = vld [vmem:[%s3293_s23 + $0x40] sm:$0xff]  ;;  %v3410_v10 = vld [vmem:[%s3293_s23 + $0x70] sm:$0xff]  ;;  %v2754_v45 = vld [vmem:[#allocation5 + $0xa4] sm:$0xf0] }
  0x56   : > { %v2621_v46 = vld [vmem:[#allocation5 + $0x130] sm:$0xf]  ;;  %v2752_v53 = vld [vmem:[#allocation5 + $0x94] sm:$0xf0]  ;;  %v2765_v54 = vld [vmem:[%s3293_s23 + $0x80] sm:$0xff] }
  0x57   : > { %678 = vmatmul.bf16.vlgmr.msra.gmra.mxu2 %v3342_v42  ;;  %v2485_v59 = vld [vmem:[#allocation5 + $0x80] sm:$0xf]  ;;  %v2776_v6 = vld [vmem:[#allocation5 + $0x114] sm:$0xf0] }
  0x58   : > { %699 = vmatpush.bf16.msrb.mxu2 %v2434_v39  ;;  %2332 = vmatmul.msk.bf16.gmra.mxu0 %vm400_vm0, %v2698_v43  ;;  %v2783_v39 = vld [vmem:[#allocation5 + $0x154] sm:$0xf]  ;;  %v2720_v43 = vld [vmem:[%s3293_s23 + $0x18] sm:$0xff] }
  0x59   : > { %658 = vmatmul.bf16.vlgmr.msra.gmra.mxu1 %v2717_v15  ;;  %1043 = vmatpush.bf16.msrb.mxu0 %v2514_v14  ;;  %v2642_v41 = vor.u32 %v2783_v39, %v2639_v40  ;;  %v2786_v14 = vld [vmem:[#allocation5 + $0x164] sm:$0xf0]  ;;  %v2509_v39 = vld [vmem:[#allocation5 + $0xb0] sm:$0xf]  ;;  %v2756_v40 = vld [vmem:[#allocation5 + $0xb4] sm:$0xf0] }
  0x5a   : > { %1330 = vmatpush.bf16.msrb.mxu1 %v2654_v8  ;;  %v2597_v8 = vld [vmem:[#allocation5 + $0x100] sm:$0xf] }
  0x5c   : > { %700 = vmatpush.bf16.msrb.mxu2 %v2426_v44  ;;  %v3374_v44 = vld [vmem:[%s3293_s23 + $0x48] sm:$0xff] }
  0x5d   : > { %1044 = vmatpush.bf16.msrb.mxu0 %v2506_v19  ;;  %v2762_v19 = vld [vmem:[#allocation5 + $0xe4] sm:$0xf0] }
  0x60   : > { %701 = vmatpush.bf16.msrb.mxu2 %v2418_v49  ;;  %v2779_v49 = vld [vmem:[#allocation5 + $0x134] sm:$0xf] }
  0x61   : > { %1045 = vmatpush.bf16.msrb.mxu0 %v2498_v23  ;;  %v2626_v51 = vor.u32 %v2779_v49, %v2623_v50  ;;  %v2784_v23 = vld [vmem:[#allocation5 + $0x154] sm:$0xf0] }
  0x62   : > { %v2638_v25 = vor.u32 %v2784_v23, %v2637_v21  ;;  %v2715_v23 = vld [vmem:[%s4075_s4 + $0x30] sm:$0xff] }
  0x64   : > { %702 = vmatpush.bf16.msrb.mxu2 %v2410_v58  ;;  %v2703_v58 = vld [vmem:[%s3337_s17 + $0x30] sm:$0xff] }
  0x65   : > { %1046 = vmatpush.bf16.msrb.mxu0 %v2490_v30  ;;  %2337 = vmatmul.msk.bf16.gmra.mxu3 %vm400_vm0, %v2703_v58  ;;  %v2758_v30 = vld [vmem:[#allocation5 + $0xc4] sm:$0xf0] }
  0x66   : > { %v2778_v58 = vld [vmem:[#allocation5 + $0x124] sm:$0xf0] }
  0x67   : > { %683 = vmatmul.bf16.gmra.mxu2 %v3348_v1 }
  0x68   : > { %703 = vmatpush.bf16.msrb.mxu2 %v2402_v62  ;;  %2333 = vmatmul.msk.bf16.gmra.mxu0 %vm400_vm0, %v2699_v2  ;;  %v2704_v2 = vld [vmem:[%s3337_s17 + $0x38] sm:$0xff] }
  0x69   : > { %663 = vmatmul.bf16.gmra.mxu1 %v2718_v31 }
  0x6c   : > { %704 = vmatpush.bf16.msrb.mxu2 %v2394_v3  ;;  %v2599_v3 = vld [vmem:[#allocation5 + $0x108] sm:$0xf0] }
  0x70   : > { %705 = vmatpush.bf16.msrb.mxu2 %v2386_v9 }
  0x74   : > { %706 = vmatpush.bf16.msrb.mxu2 %v2378_v18  ;;  %v2533_v18 = vld [vmem:[#allocation5 + $0xe0] sm:$0xf] }
  0x75   : > { %2338 = vmatmul.msk.bf16.gmra.mxu3 %vm400_vm0, %v2704_v2  ;;  %v2534_v20 = vor.u32 %v2762_v19, %v2533_v18 }
  0x77   : > { %688 = vmatmul.bf16.gmra.mxu2 %v3355_v22 }
  0x78   : > { %2334 = vmatmul.msk.bf16.gmra.mxu0 %vm400_vm0, %v2700_v24  ;;  %1379 = vmatpush.bf16.msra.mxu2 %v2658_v28  ;;  %v2525_v24 = vld [vmem:[#allocation5 + $0xd0] sm:$0xf]  ;;  %v3421_v28 = vld [vmem:[%s3293_s23 + $0x78] sm:$0xff] }
  0x79   : > { %668 = vmatmul.bf16.gmra.mxu1 %v2719_v37  ;;  %v2526_v27 = vor.u32 %v2760_v26, %v2525_v24  ;;  %v2768_v26 = vld [vmem:[%s3293_s23 + $0x98] sm:$0xff] }
  0x7c   : > { %1380 = vmatpush.bf16.msra.mxu2 %v2650_v36  ;;  %v2630_v36 = vor.u32 %v2782_v35, %v2629_v34  ;;  %v2713_v35 = vld [vmem:[%s4075_s4 + $0x20] sm:$0xff] }
  0x80   : > { %1381 = vmatpush.bf16.msra.mxu2 %v2642_v41  ;;  %v2510_v41 = vor.u32 %v2756_v40, %v2509_v39 }
  0x84   : > { %1382 = vmatpush.bf16.msra.mxu2 %v2634_v47  ;;  %v2780_v47 = vld [vmem:[#allocation5 + $0x134] sm:$0xf0] }
  0x85   : > { %v2622_v49 = vor.u32 %v2780_v47, %v2621_v46 }
  0x87   : > { %693 = vmatmul.bf16.gmra.mxu2 %v3362_v32 }
  0x88   : > { %2335 = vmatmul.msk.bf16.gmra.mxu0 %vm400_vm0, %v2701_v33  ;;  %1383 = vmatpush.bf16.msra.mxu2 %v2626_v51  ;;  %v2493_v51 = vld [vmem:[#allocation5 + $0x90] sm:$0xf] }
  0x89   : > { %673 = vmatmul.bf16.gmra.mxu1 %v2720_v43  ;;  %v2494_v55 = vor.u32 %v2752_v53, %v2493_v51  ;;  %v2771_v51 = vld [vmem:[%s3293_s23 + $0xb0] sm:$0xff] }
  0x8c   : > { %1384 = vmatpush.bf16.msra.mxu2 %v2618_v56  ;;  %v2613_v56 = vld [vmem:[#allocation5 + $0x120] sm:$0xf] }
  0x8d   : > { %v2614_v60 = vor.u32 %v2778_v58, %v2613_v56 }
  0x90   : > { %1385 = vmatpush.bf16.msra.mxu2 %v2610_v61  ;;  %v2750_v61 = vld [vmem:[#allocation5 + $0x84] sm:$0xf0] }
  0x91   : > { %v2486_v2 = vor.u32 %v2750_v61, %v2485_v59 }
  0x97   : > { %707 = vmatmul.bf16.vlgmr.msrb.gmra.mxu2 %v2717_v15  ;;  %v2646_v15 = vor.u32 %v2786_v14, %v2645_v12 }
  0x98   : > { %1047 = vmatmul.bf16.vlgmr.msrb.gmra.mxu0 %v3369_v38 }
  0x99   : > { %1331 = vmatpush.bf16.msrb.mxu1 %v2646_v15  ;;  %v2716_v15 = vld [vmem:[%s4075_s4 + $0x38] sm:$0xff] }
  0x9a   : > { %1909 = vmatpush.bf16.msra.mxu0 %v2716_v15 }
  0x9d   : > { %1332 = vmatpush.bf16.msrb.mxu1 %v2638_v25 }
  0x9e   : > { %1910 = vmatpush.bf16.msra.mxu0 %v2715_v23 }
  0xa1   : > { %1333 = vmatpush.bf16.msrb.mxu1 %v2630_v36 }
  0xa5   : > { %1334 = vmatpush.bf16.msrb.mxu1 %v2622_v49 }
  0xa7   : > { %712 = vmatmul.bf16.gmra.mxu2 %v2718_v31  ;;  %v2518_v31 = vor.u32 %v2758_v30, %v2517_v29 }
  0xa8   : > { %1052 = vmatmul.bf16.gmra.mxu0 %v3374_v44 }
  0xa9   : > { %1335 = vmatpush.bf16.msrb.mxu1 %v2614_v60  ;;  %v2772_v60 = vld [vmem:[%s3293_s23 + $0xb8] sm:$0xff] }
  0xb7   : > { %717 = vmatmul.bf16.gmra.mxu2 %v2719_v37 }
  0xb8   : > { %1057 = vmatmul.bf16.gmra.mxu0 %v3378_v48 }
  0xc5   : > { %v3416_v17 = vpop.f32.mrf.mxu0 }
  0xc7   : > { %722 = vmatmul.bf16.gmra.mxu2 %v2720_v43  ;;  %v2501_v43 = vld [vmem:[#allocation5 + $0xa0] sm:$0xf] }
  0xc8   : > { %1062 = vmatmul.bf16.gmra.mxu0 %v3382_v52 }
  0xcd   : > { %v3424_v33 = vpop.f32.mrf.mxu0 }
  0xd7   : > { %727 = vmatmul.bf16.gmra.mxu2 %v3342_v42  ;;  %v2773_v42 = vld [vmem:[#allocation5 + $0x104] sm:$0xf] }
  0xd8   : > { %1067 = vmatmul.bf16.gmra.mxu0 %v3388_v57  ;;  %v2602_v4 = vor.u32 %v2773_v42, %v2599_v3  ;;  %v3432_v42 = vpop.f32.mrf.mxu0 }
  0xda   : > { %v3394_v62 = vpop.f32.mrf.mxu2  ;;  %1386 = vmatpush.bf16.msra.mxu2 %v2602_v4  ;;  %v2605_v4 = vld [vmem:[#allocation5 + $0x110] sm:$0xf] }
  0xdb   : > { %4083 = vst [vmem:[#allocation14_spill] sm:$0xff] %v3394_v62  ;;  %v2606_v7 = vor.u32 %v2776_v6, %v2605_v4 }
  0xdd   : > { %1336 = vmatpush.bf16.msrb.mxu1 %v2606_v7 }
  0xe0   : > { %v3440_v14 = vpop.f32.mrf.mxu0 }
  0xe2   : > { %v3396_v63 = vpop.f32.mrf.mxu2 }
  0xe3   : > { %4084 = vst [vmem:[#allocation15_spill] sm:$0xff] %v3396_v63 }
  0xe7   : > { %732 = vmatmul.bf16.gmra.mxu2 %v3348_v1  ;;  %v2764_v1 = vld [vmem:[#allocation5 + $0xf4] sm:$0xf0] }
  0xe8   : > { %1072 = vmatmul.bf16.gmra.mxu0 %v3399_v0  ;;  %v2542_v13 = vor.u32 %v2764_v1, %v2541_v11  ;;  %v2774_v11 = vld [vmem:[#allocation5 + $0x104] sm:$0xf0] }
  0xe9   : > { %v2598_v1 = vor.u32 %v2774_v11, %v2597_v8 }
  0xea   : > { %v3405_v5 = vpop.f32.mrf.mxu2  ;;  %990 = vmatpush.bf16.msrb.mxu3 %v2542_v13  ;;  %v2766_v13 = vld [vmem:[%s3293_s23 + $0x88] sm:$0xff] }
  0xeb   : > { %4085 = vst [vmem:[#allocation16_spill] sm:$0xff] %v3405_v5  ;;  %1337 = vmatpush.bf16.msrb.mxu1 %v2598_v1 }
  0xee   : > { %991 = vmatpush.bf16.msrb.mxu3 %v2534_v20  ;;  %1338 = vmatmul.bf16.vlgmr.msrb.gmra.mxu1 %v2765_v54  ;;  %v2767_v20 = vld [vmem:[%s3293_s23 + $0x90] sm:$0xff] }
  0xef   : > { %2030 = vmatpush.bf16.msra.mxu1 %v2716_v15 }
  0xf2   : > { %v3407_v9 = vpop.f32.mrf.mxu2  ;;  %992 = vmatpush.bf16.msrb.mxu3 %v2526_v27  ;;  %v2714_v27 = vld [vmem:[%s4075_s4 + $0x28] sm:$0xff] }
  0xf3   : > { %4086 = vst [vmem:[#allocation17_spill] sm:$0xff] %v3407_v9  ;;  %2031 = vmatpush.bf16.msra.mxu1 %v2715_v23  ;;  %1911 = vmatpush.bf16.msra.mxu0 %v2714_v27 }
  0xf6   : > { %993 = vmatpush.bf16.msrb.mxu3 %v2518_v31  ;;  %v2769_v31 = vld [vmem:[%s3293_s23 + $0xa0] sm:$0xff] }
  0xf7   : > { %737 = vmatmul.bf16.gmra.mxu2 %v3355_v22  ;;  %2032 = vmatpush.bf16.msra.mxu1 %v2714_v27 }
  0xf8   : > { %1077 = vmatmul.bf16.gmra.mxu0 %v3410_v10 }
  0xf9   : > { %1912 = vmatpush.bf16.msra.mxu0 %v2713_v35 }
  0xfa   : > { %v3414_v16 = vpop.f32.mrf.mxu2  ;;  %994 = vmatpush.bf16.msrb.mxu3 %v2510_v41  ;;  %v2770_v41 = vld [vmem:[%s3293_s23 + $0xa8] sm:$0xff] }
  0xfb   : > { %4087 = vst [vmem:[#allocation18_spill] sm:$0xff] %v3414_v16  ;;  %2033 = vmatpush.bf16.msra.mxu1 %v2713_v35 }
  0xfe   : > { %1343 = vmatmul.bf16.gmra.mxu1 %v2766_v13 }
 0x102   : > { %v3418_v22 = vpop.f32.mrf.mxu2 }
 0x103   : > { %4088 = vst [vmem:[#allocation19_spill] sm:$0xff] %v3418_v22 }
 0x107   : > { %742 = vmatmul.bf16.gmra.mxu2 %v3362_v32  ;;  %v2502_v32 = vor.u32 %v2754_v45, %v2501_v43  ;;  %v2712_v43 = vld [vmem:[%s4075_s4 + $0x18] sm:$0xff] }
 0x108   : > { %1082 = vmatmul.bf16.gmra.mxu0 %v3421_v28  ;;  %2034 = vmatpush.bf16.msra.mxu1 %v2712_v43 }
 0x109   : > { %995 = vmatpush.bf16.msrb.mxu3 %v2502_v32  ;;  %1913 = vmatpush.bf16.msra.mxu0 %v2712_v43 }
 0x10a   : > { %v3427_v37 = vpop.f32.mrf.mxu2 }
 0x10b   : > { %4089 = vst [vmem:[#allocation20_spill] sm:$0xff] %v3427_v37 }
 0x10d   : > { %996 = vmatpush.bf16.msrb.mxu3 %v2494_v55 }
 0x10e   : > { %1348 = vmatmul.bf16.gmra.mxu1 %v2767_v20 }
 0x111   : > { %997 = vmatpush.bf16.msrb.mxu3 %v2486_v2 }
 0x112   : > { %v3429_v50 = vpop.f32.mrf.mxu2 }
 0x113   : > { %4090 = vst [vmem:[#allocation21_spill] sm:$0xff] %v3429_v50 }
 0x114   : > { %998 = vmatmul.bf16.vlgmr.msrb.gmra.mxu3 %v3369_v38  ;;  %v3448_v38 = vpop.f32.mrf.mxu0 }
 0x115   : > { %1804 = vmatpush.bf16.msra.mxu3 %v2716_v15 }
 0x117   : > { %1387 = vmatmul.bf16.vlgmr.msra.gmra.mxu2 %v2765_v54  ;;  %v2711_v54 = vld [vmem:[%s4075_s4 + $0x10] sm:$0xff] }
 0x118   : > { %1914 = vmatpush.bf16.msra.mxu0 %v2711_v54  ;;  %2035 = vmatpush.bf16.msra.mxu1 %v2711_v54 }
 0x119   : > { %1805 = vmatpush.bf16.msra.mxu3 %v2715_v23 }
 0x11a   : > { %v3434_v3 = vpop.f32.mrf.mxu2 }
 0x11b   : > { %v748_v1 = vadd.f32 %v3434_v3, %v3416_v17  ;;  %v2710_v3 = vld [vmem:[%s4075_s4 + $0x8] sm:$0xff] }
 0x11c   : > { %v3453_v21 = vpop.f32.mrf.mxu0  ;;  %1915 = vmatpush.bf16.msra.mxu0 %v2710_v3  ;;  %2036 = vmatpush.bf16.msra.mxu1 %v2710_v3 }
 0x11d   : > { %1806 = vmatpush.bf16.msra.mxu3 %v2714_v27  ;;  %vm764_vm1 = vcmp.gt.f32.partialorder %v748_v1, 0.0 }
 0x11e   : > { %1353 = vmatmul.bf16.gmra.mxu1 %v2768_v26 }
 0x121   : > { %1807 = vmatpush.bf16.msra.mxu3 %v2713_v35 }
 0x122   : > { %v3437_v12 = vpop.f32.mrf.mxu2 }
 0x123   : > { %v749_v27 = vadd.f32 %v3437_v12, %v3424_v33 }
 0x124   : > { %1003 = vmatmul.bf16.gmra.mxu3 %v3374_v44  ;;  %v3461_v44 = vpop.f32.mrf.mxu0 }
 0x125   : > { %1808 = vmatpush.bf16.msra.mxu3 %v2712_v43  ;;  %vm765_vm5 = vcmp.gt.f32.partialorder %v749_v27, 0.0 }
 0x127   : > { %1392 = vmatmul.bf16.gmra.mxu2 %v2766_v13 }
 0x129   : > { %1809 = vmatpush.bf16.msra.mxu3 %v2711_v54 }
 0x12a   : > { %v3445_v18 = vpop.f32.mrf.mxu2 }
 0x12c   : > { %v3471_v30 = vpop.f32.mrf.mxu0 }
 0x12d   : > { %1810 = vmatpush.bf16.msra.mxu3 %v2710_v3 }
 0x12e   : > { %1358 = vmatmul.bf16.gmra.mxu1 %v2769_v31 }
 0x132   : > { %v3450_v19 = vpop.f32.mrf.mxu2 }
 0x134   : > { %1008 = vmatmul.bf16.gmra.mxu3 %v3378_v48  ;;  %v3477_v34 = vpop.f32.mrf.mxu0 }
 0x137   : > { %1397 = vmatmul.bf16.gmra.mxu2 %v2767_v20  ;;  %v780_v20 = vmul.f32 0.2, %v748_v1 }
 0x139   : > { %v796_v35 = vsel %vm764_vm1, %v748_v1, %v780_v20 }
 0x13a   : > { %v3458_v24 = vpop.f32.mrf.mxu2 }
 0x13c   : > { %v3485_v39 = vpop.f32.mrf.mxu0 }
 0x13e   : > { %1363 = vmatmul.bf16.gmra.mxu1 %v2770_v41 }
 0x142   : > { %v3463_v25 = vpop.f32.mrf.mxu2 }
 0x144   : > { %1013 = vmatmul.bf16.gmra.mxu3 %v3382_v52  ;;  %v3487_v52 = vpop.f32.mrf.mxu1  ;;  %v1048_v32 = vpop.f32.mrf.mxu0 }
 0x145   : > { %v1088_v13 = vadd.f32 %v1048_v32, %v3416_v17 }
 0x147   : > { %1402 = vmatmul.bf16.gmra.mxu2 %v2768_v26  ;;  %v1120_v23 = vmul.f32 0.2, %v1088_v13  ;;  %vm1104_vm2 = vcmp.gt.f32.partialorder %v1088_v13, 0.0 }
 0x14a   : > { %v3469_v29 = vpop.f32.mrf.mxu2 }
 0x14c   : > { %v3495_v45 = vpop.f32.mrf.mxu1  ;;  %v1050_v53 = vpop.f32.mrf.mxu0 }
 0x14e   : > { %1368 = vmatmul.bf16.gmra.mxu1 %v2771_v51 }
 0x152   : > { %v3474_v48 = vpop.f32.mrf.mxu2 }
 0x154   : > { %1018 = vmatmul.bf16.gmra.mxu3 %v3388_v57  ;;  %v3500_v57 = vpop.f32.mrf.mxu3  ;;  %v3502_v47 = vpop.f32.mrf.mxu1 }
 0x155   : > { %4091 = vst [vmem:[#allocation22_spill] sm:$0xff] %v3502_v47  ;;  %v1053_v58 = vpop.f32.mrf.mxu0 }
 0x156   : > { %v1090_v1 = vadd.f32 %v1053_v58, %v3432_v42 }
 0x157   : > { %1407 = vmatmul.bf16.gmra.mxu2 %v2769_v31 }
 0x158   : > { %vm1106_vm8 = vcmp.gt.f32.partialorder %v1090_v1, 0.0 }
 0x15a   : > { %v3482_v36 = vpop.f32.mrf.mxu2 }
 0x15c   : > { %v3510_v55 = vpop.f32.mrf.mxu1  ;;  %v3512_v56 = vpop.f32.mrf.mxu3 }
 0x15d   : > { %4092 = vst [vmem:[#allocation23_spill] sm:$0xff] %v3510_v55  ;;  %v3524_v4 = vpop.f32.mrf.mxu0 }
 0x15e   : > { %1373 = vmatmul.bf16.gmra.mxu1 %v2772_v60 }
 0x162   : > { %v3489_v40 = vpop.f32.mrf.mxu2 }
 0x164   : > { %1023 = vmatmul.bf16.gmra.mxu3 %v3399_v0  ;;  %v3520_v61 = vpop.f32.mrf.mxu1  ;;  %v3522_v2 = vpop.f32.mrf.mxu3 }
 0x165   : > { %4093 = vst [vmem:[#allocation24_spill] sm:$0xff] %v3520_v61 }
 0x167   : > { %1412 = vmatmul.bf16.gmra.mxu2 %v2770_v41  ;;  %v1136_v41 = vsel %vm1104_vm2, %v1088_v13, %v1120_v23  ;;  %v2709_v23 = vld [vmem:[%s4075_s4] sm:$0xff] }
 0x168   : > { %v1508_v12 = vmax.f32 %v796_v35, %v1136_v41  ;;  %1811 = vmatpush.bf16.msra.mxu3 %v2709_v23  ;;  %1916 = vmatpush.bf16.msra.mxu0 %v2709_v23 }
 0x169   : > { %2037 = vmatpush.bf16.msra.mxu1 %v2709_v23 }
 0x16a   : > { %v3497_v46 = vpop.f32.mrf.mxu2 }
 0x16c   : > { %v3528_v7 = vpop.f32.mrf.mxu1  ;;  %v3531_v8 = vpop.f32.mrf.mxu3 }
 0x16d   : > { %4094 = vst [vmem:[#allocation25_spill] sm:$0xff] %v3528_v7 }
 0x172   : > { %v3504_v49 = vpop.f32.mrf.mxu2 }
 0x174   : > { %1028 = vmatmul.bf16.gmra.mxu3 %v3410_v10  ;;  %v3533_v10 = vpop.f32.mrf.mxu0  ;;  %v3540_v15 = vpop.f32.mrf.mxu1 }
 0x175   : > { %4095 = vst [vmem:[#allocation26_spill] sm:$0xff] %v3540_v15  ;;  %v3542_v26 = vpop.f32.mrf.mxu3 }
 0x177   : > { %1417 = vmatmul.bf16.gmra.mxu2 %v2771_v51 }
 0x17a   : > { %v3514_v0 = vpop.f32.mrf.mxu2 }
 0x17c   : > { %v3551_v32 = vpop.f32.mrf.mxu1  ;;  %v3553_v51 = vpop.f32.mrf.mxu0 }
 0x17d   : > { %4096 = vst [vmem:[#allocation27_spill] sm:$0xff] %v3551_v32  ;;  %v3561_v37 = vpop.f32.mrf.mxu3 }
 0x182   : > { %v3517_v59 = vpop.f32.mrf.mxu2 }
 0x184   : > { %1033 = vmatmul.bf16.gmra.mxu3 %v3421_v28  ;;  %v1089_v28 = vadd.f32 %v1050_v53, %v3424_v33  ;;  %v3564_v58 = vpop.f32.mrf.mxu1 }
 0x186   : > { %v1121_v54 = vmul.f32 0.2, %v1089_v28  ;;  %vm1105_vm4 = vcmp.gt.f32.partialorder %v1089_v28, 0.0 }
 0x187   : > { %1422 = vmatmul.bf16.gmra.mxu2 %v2772_v60  ;;  %v781_v60 = vmul.f32 0.2, %v749_v27 }
 0x188   : > { %v1137_v20 = vsel %vm1105_vm4, %v1089_v28, %v1121_v54  ;;  %v1122_v28 = vmul.f32 0.2, %v1090_v1 }
 0x18a   : > { %v3526_v6 = vpop.f32.mrf.mxu2 }
 0x192   : > { %v3535_v11 = vpop.f32.mrf.mxu2 }
 0x197   : > { %v3572_v62 = vpop.f32.mrf.mxu3 }
 0x19a   : > { %v1388_v31 = vpop.f32.mrf.mxu2 }
 0x19b   : > { %v1428_v43 = vadd.f32 %v1388_v31, %v3416_v17  ;;  %v750_v17 = vadd.f32 %v3445_v18, %v3432_v42  ;;  %v797_v31 = vsel %vm765_vm5, %v749_v27, %v781_v60 }
 0x19d   : > { %vm1444_vm3 = vcmp.gt.f32.partialorder %v1428_v43, 0.0  ;;  %v1460_v53 = vmul.f32 0.2, %v1428_v43  ;;  %vm766_vm7 = vcmp.gt.f32.partialorder %v750_v17, 0.0 }
 0x19f   : > { %v1476_v50 = vsel %vm1444_vm3, %v1428_v43, %v1460_v53  ;;  %v1509_v53 = vmax.f32 %v797_v31, %v1137_v20 }
 0x1a0   : > { %v1524_v13 = vmax.f32 %v1508_v12, %v1476_v50  ;;  %v782_v12 = vmul.f32 0.2, %v750_v17 }
 0x1a2   : > { %v1540_v3 = vsub.f32 %v796_v35, %v1524_v13  ;;  %v1588_v22 = vsub.f32 %v1136_v41, %v1524_v13  ;;  %v1636_v16 = vsub.f32 %v1476_v50, %v1524_v13  ;;  %v1390_v9 = vpop.f32.mrf.mxu2  ;;  %v3566_v35 = vpop.f32.mrf.mxu0  ;;  %v751_v41 = vadd.f32 %v3450_v19, %v3440_v14 }
 0x1a3   : > { %v1429_v43 = vadd.f32 %v1390_v9, %v3424_v33  ;;  %v1091_v9 = vadd.f32 %v3524_v4, %v3440_v14  ;;  %v798_v60 = vsel %vm766_vm7, %v750_v17, %v782_v12  ;;  %v1138_v13 = vsel %vm1106_vm8, %v1090_v1, %v1122_v28 }
 0x1a4   : > { %v1556_v54 = vmul.f32 1.442695, %v1540_v3  ;;  %v1604_v18 = vmul.f32 1.442695, %v1588_v22  ;;  %v1652_v50 = vmul.f32 1.442695, %v1636_v16  ;;  %v1510_v4 = vmax.f32 %v798_v60, %v1138_v13 }
 0x1a5   : > { %vm1445_vm6 = vcmp.gt.f32.partialorder %v1429_v43, 0.0  ;;  %v1461_v27 = vmul.f32 0.2, %v1429_v43  ;;  %vm1107_vm9 = vcmp.gt.f32.partialorder %v1091_v9, 0.0  ;;  %vm767_vm11 = vcmp.gt.f32.partialorder %v751_v41, 0.0 }
 0x1a6   : > { %2920 = vpow2.f32 %v1556_v54  ;;  %v1123_v54 = vmul.f32 0.2, %v1091_v9 }
 0x1a7   : > { %2922 = vpow2.f32 %v1604_v18  ;;  %v1477_v33 = vsel %vm1445_vm6, %v1429_v43, %v1461_v27  ;;  %v783_v43 = vmul.f32 0.2, %v751_v41 }
 0x1a8   : > { %v1525_v22 = vmax.f32 %v1509_v53, %v1477_v33  ;;  %2924 = vpow2.f32 %v1652_v50 }
 0x1a9   : > { %v799_v50 = vsel %vm767_vm11, %v751_v41, %v783_v43  ;;  %v753_v41 = vadd.f32 %v3463_v25, %v3453_v21  ;;  %v3600_v43 = vpop.f32.mrf.mxu3 }
 0x1aa   : > { %v1541_v23 = vsub.f32 %v797_v31, %v1525_v22  ;;  %v1589_v3 = vsub.f32 %v1137_v20, %v1525_v22  ;;  %v1637_v5 = vsub.f32 %v1477_v33, %v1525_v22  ;;  %v1393_v63 = vpop.f32.mrf.mxu2  ;;  %v3579_v20 = vpop.f32.mrf.mxu1  ;;  %v1092_v31 = vadd.f32 %v3533_v10, %v3448_v38 }
 0x1ab   : > { %v1430_v16 = vadd.f32 %v1393_v63, %v3432_v42  ;;  %v752_v42 = vadd.f32 %v3458_v24, %v3448_v38  ;;  %v1139_v33 = vsel %vm1107_vm9, %v1091_v9, %v1123_v54  ;;  %v1093_v9 = vadd.f32 %v3553_v51, %v3453_v21 }
 0x1ac   : > { %v3575_v32 = vpop.eup %2920  ;;  %v1558_v18 = vmul.f32 1.442695, %v1541_v23  ;;  %v1606_v27 = vmul.f32 1.442695, %v1589_v3  ;;  %v1654_v1 = vmul.f32 1.442695, %v1637_v5  ;;  %v3589_v5 = vpop.f32.mrf.mxu0 }
 0x1ad   : > { %v3577_v19 = vpop.eup %2922  ;;  %vm1446_vm10 = vcmp.gt.f32.partialorder %v1430_v16, 0.0  ;;  %v1462_v17 = vmul.f32 0.2, %v1430_v16  ;;  %vm1108_vm12 = vcmp.gt.f32.partialorder %v1092_v31, 0.0  ;;  %vm768_vm13 = vcmp.gt.f32.partialorder %v752_v42, 0.0 }
 0x1ae   : > { %v1684_v63 = vadd.f32 %v3577_v19, %v3575_v32  ;;  %2926 = vpow2.f32 %v1558_v18  ;;  %v3587_v53 = vpop.eup %2924  ;;  %v784_v24 = vmul.f32 0.2, %v752_v42  ;;  %vm1109_vm15 = vcmp.gt.f32.partialorder %v1093_v9, 0.0 }
 0x1af   : > { %2928 = vpow2.f32 %v1606_v27  ;;  %v1478_v28 = vsel %vm1446_vm10, %v1430_v16, %v1462_v17  ;;  %v1124_v27 = vmul.f32 0.2, %v1092_v31  ;;  %vm769_vm0 = vcmp.gt.f32.partialorder %v753_v41, 0.0 }
 0x1b0   : > { %v1526_v12 = vmax.f32 %v1510_v4, %v1478_v28  ;;  %v1700_v22 = vadd.f32 %v3587_v53, %v1684_v63  ;;  %2930 = vpow2.f32 %v1654_v1  ;;  %v1511_v63 = vmax.f32 %v799_v50, %v1139_v33 }
 0x1b1   : > { %v3607_v25 = vsel %vm1108_vm12, %v1092_v31, %v1124_v27 }
 0x1b2   : > { %v1542_v10 = vsub.f32 %v798_v60, %v1526_v12  ;;  %v1590_v23 = vsub.f32 %v1138_v13, %v1526_v12  ;;  %v1638_v3 = vsub.f32 %v1478_v28, %v1526_v12  ;;  %v1395_v18 = vpop.f32.mrf.mxu2  ;;  %2932 = vrcp.f32 %v1700_v22 }
 0x1b3   : > { %v1431_v16 = vadd.f32 %v1395_v18, %v3440_v14  ;;  %v3604_v12 = vsel %vm768_vm13, %v752_v42, %v784_v24  ;;  %v1125_v22 = vmul.f32 0.2, %v1093_v9  ;;  %v785_v18 = vmul.f32 0.2, %v753_v41 }
 0x1b4   : > { %v3594_v17 = vpop.eup %2926  ;;  %v1560_v54 = vmul.f32 1.442695, %v1542_v10  ;;  %v1608_v4 = vmul.f32 1.442695, %v1590_v23  ;;  %v1656_v13 = vmul.f32 1.442695, %v1638_v3  ;;  %v3609_v10 = vpop.f32.mrf.mxu1 }
 0x1b5   : > { %v2929_v60 = vpop.eup %2928  ;;  %vm1447_vm14 = vcmp.gt.f32.partialorder %v1431_v16, 0.0  ;;  %v1463_v1 = vmul.f32 0.2, %v1431_v16  ;;  %4097 = vst [vmem:[#allocation28_spill] sm:$0xff] %v3609_v10  ;;  %v3615_v42 = vpop.f32.mrf.mxu0 }
 0x1b6   : > { %v1685_v14 = vadd.f32 %v2929_v60, %v3594_v17  ;;  %2934 = vpow2.f32 %v1560_v54  ;;  %v2931_v28 = vpop.eup %2930  ;;  %v3613_v54 = vadd.f32 %v3566_v35, %v3461_v44  ;;  %v1512_v35 = vmax.f32 %v3604_v12, %v3607_v25 }
 0x1b7   : > { %2936 = vpow2.f32 %v1608_v4  ;;  %v1479_v51 = vsel %vm1447_vm14, %v1431_v16, %v1463_v1  ;;  %v754_v1 = vadd.f32 %v3469_v29, %v3461_v44 }
 0x1b8   : > { %v1701_v23 = vadd.f32 %v2931_v28, %v1685_v14  ;;  %v1527_v3 = vmax.f32 %v1511_v63, %v1479_v51  ;;  %2938 = vpow2.f32 %v1656_v13  ;;  %v2933_v4 = vpop.eup %2932  ;;  %v3625_v13 = vsel %vm1109_vm15, %v1093_v9, %v1125_v22  ;;  %v3636_v9 = vpop.f32.mrf.mxu3 }
 0x1b9   : > { %vm1110_vm2 = vcmp.gt.f32.partialorder %v3613_v54, 0.0  ;;  %4098 = vst [vmem:[#allocation29_spill] sm:$0xff] %v3636_v9  ;;  %vm770_vm3 = vcmp.gt.f32.partialorder %v754_v1, 0.0  ;;  %v2006_v7 = vmul.f32 %v2933_v4, %v3587_v53  ;;  %v786_v9 = vmul.f32 0.2, %v754_v1 }
 0x1ba   : > { %2940 = vrcp.f32 %v1701_v23  ;;  %v1543_v31 = vsub.f32 %v799_v50, %v1527_v3  ;;  %v1591_v24 = vsub.f32 %v1139_v33, %v1527_v3  ;;  %v1639_v27 = vsub.f32 %v1479_v51, %v1527_v3  ;;  %v1398_v16 = vpop.f32.mrf.mxu2 }
 0x1bb   : > { %v1432_v63 = vadd.f32 %v1398_v16, %v3448_v38  ;;  %v3630_v33 = vsel %vm769_vm0, %v753_v41, %v785_v18  ;;  %v1126_v38 = vmul.f32 0.2, %v3613_v54  ;;  %v1732_v41 = vmul.f32 %v2933_v4, %v3575_v32 }
 0x1bc   : > { %v3620_v14 = vpop.eup %2934  ;;  %v1562_v15 = vmul.f32 1.442695, %v1543_v31  ;;  %v1610_v23 = vmul.f32 1.442695, %v1591_v24  ;;  %v1658_v51 = vmul.f32 1.442695, %v1639_v27  ;;  %v1885_v16 = vmul.f32 %v2933_v4, %v3577_v19  ;;  %v3645_v10 = vpop.f32.mrf.mxu1 }
 0x1bd   : > { %v3627_v50 = vpop.eup %2936  ;;  %vm1448_vm1 = vcmp.gt.f32.partialorder %v1432_v63, 0.0  ;;  %v1464_v29 = vmul.f32 0.2, %v1432_v63 }
 0x1be   : > { %v1686_v3 = vadd.f32 %v3627_v50, %v3620_v14  ;;  %2942 = vpow2.f32 %v1562_v15  ;;  %v3638_v22 = vpop.eup %2938 }
 0x1bf   : > { %2944 = vpow2.f32 %v1610_v23  ;;  %v1480_v31 = vsel %vm1448_vm1, %v1432_v63, %v1464_v29 }
 0x1c0   : > { %v2941_v18 = vpop.eup %2940  ;;  %v1702_v24 = vadd.f32 %v3638_v22, %v1686_v3  ;;  %v1528_v27 = vmax.f32 %v1512_v35, %v1480_v31  ;;  %2946 = vpow2.f32 %v1658_v51 }
 0x1c1   : > { %v1733_v15 = vmul.f32 %v2941_v18, %v3594_v17  ;;  %v1886_v61 = vmul.f32 %v2941_v18, %v2929_v60  ;;  %v2007_v55 = vmul.f32 %v2941_v18, %v2931_v28  ;;  %v755_v17 = vadd.f32 %v3474_v48, %v3471_v30  ;;  %v3656_v28 = vpop.f32.mrf.mxu0 }
 0x1c2   : > { %v1544_v63 = vsub.f32 %v3604_v12, %v1528_v27  ;;  %v1592_v32 = vsub.f32 %v3607_v25, %v1528_v27  ;;  %v1640_v23 = vsub.f32 %v1480_v31, %v1528_v27  ;;  %v1400_v29 = vpop.f32.mrf.mxu2  ;;  %v1095_v60 = vadd.f32 %v3589_v5, %v3471_v30  ;;  %v3669_v27 = vpop.f32.mrf.mxu3 }
 0x1c3   : > { %v1433_v35 = vadd.f32 %v1400_v29, %v3453_v21  ;;  %v1748_v3 = vpack.c.bf16 %v1733_v15, %v1732_v41  ;;  %v1901_v19 = vpack.c.bf16 %v1886_v61, %v1885_v16  ;;  %v2022_v47 = vpack.c.bf16 %v2007_v55, %v2006_v7 }
 0x1c4   : > { %v3650_v53 = vpop.eup %2942  ;;  %v1564_v12 = vmul.f32 1.442695, %v1544_v63  ;;  %v1612_v4 = vmul.f32 1.442695, %v1592_v32  ;;  %2948 = vrcp.f32 %v1702_v24  ;;  %v1660_v51 = vmul.f32 1.442695, %v1640_v23  ;;  %v3680_v23 = vpop.f32.mrf.mxu1 }
 0x1c5   : > { %v2945_v25 = vpop.eup %2944  ;;  %vm1449_vm4 = vcmp.gt.f32.partialorder %v1433_v35, 0.0  ;;  %v1465_v21 = vmul.f32 0.2, %v1433_v35  ;;  %1812 = vmatmul.bf16.vlgmr.msra.gmra.mxu3 %v1748_v3  ;;  %1917 = vmatmul.bf16.vlgmr.msra.gmra.mxu0 %v1901_v19  ;;  %v1513_v55 = vmax.f32 %v3630_v33, %v3625_v13  ;;  %v3662_v7 = vsel %vm770_vm3, %v754_v1, %v786_v9 }
 0x1c6   : > { %v1687_v61 = vadd.f32 %v2945_v25, %v3650_v53  ;;  %2950 = vpow2.f32 %v1564_v12  ;;  %2038 = vmatmul.bf16.vlgmr.msra.gmra.mxu1 %v2022_v47  ;;  %v2947_v48 = vpop.eup %2946  ;;  %v3667_v5 = vsel %vm1110_vm2, %v3613_v54, %v1126_v38  ;;  %vm1111_vm5 = vcmp.gt.f32.partialorder %v1095_v60, 0.0 }
 0x1c7   : > { %2952 = vpow2.f32 %v1612_v4  ;;  %v1481_v31 = vsel %vm1449_vm4, %v1433_v35, %v1465_v21  ;;  %v1127_v41 = vmul.f32 0.2, %v1095_v60  ;;  %vm771_vm6 = vcmp.gt.f32.partialorder %v755_v17, 0.0 }
 0x1c8   : > { %v1703_v18 = vadd.f32 %v2947_v48, %v1687_v61  ;;  %v1529_v24 = vmax.f32 %v1513_v55, %v1481_v31  ;;  %v787_v16 = vmul.f32 0.2, %v755_v17  ;;  %v3673_v47 = vadd.f32 %v3615_v42, %v3477_v34 }
 0x1c9   : > { %2954 = vpow2.f32 %v1660_v51  ;;  %v756_v63 = vadd.f32 %v3482_v36, %v3477_v34  ;;  %v1514_v42 = vmax.f32 %v3662_v7, %v3667_v5  ;;  %v3687_v35 = vsel %vm1111_vm5, %v1095_v60, %v1127_v41  ;;  %v1073_v4 = vpop.f32.mrf.mxu0 }
 0x1ca   : > { %2956 = vrcp.f32 %v1703_v18  ;;  %v1545_v1 = vsub.f32 %v3630_v33, %v1529_v24  ;;  %v1593_v54 = vsub.f32 %v3625_v13, %v1529_v24  ;;  %v1641_v38 = vsub.f32 %v1481_v31, %v1529_v24  ;;  %v1403_v9 = vpop.f32.mrf.mxu2  ;;  %v2949_v15 = vpop.eup %2948 }
 0x1cb   : > { %v1434_v32 = vadd.f32 %v1403_v9, %v3461_v44  ;;  %v3692_v19 = vsel %vm771_vm6, %v755_v17, %v787_v16  ;;  %vm1112_vm8 = vcmp.gt.f32.partialorder %v3673_v47, 0.0  ;;  %v1128_v12 = vmul.f32 0.2, %v3673_v47 }
 0x1cc   : > { %v3682_v29 = vpop.eup %2950  ;;  %v1566_v33 = vmul.f32 1.442695, %v1545_v1  ;;  %v1614_v13 = vmul.f32 1.442695, %v1593_v54  ;;  %v1662_v36 = vmul.f32 1.442695, %v1641_v38  ;;  %v1734_v17 = vmul.f32 %v2949_v15, %v3620_v14 }
 0x1cd   : > { %v3689_v3 = vpop.eup %2952  ;;  %vm1450_vm7 = vcmp.gt.f32.partialorder %v1434_v32, 0.0  ;;  %v1466_v44 = vmul.f32 0.2, %v1434_v32  ;;  %vm772_vm9 = vcmp.gt.f32.partialorder %v756_v63, 0.0  ;;  %v1887_v41 = vmul.f32 %v2949_v15, %v3627_v50 }
 0x1ce   : > { %v1688_v51 = vadd.f32 %v3689_v3, %v3682_v29  ;;  %2958 = vpow2.f32 %v1566_v33  ;;  %v2008_v18 = vmul.f32 %v2949_v15, %v3638_v22  ;;  %v788_v54 = vmul.f32 0.2, %v756_v63  ;;  %v3707_v33 = vpop.f32.mrf.mxu3 }
 0x1cf   : > { %v3698_v60 = vpop.eup %2954  ;;  %2960 = vpow2.f32 %v1614_v13  ;;  %v1482_v21 = vsel %vm1450_vm7, %v1434_v32, %v1466_v44 }
 0x1d0   : > { %v2957_v55 = vpop.eup %2956  ;;  %v1704_v61 = vadd.f32 %v3698_v60, %v1688_v51  ;;  %v1530_v31 = vmax.f32 %v1514_v42, %v1482_v21  ;;  %2962 = vpow2.f32 %v1662_v36  ;;  %v1515_v51 = vmax.f32 %v3692_v19, %v3687_v35 }
 0x1d1   : > { %v1735_v24 = vmul.f32 %v2957_v55, %v3650_v53  ;;  %v1888_v16 = vmul.f32 %v2957_v55, %v2945_v25  ;;  %v2009_v1 = vmul.f32 %v2957_v55, %v2947_v48  ;;  %v757_v53 = vadd.f32 %v3489_v40, %v3485_v39 }
 0x1d2   : > { %v1546_v38 = vsub.f32 %v3662_v7, %v1530_v31  ;;  %v1594_v9 = vsub.f32 %v3667_v5, %v1530_v31  ;;  %v1642_v32 = vsub.f32 %v1482_v21, %v1530_v31  ;;  %v1405_v14 = vpop.f32.mrf.mxu2  ;;  %v1097_v25 = vadd.f32 %v3656_v28, %v3485_v39  ;;  %v1075_v31 = vpop.f32.mrf.mxu0 }
 0x1d3   : > { %v1435_v42 = vadd.f32 %v1405_v14, %v3471_v30  ;;  %v1749_v13 = vpack.c.bf16 %v1735_v24, %v1734_v17  ;;  %v1902_v50 = vpack.c.bf16 %v1888_v16, %v1887_v41  ;;  %v2023_v44 = vpack.c.bf16 %v2009_v1, %v2008_v18  ;;  %v3716_v30 = vpop.f32.mrf.mxu1 }
 0x1d4   : > { %v3710_v22 = vpop.eup %2958  ;;  %v1568_v48 = vmul.f32 1.442695, %v1546_v38  ;;  %v1616_v7 = vmul.f32 1.442695, %v1594_v9  ;;  %2964 = vrcp.f32 %v1704_v61  ;;  %v1664_v15 = vmul.f32 1.442695, %v1642_v32 }
 0x1d5   : > { %v2961_v5 = vpop.eup %2960  ;;  %vm1451_vm10 = vcmp.gt.f32.partialorder %v1435_v42, 0.0  ;;  %v1467_v36 = vmul.f32 0.2, %v1435_v42  ;;  %1817 = vmatmul.bf16.gmra.mxu3 %v1749_v13  ;;  %1922 = vmatmul.bf16.gmra.mxu0 %v1902_v50  ;;  %v3722_v28 = vsel %vm772_vm9, %v756_v63, %v788_v54  ;;  %v3727_v17 = vsel %vm1112_vm8, %v3673_v47, %v1128_v12 }
 0x1d6   : > { %v1689_v21 = vadd.f32 %v2961_v5, %v3710_v22  ;;  %2966 = vpow2.f32 %v1568_v48  ;;  %2043 = vmatmul.bf16.gmra.mxu1 %v2023_v44  ;;  %v2963_v40 = vpop.eup %2962  ;;  %vm1113_vm11 = vcmp.gt.f32.partialorder %v1097_v25, 0.0  ;;  %v1129_v61 = vmul.f32 0.2, %v1097_v25  ;;  %v3744_v13 = vpop.f32.mrf.mxu3 }
 0x1d7   : > { %2968 = vpow2.f32 %v1616_v7  ;;  %v1483_v55 = vsel %vm1451_vm10, %v1435_v42, %v1467_v36  ;;  %vm773_vm12 = vcmp.gt.f32.partialorder %v757_v53, 0.0  ;;  %v789_v24 = vmul.f32 0.2, %v757_v53 }
 0x1d8   : > { %v1705_v41 = vadd.f32 %v2963_v40, %v1689_v21  ;;  %v1531_v18 = vmax.f32 %v1515_v51, %v1483_v55  ;;  %v3730_v16 = vadd.f32 %v1073_v4, %v3500_v57  ;;  %2970 = vpow2.f32 %v1664_v15 }
 0x1d9   : > { %v758_v38 = vadd.f32 %v3497_v46, %v3500_v57  ;;  %v1516_v4 = vmax.f32 %v3722_v28, %v3727_v17  ;;  %v3742_v14 = vsel %vm1113_vm11, %v1097_v25, %v1129_v61  ;;  %v3749_v50 = vsel %vm773_vm12, %v757_v53, %v789_v24 }
 0x1da   : > { %2972 = vrcp.f32 %v1705_v41  ;;  %v1547_v63 = vsub.f32 %v3692_v19, %v1531_v18  ;;  %v1595_v1 = vsub.f32 %v3687_v35, %v1531_v18  ;;  %v1643_v47 = vsub.f32 %v1483_v55, %v1531_v18  ;;  %v1408_v12 = vpop.f32.mrf.mxu2  ;;  %v2965_v54 = vpop.eup %2964 }
 0x1db   : > { %v1436_v9 = vadd.f32 %v1408_v12, %v3477_v34  ;;  %vm1114_vm14 = vcmp.gt.f32.partialorder %v3730_v16, 0.0  ;;  %v1130_v44 = vmul.f32 0.2, %v3730_v16  ;;  %vm774_vm15 = vcmp.gt.f32.partialorder %v758_v38, 0.0  ;;  %v3758_v53 = vpop.f32.mrf.mxu1 }
 0x1dc   : > { %v3737_v32 = vpop.eup %2966  ;;  %v1570_v42 = vmul.f32 1.442695, %v1547_v63  ;;  %v1618_v19 = vmul.f32 1.442695, %v1595_v1  ;;  %v1666_v46 = vmul.f32 1.442695, %v1643_v47  ;;  %v1736_v15 = vmul.f32 %v2965_v54, %v3682_v29  ;;  %v1078_v1 = vpop.f32.mrf.mxu0 }
 0x1dd   : > { %v3746_v35 = vpop.eup %2968  ;;  %vm1452_vm13 = vcmp.gt.f32.partialorder %v1436_v9, 0.0  ;;  %v1468_v34 = vmul.f32 0.2, %v1436_v9  ;;  %v1889_v55 = vmul.f32 %v2965_v54, %v3689_v3  ;;  %v2010_v61 = vmul.f32 %v2965_v54, %v3698_v60 }
 0x1de   : > { %v1690_v25 = vadd.f32 %v3746_v35, %v3737_v32  ;;  %2974 = vpow2.f32 %v1570_v42  ;;  %v3755_v48 = vpop.eup %2970  ;;  %v790_v63 = vmul.f32 0.2, %v758_v38  ;;  %v759_v60 = vadd.f32 %v3504_v49, %v3512_v56 }
 0x1df   : > { %2976 = vpow2.f32 %v1618_v19  ;;  %v1484_v7 = vsel %vm1452_vm13, %v1436_v9, %v1468_v34 }
 0x1e0   : > { %v2973_v36 = vpop.eup %2972  ;;  %v1706_v51 = vadd.f32 %v3755_v48, %v1690_v25  ;;  %v1532_v21 = vmax.f32 %v1516_v4, %v1484_v7  ;;  %2978 = vpow2.f32 %v1666_v46  ;;  %v3775_v25 = vpop.f32.mrf.mxu3  ;;  %vm775_vm2 = vcmp.gt.f32.partialorder %v759_v60, 0.0 }
 0x1e1   : > { %v1737_v41 = vmul.f32 %v2973_v36, %v3710_v22  ;;  %v1890_v18 = vmul.f32 %v2973_v36, %v2961_v5  ;;  %v2011_v24 = vmul.f32 %v2973_v36, %v2963_v40  ;;  %v1099_v22 = vadd.f32 %v1075_v31, %v3512_v56 }
 0x1e2   : > { %v1548_v47 = vsub.f32 %v3722_v28, %v1532_v21  ;;  %v1596_v29 = vsub.f32 %v3727_v17, %v1532_v21  ;;  %v1644_v12 = vsub.f32 %v1484_v7, %v1532_v21  ;;  %v1410_v9 = vpop.f32.mrf.mxu2  ;;  %2980 = vrcp.f32 %v1706_v51 }
 0x1e3   : > { %v1437_v42 = vadd.f32 %v1410_v9, %v3485_v39  ;;  %v1750_v4 = vpack.c.bf16 %v1737_v41, %v1736_v15  ;;  %v1903_v19 = vpack.c.bf16 %v1890_v18, %v1889_v55  ;;  %v2024_v3 = vpack.c.bf16 %v2011_v24, %v2010_v61  ;;  %v3788_v41 = vpop.f32.mrf.mxu1 }
 0x1e4   : > { %v3767_v34 = vpop.eup %2974  ;;  %v1572_v5 = vmul.f32 1.442695, %v1548_v47  ;;  %v1620_v40 = vmul.f32 1.442695, %v1596_v29  ;;  %v1668_v28 = vmul.f32 1.442695, %v1644_v12  ;;  %v1517_v39 = vmax.f32 %v3749_v50, %v3742_v14 }
 0x1e5   : > { %v2977_v54 = vpop.eup %2976  ;;  %vm1453_vm0 = vcmp.gt.f32.partialorder %v1437_v42, 0.0  ;;  %v1469_v17 = vmul.f32 0.2, %v1437_v42  ;;  %1822 = vmatmul.bf16.gmra.mxu3 %v1750_v4  ;;  %1927 = vmatmul.bf16.gmra.mxu0 %v1903_v19  ;;  %v3778_v31 = vsel %vm774_vm15, %v758_v38, %v790_v63  ;;  %v3783_v7 = vsel %vm1114_vm14, %v3730_v16, %v1130_v44 }
 0x1e6   : > { %v1691_v46 = vadd.f32 %v2977_v54, %v3767_v34  ;;  %2982 = vpow2.f32 %v1572_v5  ;;  %2048 = vmatmul.bf16.gmra.mxu1 %v2024_v3  ;;  %v2979_v49 = vpop.eup %2978  ;;  %vm1115_vm1 = vcmp.gt.f32.partialorder %v1099_v22, 0.0  ;;  %v1131_v36 = vmul.f32 0.2, %v1099_v22 }
 0x1e7   : > { %2984 = vpow2.f32 %v1620_v40  ;;  %v1485_v15 = vsel %vm1453_vm0, %v1437_v42, %v1469_v17  ;;  %v791_v55 = vmul.f32 0.2, %v759_v60  ;;  %v3786_v61 = vadd.f32 %v1078_v1, %v3522_v2 }
 0x1e8   : > { %v1707_v51 = vadd.f32 %v2979_v49, %v1691_v46  ;;  %v1533_v21 = vmax.f32 %v1517_v39, %v1485_v15  ;;  %2986 = vpow2.f32 %v1668_v28  ;;  %v2981_v24 = vpop.eup %2980  ;;  %v3794_v63 = vadd.f32 %v3514_v0, %v3522_v2 }
 0x1e9   : > { %v1518_v1 = vmax.f32 %v3778_v31, %v3783_v7  ;;  %v3802_v12 = vsel %vm1115_vm1, %v1099_v22, %v1131_v36  ;;  %v3807_v4 = vsel %vm775_vm2, %v759_v60, %v791_v55  ;;  %vm1116_vm4 = vcmp.gt.f32.partialorder %v3786_v61, 0.0 }
 0x1ea   : > { %2988 = vrcp.f32 %v1707_v51  ;;  %v1549_v38 = vsub.f32 %v3749_v50, %v1533_v21  ;;  %v1597_v16 = vsub.f32 %v3742_v14, %v1533_v21  ;;  %v1645_v44 = vsub.f32 %v1485_v15, %v1533_v21  ;;  %v1413_v18 = vpop.f32.mrf.mxu2  ;;  %v1080_v50 = vpop.f32.mrf.mxu0 }
 0x1eb   : > { %v1438_v47 = vadd.f32 %v1413_v18, %v3500_v57  ;;  %v1132_v57 = vmul.f32 0.2, %v3786_v61  ;;  %vm776_vm5 = vcmp.gt.f32.partialorder %v3794_v63, 0.0  ;;  %v1738_v60 = vmul.f32 %v2981_v24, %v3737_v32  ;;  %v3820_v15 = vpop.f32.mrf.mxu3 }
 0x1ec   : > { %v3797_v29 = vpop.eup %2982  ;;  %v1574_v9 = vmul.f32 1.442695, %v1549_v38  ;;  %v1622_v14 = vmul.f32 1.442695, %v1597_v16  ;;  %v1670_v0 = vmul.f32 1.442695, %v1645_v44  ;;  %v1891_v39 = vmul.f32 %v2981_v24, %v3746_v35 }
 0x1ed   : > { %v3804_v42 = vpop.eup %2984  ;;  %vm1454_vm3 = vcmp.gt.f32.partialorder %v1438_v47, 0.0  ;;  %v1470_v19 = vmul.f32 0.2, %v1438_v47  ;;  %v2012_v46 = vmul.f32 %v2981_v24, %v3755_v48  ;;  %v792_v55 = vmul.f32 0.2, %v3794_v63  ;;  %v3827_v24 = vpop.f32.mrf.mxu1 }
 0x1ee   : > { %v1692_v3 = vadd.f32 %v3804_v42, %v3797_v29  ;;  %2990 = vpow2.f32 %v1574_v9  ;;  %v3813_v22 = vpop.eup %2986 }
 0x1ef   : > { %2992 = vpow2.f32 %v1622_v14  ;;  %v1486_v5 = vsel %vm1454_vm3, %v1438_v47, %v1470_v19 }
 0x1f0   : > { %v2989_v40 = vpop.eup %2988  ;;  %v1708_v28 = vadd.f32 %v3813_v22, %v1692_v3  ;;  %v1534_v17 = vmax.f32 %v1518_v1, %v1486_v5  ;;  %2994 = vpow2.f32 %v1670_v0 }
 0x1f1   : > { %v1739_v36 = vmul.f32 %v2989_v40, %v3767_v34  ;;  %v1892_v51 = vmul.f32 %v2989_v40, %v2977_v54  ;;  %v2013_v21 = vmul.f32 %v2989_v40, %v2979_v49  ;;  %v761_v34 = vadd.f32 %v3517_v59, %v3531_v8 }
 0x1f2   : > { %v1550_v38 = vsub.f32 %v3778_v31, %v1534_v17  ;;  %v1598_v32 = vsub.f32 %v3783_v7, %v1534_v17  ;;  %v1646_v16 = vsub.f32 %v1486_v5, %v1534_v17  ;;  %v1415_v44 = vpop.f32.mrf.mxu2  ;;  %v1101_v54 = vadd.f32 %v1080_v50, %v3531_v8  ;;  %v1083_v0 = vpop.f32.mrf.mxu0 }
 0x1f3   : > { %v1439_v18 = vadd.f32 %v1415_v44, %v3512_v56  ;;  %v1751_v35 = vpack.c.bf16 %v1739_v36, %v1738_v60  ;;  %v1904_v47 = vpack.c.bf16 %v1892_v51, %v1891_v39  ;;  %v2025_v48 = vpack.c.bf16 %v2013_v21, %v2012_v46  ;;  %v3848_v51 = vpop.f32.mrf.mxu3 }
 0x1f4   : > { %v3829_v1 = vpop.eup %2990  ;;  %v1576_v49 = vmul.f32 1.442695, %v1550_v38  ;;  %v1624_v31 = vmul.f32 1.442695, %v1598_v32  ;;  %2996 = vrcp.f32 %v1708_v28  ;;  %v1672_v7 = vmul.f32 1.442695, %v1646_v16 }
 0x1f5   : > { %v2993_v9 = vpop.eup %2992  ;;  %vm1455_vm6 = vcmp.gt.f32.partialorder %v1439_v18, 0.0  ;;  %v1471_v14 = vmul.f32 0.2, %v1439_v18  ;;  %1827 = vmatmul.bf16.gmra.mxu3 %v1751_v35  ;;  %1932 = vmatmul.bf16.gmra.mxu0 %v1904_v47  ;;  %v1519_v56 = vmax.f32 %v3807_v4, %v3802_v12  ;;  %v1148_v50 = vsel %vm1116_vm4, %v3786_v61, %v1132_v57  ;;  %v3858_v35 = vpop.f32.mrf.mxu1 }
 0x1f6   : > { %v1693_v19 = vadd.f32 %v2993_v9, %v3829_v1  ;;  %2998 = vpow2.f32 %v1576_v49  ;;  %2053 = vmatmul.bf16.gmra.mxu1 %v2025_v48  ;;  %v2995_v59 = vpop.eup %2994  ;;  %v808_v5 = vsel %vm776_vm5, %v3794_v63, %v792_v55  ;;  %vm1117_vm7 = vcmp.gt.f32.partialorder %v1101_v54, 0.0 }
 0x1f7   : > { %3000 = vpow2.f32 %v1624_v31  ;;  %v1487_v3 = vsel %vm1455_vm6, %v1439_v18, %v1471_v14  ;;  %v793_v28 = vmul.f32 0.2, %v761_v34  ;;  %v1133_v17 = vmul.f32 0.2, %v1101_v54 }
 0x1f8   : > { %v1709_v60 = vadd.f32 %v2995_v59, %v1693_v19  ;;  %v1535_v40 = vmax.f32 %v1519_v56, %v1487_v3  ;;  %v3844_v39 = vadd.f32 %v1083_v0, %v3542_v26  ;;  %3002 = vpow2.f32 %v1672_v7 }
 0x1f9   : > { %vm777_vm8 = vcmp.gt.f32.partialorder %v761_v34, 0.0  ;;  %v1520_v38 = vmax.f32 %v808_v5, %v1148_v50  ;;  %v3856_v18 = vsel %vm1117_vm7, %v1101_v54, %v1133_v17  ;;  %v762_v49 = vadd.f32 %v3526_v6, %v3542_v26 }
 0x1fa   : > { %3004 = vrcp.f32 %v1709_v60  ;;  %v1551_v46 = vsub.f32 %v3807_v4, %v1535_v40  ;;  %v1599_v61 = vsub.f32 %v3802_v12, %v1535_v40  ;;  %v1647_v57 = vsub.f32 %v1487_v3, %v1535_v40  ;;  %v1418_v36 = vpop.f32.mrf.mxu2  ;;  %v2997_v21 = vpop.eup %2996 }
 0x1fb   : > { %v1440_v63 = vadd.f32 %v1418_v36, %v3522_v2  ;;  %v3860_v47 = vsel %vm777_vm8, %v761_v34, %v793_v28  ;;  %vm1118_vm10 = vcmp.gt.f32.partialorder %v3844_v39, 0.0  ;;  %v1740_v31 = vmul.f32 %v2997_v21, %v3797_v29 }
 0x1fc   : > { %v3851_v55 = vpop.eup %2998  ;;  %v1578_v32 = vmul.f32 1.442695, %v1551_v46  ;;  %v1626_v16 = vmul.f32 1.442695, %v1599_v61  ;;  %v1674_v4 = vmul.f32 1.442695, %v1647_v57  ;;  %v1893_v56 = vmul.f32 %v2997_v21, %v3804_v42 }
 0x1fd   : > { %v3853_v44 = vpop.eup %3000  ;;  %vm1456_vm9 = vcmp.gt.f32.partialorder %v1440_v63, 0.0  ;;  %v1472_v12 = vmul.f32 0.2, %v1440_v63  ;;  %v2014_v0 = vmul.f32 %v2997_v21, %v3813_v22  ;;  %v1134_v40 = vmul.f32 0.2, %v3844_v39  ;;  %v3876_v21 = vpop.f32.mrf.mxu3 }
 0x1fe   : > { %v1694_v2 = vadd.f32 %v3853_v44, %v3851_v55  ;;  %3006 = vpow2.f32 %v1578_v32  ;;  %v3865_v48 = vpop.eup %3002  ;;  %v794_v42 = vmul.f32 0.2, %v762_v49  ;;  %vm778_vm12 = vcmp.gt.f32.partialorder %v762_v49, 0.0 }
 0x1ff   : > { %3008 = vpow2.f32 %v1626_v16  ;;  %v1488_v54 = vsel %vm1456_vm9, %v1440_v63, %v1472_v12  ;;  %v1150_v12 = vsel %vm1118_vm10, %v3844_v39, %v1134_v40 }
 0x200   : > { %v3005_v7 = vpop.eup %3004  ;;  %v1710_v14 = vadd.f32 %v3865_v48, %v1694_v2  ;;  %v1536_v34 = vmax.f32 %v1520_v38, %v1488_v54  ;;  %3010 = vpow2.f32 %v1674_v4  ;;  %v3880_v4 = vpop.f32.mrf.mxu1 }
 0x201   : > { %v1741_v19 = vmul.f32 %v3005_v7, %v3829_v1  ;;  %v1894_v3 = vmul.f32 %v3005_v7, %v2993_v9  ;;  %v2015_v60 = vmul.f32 %v3005_v7, %v2995_v59  ;;  %v763_v7 = vadd.f32 %v3535_v11, %v3561_v37 }
 0x202   : > { %v1552_v6 = vsub.f32 %v808_v5, %v1536_v34  ;;  %v1600_v28 = vsub.f32 %v1148_v50, %v1536_v34  ;;  %v1648_v17 = vsub.f32 %v1488_v54, %v1536_v34  ;;  %v1420_v46 = vpop.f32.mrf.mxu2  ;;  %3012 = vrcp.f32 %v1710_v14 }
 0x203   : > { %v1441_v29 = vadd.f32 %v1420_v46, %v3531_v8  ;;  %v1752_v61 = vpack.c.bf16 %v1741_v19, %v1740_v31  ;;  %v1905_v57 = vpack.c.bf16 %v1894_v3, %v1893_v56  ;;  %v2026_v36 = vpack.c.bf16 %v2015_v60, %v2014_v0  ;;  %v1085_v8 = vpop.f32.mrf.mxu0 }
 0x204   : > { %v3007_v63 = vpop.eup %3006  ;;  %v1580_v38 = vmul.f32 1.442695, %v1552_v6  ;;  %v1628_v22 = vmul.f32 1.442695, %v1600_v28  ;;  %v1676_v9 = vmul.f32 1.442695, %v1648_v17  ;;  %v1521_v50 = vmax.f32 %v3860_v47, %v3856_v18 }
 0x205   : > { %v3009_v1 = vpop.eup %3008  ;;  %vm1457_vm11 = vcmp.gt.f32.partialorder %v1441_v29, 0.0  ;;  %v1473_v59 = vmul.f32 0.2, %v1441_v29  ;;  %1832 = vmatmul.bf16.gmra.mxu3 %v1752_v61  ;;  %1937 = vmatmul.bf16.gmra.mxu0 %v1905_v57  ;;  %v810_v31 = vsel %vm778_vm12, %v762_v49, %v794_v42  ;;  %v1103_v14 = vadd.f32 %v1085_v8, %v3561_v37 }
 0x206   : > { %v1695_v5 = vadd.f32 %v3009_v1, %v3007_v63  ;;  %3014 = vpow2.f32 %v1580_v38  ;;  %2058 = vmatmul.bf16.gmra.mxu1 %v2026_v36  ;;  %v3011_v32 = vpop.eup %3010  ;;  %v1522_v40 = vmax.f32 %v810_v31, %v1150_v12  ;;  %v795_v46 = vmul.f32 0.2, %v763_v7 }
 0x207   : > { %3016 = vpow2.f32 %v1628_v22  ;;  %v1489_v16 = vsel %vm1457_vm11, %v1441_v29, %v1473_v59  ;;  %vm1119_vm13 = vcmp.gt.f32.partialorder %v1103_v14, 0.0  ;;  %v3897_v29 = vpop.f32.mrf.mxu3  ;;  %vm779_vm15 = vcmp.gt.f32.partialorder %v763_v7, 0.0 }
 0x208   : > { %v1711_v2 = vadd.f32 %v3011_v32, %v1695_v5  ;;  %v1537_v54 = vmax.f32 %v1521_v50, %v1489_v16  ;;  %3018 = vpow2.f32 %v1676_v9  ;;  %v3013_v3 = vpop.eup %3012  ;;  %v3905_v5 = vpop.f32.mrf.mxu1 }
 0x209   : > { %v1742_v57 = vmul.f32 %v3013_v3, %v3851_v55  ;;  %v1895_v22 = vmul.f32 %v3013_v3, %v3853_v44  ;;  %v2016_v9 = vmul.f32 %v3013_v3, %v3865_v48 }
 0x20a   : > { %3020 = vrcp.f32 %v1711_v2  ;;  %v1553_v34 = vsub.f32 %v3860_v47, %v1537_v54  ;;  %v1601_v56 = vsub.f32 %v3856_v18, %v1537_v54  ;;  %v1649_v0 = vsub.f32 %v1489_v16, %v1537_v54  ;;  %v1423_v19 = vpop.f32.mrf.mxu2 }
 0x20b   : > { %v1442_v60 = vadd.f32 %v1423_v19, %v3542_v26  ;;  %v1135_v47 = vmul.f32 0.2, %v1103_v14  ;;  %v811_v16 = vsel %vm779_vm15, %v763_v7, %v795_v46 }
 0x20c   : > { %v3891_v39 = vpop.eup %3014  ;;  %v1582_v49 = vmul.f32 1.442695, %v1553_v34  ;;  %v1630_v6 = vmul.f32 1.442695, %v1601_v56  ;;  %v1678_v11 = vmul.f32 1.442695, %v1649_v0 }
 0x20d   : > { %v3893_v28 = vpop.eup %3016  ;;  %vm1458_vm14 = vcmp.gt.f32.partialorder %v1442_v60, 0.0  ;;  %v1474_v17 = vmul.f32 0.2, %v1442_v60  ;;  %v1151_v2 = vsel %vm1119_vm13, %v1103_v14, %v1135_v47 }
 0x20e   : > { %v1696_v18 = vadd.f32 %v3893_v28, %v3891_v39  ;;  %3022 = vpow2.f32 %v1582_v49  ;;  %v3899_v26 = vpop.eup %3018 }
 0x20f   : > { %3024 = vpow2.f32 %v1630_v6  ;;  %v1490_v61 = vsel %vm1458_vm14, %v1442_v60, %v1474_v17  ;;  %v3909_v6 = vpop.f32.mrf.mxu3 }
 0x210   : > { %v3021_v36 = vpop.eup %3020  ;;  %v1712_v42 = vadd.f32 %v3899_v26, %v1696_v18  ;;  %v1538_v38 = vmax.f32 %v1522_v40, %v1490_v61  ;;  %3026 = vpow2.f32 %v1678_v11  ;;  %v3911_v18 = vpop.f32.mrf.mxu1 }
 0x211   : > { %v1743_v59 = vmul.f32 %v3021_v36, %v3007_v63  ;;  %v1896_v50 = vmul.f32 %v3021_v36, %v3009_v1  ;;  %v2017_v8 = vmul.f32 %v3021_v36, %v3011_v32  ;;  %v1523_v32 = vmax.f32 %v811_v16, %v1151_v2 }
 0x212   : > { %v1554_v54 = vsub.f32 %v810_v31, %v1538_v38  ;;  %v1602_v34 = vsub.f32 %v1150_v12, %v1538_v38  ;;  %v1425_v55 = vpop.f32.mrf.mxu2  ;;  %v1650_v3 = vsub.f32 %v1490_v61, %v1538_v38  ;;  %3028 = vrcp.f32 %v1712_v42 }
 0x213   : > { %v1443_v56 = vadd.f32 %v1425_v55, %v3561_v37  ;;  %v1753_v0 = vpack.c.bf16 %v1743_v59, %v1742_v57  ;;  %v1906_v19 = vpack.c.bf16 %v1896_v50, %v1895_v22  ;;  %v2027_v60 = vpack.c.bf16 %v2017_v8, %v2016_v9 }
 0x214   : > { %v3023_v44 = vpop.eup %3022  ;;  %v1584_v40 = vmul.f32 1.442695, %v1554_v54  ;;  %v1632_v48 = vmul.f32 1.442695, %v1602_v34  ;;  %v1680_v14 = vmul.f32 1.442695, %v1650_v3 }
 0x215   : > { %v3025_v63 = vpop.eup %3024  ;;  %vm1459_vm0 = vcmp.gt.f32.partialorder %v1443_v56, 0.0  ;;  %v1475_v1 = vmul.f32 0.2, %v1443_v56  ;;  %1837 = vmatmul.bf16.gmra.mxu3 %v1753_v0  ;;  %1942 = vmatmul.bf16.gmra.mxu0 %v1906_v19 }
 0x216   : > { %v1697_v7 = vadd.f32 %v3025_v63, %v3023_v44  ;;  %3030 = vpow2.f32 %v1584_v40  ;;  %2063 = vmatmul.bf16.gmra.mxu1 %v2027_v60  ;;  %v3027_v12 = vpop.eup %3026 }
 0x217   : > { %3032 = vpow2.f32 %v1632_v48  ;;  %v1491_v37 = vsel %vm1459_vm0, %v1443_v56, %v1475_v1  ;;  %v3916_v55 = vpop.f32.mrf.mxu3 }
 0x218   : > { %v1713_v31 = vadd.f32 %v3027_v12, %v1697_v7  ;;  %v1539_v49 = vmax.f32 %v1523_v32, %v1491_v37  ;;  %v3029_v47 = vpop.eup %3028 }
 0x219   : > { %v1744_v59 = vmul.f32 %v3029_v47, %v3891_v39  ;;  %v1897_v50 = vmul.f32 %v3029_v47, %v3893_v28  ;;  %v2018_v8 = vmul.f32 %v3029_v47, %v3899_v26  ;;  %v3918_v39 = vpop.f32.mrf.mxu1 }
 0x21a   : > { %3034 = vrcp.f32 %v1713_v31  ;;  %v1555_v11 = vsub.f32 %v811_v16, %v1539_v49  ;;  %v1603_v17 = vsub.f32 %v1151_v2, %v1539_v49  ;;  %v1651_v46 = vsub.f32 %v1491_v37, %v1539_v49 }
 0x21b   : > { %3036 = vpow2.f32 %v1680_v14 }
 0x21c   : > { %v3031_v61 = vpop.eup %3030  ;;  %v1586_v57 = vmul.f32 1.442695, %v1555_v11  ;;  %v1634_v36 = vmul.f32 1.442695, %v1603_v17  ;;  %v1682_v38 = vmul.f32 1.442695, %v1651_v46 }
 0x21d   : > { %v3033_v42 = vpop.eup %3032 }
 0x21e   : > { %3038 = vpow2.f32 %v1586_v57  ;;  %v1698_v22 = vadd.f32 %v3033_v42, %v3031_v61 }
 0x21f   : > { %3040 = vpow2.f32 %v1634_v36  ;;  %v3920_v3 = vpop.f32.mrf.mxu3 }
 0x220   : > { %v3035_v9 = vpop.eup %3034  ;;  %3042 = vpow2.f32 %v1682_v38 }
 0x221   : > { %v1745_v16 = vmul.f32 %v3035_v9, %v3023_v44  ;;  %v1898_v2 = vmul.f32 %v3035_v9, %v3025_v63  ;;  %v2019_v54 = vmul.f32 %v3035_v9, %v3027_v12  ;;  %v3037_v34 = vpop.eup %3036  ;;  %v3922_v1 = vpop.f32.mrf.mxu1  ;;  %v1492_v9 = vpack.c.bf16 %v3564_v58, %v3564_v58 }
 0x222   : > { %v1714_v56 = vadd.f32 %v3037_v34, %v1698_v22  ;;  %v1493_v58 = vpack.c.bf16 %v3579_v20, %v3579_v20 }
 0x223   : > { %v1754_v0 = vpack.c.bf16 %v1745_v16, %v1744_v59  ;;  %v1907_v19 = vpack.c.bf16 %v1898_v2, %v1897_v50  ;;  %v2028_v60 = vpack.c.bf16 %v2019_v54, %v2018_v8  ;;  %v2079_v16 = vunpack.c.l.bf16 %v1492_v9 }
 0x224   : > { %v3039_v40 = vpop.eup %3038  ;;  %3044 = vrcp.f32 %v1714_v56  ;;  %v813_v56 = vpack.c.bf16 %v3495_v45, %v3495_v45 }
 0x225   : > { %v3041_v48 = vpop.eup %3040  ;;  %1842 = vmatmul.bf16.gmra.mxu3 %v1754_v0  ;;  %1947 = vmatmul.bf16.gmra.mxu0 %v1907_v19 }
 0x226   : > { %v1699_v28 = vadd.f32 %v3041_v48, %v3039_v40  ;;  %2068 = vmatmul.bf16.gmra.mxu1 %v2028_v60  ;;  %v3043_v26 = vpop.eup %3042 }
 0x227   : > { %v3924_v47 = vpop.f32.mrf.mxu3 }
 0x228   : > { %v1715_v44 = vadd.f32 %v3043_v26, %v1699_v28 }
 0x229   : > { %v3926_v57 = vpop.f32.mrf.mxu1 }
 0x22a   : > { %3046 = vrcp.f32 %v1715_v44  ;;  %v3045_v63 = vpop.eup %3044 }
 0x22b   : > { %v1746_v7 = vmul.f32 %v3045_v63, %v3031_v61  ;;  %v1899_v12 = vmul.f32 %v3045_v63, %v3033_v42  ;;  %v2020_v14 = vmul.f32 %v3045_v63, %v3037_v34  ;;  %v812_v61 = vpack.c.bf16 %v3487_v52, %v3487_v52 }
 0x22c   : > { %v1152_v42 = vpack.c.bf16 %v3572_v62, %v3572_v62  ;;  %v1153_v52 = vpack.c.bf16 %v3600_v43, %v3600_v43 }
 0x22d   : > { %v1853_v59 = vunpack.c.l.bf16 %v812_v61 }
 0x22e   : > { %v1958_v50 = vunpack.c.l.bf16 %v1152_v42 }
 0x22f   : > { %v3928_v36 = vpop.f32.mrf.mxu3 }
 0x230   : > { %v3047_v32 = vpop.eup %3046 }
 0x231   : > { %v1747_v37 = vmul.f32 %v3047_v32, %v3039_v40  ;;  %v1900_v31 = vmul.f32 %v3047_v32, %v3041_v48  ;;  %v2021_v49 = vmul.f32 %v3047_v32, %v3043_v26  ;;  %v1854_v40 = vunpack.c.l.bf16 %v813_v56 }
 0x232   : > { %v1959_v48 = vunpack.c.l.bf16 %v1153_v52  ;;  %v2080_v26 = vunpack.c.l.bf16 %v1493_v58  ;;  %v1495_v56 = vpack.c.bf16 %v3645_v10, %v3645_v10  ;;  %v1496_v10 = vpack.c.bf16 %v3680_v23, %v3680_v23 }
 0x233   : > { %v1755_v11 = vpack.c.bf16 %v1747_v37, %v1746_v7  ;;  %v1908_v17 = vpack.c.bf16 %v1900_v31, %v1899_v12  ;;  %v2029_v46 = vpack.c.bf16 %v2021_v49, %v2020_v14  ;;  %v4099_v7 = vld [vmem:[#allocation22_spill] sm:$0xff]  ;;  %v4100_v12 = vld [vmem:[#allocation29_spill] sm:$0xff]  ;;  %v4101_v49 = vld [vmem:[#allocation28_spill] sm:$0xff]  ;;  %v1497_v23 = vpack.c.bf16 %v3716_v30, %v3716_v30 }
 0x234   : > { %v814_v45 = vpack.c.bf16 %v4099_v7, %v4099_v7  ;;  %v1154_v43 = vpack.c.bf16 %v4100_v12, %v4100_v12  ;;  %v1494_v20 = vpack.c.bf16 %v4101_v49, %v4101_v49  ;;  %v2082_v58 = vunpack.c.l.bf16 %v1495_v56 }
 0x235   : > { %1847 = vmatmul.bf16.gmra.mxu3 %v1755_v11  ;;  %1952 = vmatmul.bf16.gmra.mxu0 %v1908_v17  ;;  %v1498_v30 = vpack.c.bf16 %v3758_v53, %v3758_v53  ;;  %v1499_v53 = vpack.c.bf16 %v3788_v41, %v3788_v41  ;;  %v1500_v41 = vpack.c.bf16 %v3827_v24, %v3827_v24 }
 0x236   : > { %2073 = vmatmul.bf16.gmra.mxu1 %v2029_v46  ;;  %v1855_v17 = vunpack.c.l.bf16 %v814_v45  ;;  %v1960_v46 = vunpack.c.l.bf16 %v1154_v43  ;;  %v2081_v42 = vunpack.c.l.bf16 %v1494_v20  ;;  %v1501_v24 = vpack.c.bf16 %v3858_v35, %v3858_v35 }
 0x237   : > { %v1502_v35 = vpack.c.bf16 %v3880_v4, %v3880_v4  ;;  %v1503_v4 = vpack.c.bf16 %v3905_v5, %v3905_v5  ;;  %v1504_v5 = vpack.c.bf16 %v3911_v18, %v3911_v18  ;;  %v1505_v18 = vpack.c.bf16 %v3918_v39, %v3918_v39 }
 0x238   : > { %v1506_v39 = vpack.c.bf16 %v3922_v1, %v3922_v1 }
 0x242   : > { %v1918_v38 = vpop.f32.mrf.mxu0 }
 0x243   : > { %v2039_v22 = vpop.f32.mrf.mxu1  ;;  %v1974_v2 = vmul.f32 %v1958_v50, %v1918_v38  ;;  %v4102_v50 = vld [vmem:[#allocation23_spill] sm:$0xff] }
 0x244   : > { %v2095_v0 = vmul.f32 %v2079_v16, %v2039_v22  ;;  %v1155_v16 = vpack.c.bf16 %v3669_v27, %v3669_v27  ;;  %v1156_v27 = vpack.c.bf16 %v3707_v33, %v3707_v33  ;;  %v1157_v33 = vpack.c.bf16 %v3744_v13, %v3744_v13 }
 0x245   : > { %v1158_v13 = vpack.c.bf16 %v3775_v25, %v3775_v25  ;;  %v1159_v25 = vpack.c.bf16 %v3820_v15, %v3820_v15  ;;  %v1160_v15 = vpack.c.bf16 %v3848_v51, %v3848_v51  ;;  %v1161_v51 = vpack.c.bf16 %v3876_v21, %v3876_v21 }
 0x246   : > { %v1962_v12 = vunpack.c.l.bf16 %v1156_v27  ;;  %v1162_v21 = vpack.c.bf16 %v3897_v29, %v3897_v29  ;;  %v1163_v29 = vpack.c.bf16 %v3909_v6, %v3909_v6  ;;  %v1164_v6 = vpack.c.bf16 %v3916_v55, %v3916_v55 }
 0x247   : > { %v1165_v55 = vpack.c.bf16 %v3920_v3, %v3920_v3  ;;  %v1166_v3 = vpack.c.bf16 %v3924_v47, %v3924_v47 }
 0x248   : > { %v1813_v8 = vpop.f32.mrf.mxu3 }
 0x249   : > { %v1869_v54 = vmul.f32 %v1853_v59, %v1813_v8  ;;  %v815_v8 = vpack.c.bf16 %v4102_v50, %v4102_v50  ;;  %v2084_v50 = vunpack.c.l.bf16 %v1497_v23 }
 0x24a   : > { %v1920_v34 = vpop.f32.mrf.mxu0 }
 0x24b   : > { %v1990_v62 = vadd.f32 %v1974_v2, %v1869_v54  ;;  %v2041_v19 = vpop.f32.mrf.mxu1  ;;  %v1975_v44 = vmul.f32 %v1959_v48, %v1920_v34 }
 0x24c   : > { %v2096_v37 = vmul.f32 %v2080_v26, %v2041_v19 }
 0x24d   : > { %v2111_v60 = vadd.f32 %v2095_v0, %v1990_v62  ;;  %v1856_v0 = vunpack.c.l.bf16 %v815_v8  ;;  %v1961_v62 = vunpack.c.l.bf16 %v1155_v16 }
 0x250   : > { %v1815_v28 = vpop.f32.mrf.mxu3 }
 0x251   : > { %v1870_v63 = vmul.f32 %v1854_v40, %v1815_v28  ;;  %v4103_v28 = vld [vmem:[#allocation24_spill] sm:$0xff] }
 0x252   : > { %v1923_v32 = vpop.f32.mrf.mxu0  ;;  %v816_v26 = vpack.c.bf16 %v4103_v28, %v4103_v28 }
 0x253   : > { %v1991_v31 = vadd.f32 %v1975_v44, %v1870_v63  ;;  %v2044_v14 = vpop.f32.mrf.mxu1  ;;  %v1976_v22 = vmul.f32 %v1960_v46, %v1923_v32 }
 0x254   : > { %v2097_v2 = vmul.f32 %v2081_v42, %v2044_v14  ;;  %v1857_v45 = vunpack.c.l.bf16 %v816_v26 }
 0x255   : > { %v2112_v11 = vadd.f32 %v2096_v37, %v1991_v31  ;;  %v2083_v31 = vunpack.c.l.bf16 %v1496_v10 }
 0x257   : > { %v2793_v38 = vpack.c.bf16 %v2112_v11, %v2111_v60  ;;  %v4104_v11 = vld [vmem:[#allocation25_spill] sm:$0xff] }
 0x258   : > { %v1818_v61 = vpop.f32.mrf.mxu3 }
 0x259   : > { %2794 = vst [vmem:[%s3949_s9] sm:$0xff] %v2793_v38   ;;  %v1871_v9 = vmul.f32 %v1855_v17, %v1818_v61  ;;  %v817_v17 = vpack.c.bf16 %v4104_v11, %v4104_v11  ;;  %v4107_v11 = vld [vmem:[#allocation14_spill] sm:$0xff] }
 0x25a   : > { %v1925_v59 = vpop.f32.mrf.mxu0 }
 0x25b   : > { %v1992_v54 = vadd.f32 %v1976_v22, %v1871_v9  ;;  %v2046_v34 = vpop.f32.mrf.mxu1  ;;  %v1977_v60 = vmul.f32 %v1961_v62, %v1925_v59  ;;  %v1858_v22 = vunpack.c.l.bf16 %v817_v17  ;;  %v1963_v9 = vunpack.c.l.bf16 %v1157_v33 }
 0x25c   : > { %v2098_v44 = vmul.f32 %v2082_v58, %v2046_v34  ;;  %v1964_v58 = vunpack.c.l.bf16 %v1158_v13  ;;  %v820_v17 = vpack.c.bf16 %v4107_v11, %v4107_v11 }
 0x25d   : > { %v2113_v52 = vadd.f32 %v2097_v2, %v1992_v54  ;;  %v4105_v54 = vld [vmem:[#allocation26_spill] sm:$0xff] }
 0x25e   : > { %v818_v34 = vpack.c.bf16 %v4105_v54, %v4105_v54  ;;  %v1861_v23 = vunpack.c.l.bf16 %v820_v17 }
 0x260   : > { %v1820_v19 = vpop.f32.mrf.mxu3 }
 0x261   : > { %v1872_v40 = vmul.f32 %v1856_v0, %v1820_v19  ;;  %v1859_v19 = vunpack.c.l.bf16 %v818_v34 }
 0x262   : > { %v1928_v48 = vpop.f32.mrf.mxu0 }
 0x263   : > { %v1993_v63 = vadd.f32 %v1977_v60, %v1872_v40  ;;  %v2049_v32 = vpop.f32.mrf.mxu1  ;;  %v1978_v14 = vmul.f32 %v1962_v12, %v1928_v48  ;;  %v2085_v48 = vunpack.c.l.bf16 %v1498_v30  ;;  %v1967_v30 = vunpack.c.l.bf16 %v1161_v51 }
 0x264   : > { %v2099_v46 = vmul.f32 %v2083_v31, %v2049_v32  ;;  %v2086_v31 = vunpack.c.l.bf16 %v1499_v53  ;;  %v2089_v53 = vunpack.c.l.bf16 %v1502_v35  ;;  %v2091_v51 = vunpack.c.l.bf16 %v1504_v5 }
 0x265   : > { %v2114_v7 = vadd.f32 %v2098_v44, %v1993_v63  ;;  %v4106_v44 = vld [vmem:[#allocation27_spill] sm:$0xff] }
 0x266   : > { %v819_v63 = vpack.c.bf16 %v4106_v44, %v4106_v44 }
 0x267   : > { %v2798_v43 = vpack.c.bf16 %v2114_v7, %v2113_v52 }
 0x268   : > { %v1823_v37 = vpop.f32.mrf.mxu3  ;;  %v1860_v12 = vunpack.c.l.bf16 %v819_v63 }
 0x269   : > { %2830 = vst [vmem:[%s3949_s9 + $0x8] sm:$0xff] %v2798_v43   ;;  %v1873_v49 = vmul.f32 %v1857_v45, %v1823_v37  ;;  %v1965_v43 = vunpack.c.l.bf16 %v1159_v25 }
 0x26a   : > { %v1930_v20 = vpop.f32.mrf.mxu0 }
 0x26b   : > { %v1994_v38 = vadd.f32 %v1978_v14, %v1873_v49  ;;  %v2051_v61 = vpop.f32.mrf.mxu1  ;;  %v1979_v8 = vmul.f32 %v1963_v9, %v1930_v20 }
 0x26c   : > { %v2100_v56 = vmul.f32 %v2084_v50, %v2051_v61 }
 0x26d   : > { %v2115_v42 = vadd.f32 %v2099_v46, %v1994_v38 }
 0x270   : > { %v1825_v59 = vpop.f32.mrf.mxu3 }
 0x271   : > { %v1874_v16 = vmul.f32 %v1858_v22, %v1825_v59  ;;  %v2087_v59 = vunpack.c.l.bf16 %v1500_v41 }
 0x272   : > { %v1933_v2 = vpop.f32.mrf.mxu0 }
 0x273   : > { %v1995_v52 = vadd.f32 %v1979_v8, %v1874_v16  ;;  %v2054_v0 = vpop.f32.mrf.mxu1  ;;  %v1980_v28 = vmul.f32 %v1964_v58, %v1933_v2  ;;  %v4108_v2 = vld [vmem:[#allocation15_spill] sm:$0xff] }
 0x274   : > { %v2101_v32 = vmul.f32 %v2085_v48, %v2054_v0  ;;  %v821_v54 = vpack.c.bf16 %v4108_v2, %v4108_v2  ;;  %v4109_v48 = vld [vmem:[#allocation16_spill] sm:$0xff] }
 0x275   : > { %v2116_v62 = vadd.f32 %v2100_v56, %v1995_v52 }
 0x276   : > { %v1862_v0 = vunpack.c.l.bf16 %v821_v54 }
 0x277   : > { %v2803_v60 = vpack.c.bf16 %v2116_v62, %v2115_v42  ;;  %v1966_v42 = vunpack.c.l.bf16 %v1160_v15  ;;  %v1969_v15 = vunpack.c.l.bf16 %v1163_v29  ;;  %v1167_v29 = vpack.c.bf16 %v3928_v36, %v3928_v36 }
 0x278   : > { %v1828_v40 = vpop.f32.mrf.mxu3 }
 0x279   : > { %2831 = vst [vmem:[%s3949_s9 + $0x10] sm:$0xff] %v2803_v60   ;;  %v1875_v26 = vmul.f32 %v1859_v19, %v1828_v40  ;;  %v2088_v19 = vunpack.c.l.bf16 %v1501_v24  ;;  %v4112_v24 = vld [vmem:[#allocation19_spill] sm:$0xff] }
 0x27a   : > { %v1935_v27 = vpop.f32.mrf.mxu0 }
 0x27b   : > { %v1996_v10 = vadd.f32 %v1980_v28, %v1875_v26  ;;  %v2056_v7 = vpop.f32.mrf.mxu1  ;;  %v1981_v14 = vmul.f32 %v1965_v43, %v1935_v27  ;;  %v822_v28 = vpack.c.bf16 %v4109_v48, %v4109_v48  ;;  %v2092_v48 = vunpack.c.l.bf16 %v1505_v18 }
 0x27c   : > { %v2102_v33 = vmul.f32 %v2086_v31, %v2056_v7 }
 0x27d   : > { %v2117_v45 = vadd.f32 %v2101_v32, %v1996_v10  ;;  %v1863_v25 = vunpack.c.l.bf16 %v822_v28  ;;  %v1968_v32 = vunpack.c.l.bf16 %v1162_v21 }
 0x280   : > { %v1830_v37 = vpop.f32.mrf.mxu3 }
 0x281   : > { %v1876_v49 = vmul.f32 %v1860_v12, %v1830_v37  ;;  %v4110_v37 = vld [vmem:[#allocation17_spill] sm:$0xff] }
 0x282   : > { %v1938_v20 = vpop.f32.mrf.mxu0  ;;  %v823_v31 = vpack.c.bf16 %v4110_v37, %v4110_v37 }
 0x283   : > { %v1997_v46 = vadd.f32 %v1981_v14, %v1876_v49  ;;  %v2059_v38 = vpop.f32.mrf.mxu1  ;;  %v1982_v50 = vmul.f32 %v1966_v42, %v1938_v20 }
 0x284   : > { %v2103_v34 = vmul.f32 %v2087_v59, %v2059_v38  ;;  %v1864_v17 = vunpack.c.l.bf16 %v823_v31  ;;  %v4114_v31 = vld [vmem:[#allocation21_spill] sm:$0xff] }
 0x285   : > { %v2118_v61 = vadd.f32 %v2102_v33, %v1997_v46  ;;  %v2090_v46 = vunpack.c.l.bf16 %v1503_v4  ;;  %v827_v47 = vpack.c.bf16 %v4114_v31, %v4114_v31 }
 0x287   : > { %v2808_v22 = vpack.c.bf16 %v2118_v61, %v2117_v45 }
 0x288   : > { %v1833_v9 = vpop.f32.mrf.mxu3 }
 0x289   : > { %2832 = vst [vmem:[%s3949_s9 + $0x18] sm:$0xff] %v2808_v22   ;;  %v1877_v8 = vmul.f32 %v1861_v23, %v1833_v9  ;;  %v4111_v23 = vld [vmem:[#allocation18_spill] sm:$0xff] }
 0x28a   : > { %v1940_v16 = vpop.f32.mrf.mxu0  ;;  %v824_v42 = vpack.c.bf16 %v4111_v23, %v4111_v23 }
 0x28b   : > { %v1998_v13 = vadd.f32 %v1982_v50, %v1877_v8  ;;  %v2061_v56 = vpop.f32.mrf.mxu1  ;;  %v1983_v58 = vmul.f32 %v1967_v30, %v1940_v16  ;;  %v1970_v16 = vunpack.c.l.bf16 %v1164_v6 }
 0x28c   : > { %v2104_v26 = vmul.f32 %v2088_v19, %v2061_v56  ;;  %v1865_v8 = vunpack.c.l.bf16 %v824_v42 }
 0x28d   : > { %v2119_v52 = vadd.f32 %v2103_v34, %v1998_v13 }
 0x290   : > { %v1835_v62 = vpop.f32.mrf.mxu3 }
 0x291   : > { %v1878_v60 = vmul.f32 %v1862_v0, %v1835_v62 }
 0x292   : > { %v1943_v40 = vpop.f32.mrf.mxu0 }
 0x293   : > { %v1999_v27 = vadd.f32 %v1983_v58, %v1878_v60  ;;  %v2064_v44 = vpop.f32.mrf.mxu1  ;;  %v1984_v45 = vmul.f32 %v1968_v32, %v1943_v40  ;;  %v1971_v60 = vunpack.c.l.bf16 %v1165_v55 }
 0x294   : > { %v2105_v14 = vmul.f32 %v2089_v53, %v2064_v44 }
 0x295   : > { %v2120_v63 = vadd.f32 %v2104_v26, %v1999_v27  ;;  %v4113_v26 = vld [vmem:[#allocation20_spill] sm:$0xff] }
 0x296   : > { %v826_v27 = vpack.c.bf16 %v4113_v26, %v4113_v26 }
 0x297   : > { %v2813_v10 = vpack.c.bf16 %v2120_v63, %v2119_v52  ;;  %v825_v52 = vpack.c.bf16 %v4112_v24, %v4112_v24 }
 0x298   : > { %v1838_v7 = vpop.f32.mrf.mxu3 }
 0x299   : > { %2833 = vst [vmem:[%s3949_s9 + $0x20] sm:$0xff] %v2813_v10   ;;  %v1879_v12 = vmul.f32 %v1863_v25, %v1838_v7  ;;  %v1866_v58 = vunpack.c.l.bf16 %v825_v52  ;;  %v1867_v10 = vunpack.c.l.bf16 %v826_v27  ;;  %v1972_v7 = vunpack.c.l.bf16 %v1166_v3 }
 0x29a   : > { %v1945_v43 = vpop.f32.mrf.mxu0 }
 0x29b   : > { %v2000_v49 = vadd.f32 %v1984_v45, %v1879_v12  ;;  %v2066_v20 = vpop.f32.mrf.mxu1  ;;  %v1985_v38 = vmul.f32 %v1969_v15, %v1945_v43  ;;  %v2093_v12 = vunpack.c.l.bf16 %v1506_v39 }
 0x29c   : > { %v2106_v22 = vmul.f32 %v2090_v46, %v2066_v20 }
 0x29d   : > { %v2121_v11 = vadd.f32 %v2105_v14, %v2000_v49  ;;  %v1507_v49 = vpack.c.bf16 %v3926_v57, %v3926_v57 }
 0x29f   : > { %v2094_v36 = vunpack.c.l.bf16 %v1507_v49 }
 0x2a0   : > { %v1840_v33 = vpop.f32.mrf.mxu3 }
 0x2a1   : > { %v1880_v41 = vmul.f32 %v1864_v17, %v1840_v33  ;;  %v1973_v17 = vunpack.c.l.bf16 %v1167_v29 }
 0x2a2   : > { %v1948_v61 = vpop.f32.mrf.mxu0 }
 0x2a3   : > { %v2001_v9 = vadd.f32 %v1985_v38, %v1880_v41  ;;  %v2069_v59 = vpop.f32.mrf.mxu1  ;;  %v1986_v34 = vmul.f32 %v1970_v16, %v1948_v61 }
 0x2a4   : > { %v2107_v0 = vmul.f32 %v2091_v51, %v2069_v59 }
 0x2a5   : > { %v2122_v50 = vadd.f32 %v2106_v22, %v2001_v9 }
 0x2a7   : > { %v2818_v2 = vpack.c.bf16 %v2122_v50, %v2121_v11  ;;  %v1868_v11 = vunpack.c.l.bf16 %v827_v47 }
 0x2a8   : > { %v1843_v54 = vpop.f32.mrf.mxu3 }
 0x2a9   : > { %2834 = vst [vmem:[%s3949_s9 + $0x28] sm:$0xff] %v2818_v2   ;;  %v1881_v13 = vmul.f32 %v1865_v8, %v1843_v54 }
 0x2aa   : > { %v1950_v56 = vpop.f32.mrf.mxu0 }
 0x2ab   : > { %v2002_v30 = vadd.f32 %v1986_v34, %v1881_v13  ;;  %v2071_v62 = vpop.f32.mrf.mxu1  ;;  %v1987_v28 = vmul.f32 %v1971_v60, %v1950_v56 }
 0x2ac   : > { %v2108_v44 = vmul.f32 %v2092_v48, %v2071_v62 }
 0x2ad   : > { %v2123_v19 = vadd.f32 %v2107_v0, %v2002_v30 }
 0x2b0   : > { %v1845_v40 = vpop.f32.mrf.mxu3 }
 0x2b1   : > { %v1882_v21 = vmul.f32 %v1866_v58, %v1845_v40 }
 0x2b2   : > { %v1953_v63 = vpop.f32.mrf.mxu0 }
 0x2b3   : > { %v2003_v35 = vadd.f32 %v1987_v28, %v1882_v21  ;;  %v2074_v32 = vpop.f32.mrf.mxu1  ;;  %v1988_v43 = vmul.f32 %v1972_v7, %v1953_v63 }
 0x2b4   : > { %v2109_v14 = vmul.f32 %v2093_v12, %v2074_v32 }
 0x2b5   : > { %v2124_v25 = vadd.f32 %v2108_v44, %v2003_v35 }
 0x2b7   : > { %v2823_v53 = vpack.c.bf16 %v2124_v25, %v2123_v19 }
 0x2b8   : > { %v1848_v45 = vpop.f32.mrf.mxu3 }
 0x2b9   : > { %2835 = vst [vmem:[%s3949_s9 + $0x30] sm:$0xff] %v2823_v53   ;;  %v1883_v37 = vmul.f32 %v1867_v10, %v1848_v45 }
 0x2ba   : > { %v1955_v4 = vpop.f32.mrf.mxu0 }
 0x2bb   : > { %v2004_v1 = vadd.f32 %v1988_v43, %v1883_v37  ;;  %v2076_v15 = vpop.f32.mrf.mxu1  ;;  %v1989_v46 = vmul.f32 %v1973_v17, %v1955_v4 }
 0x2bc   : > { %v2110_v41 = vmul.f32 %v2094_v36, %v2076_v15 }
 0x2bd   : > { %v2125_v20 = vadd.f32 %v2109_v14, %v2004_v1 }
 0x2c0   : > { %v1850_v33 = vpop.f32.mrf.mxu3 }
 0x2c1   : > { %v1884_v38 = vmul.f32 %v1868_v11, %v1850_v33 }
 0x2c3   : > { %v2005_v61 = vadd.f32 %v1989_v46, %v1884_v38 }
 0x2c5   : > { %v2126_v57 = vadd.f32 %v2110_v41, %v2005_v61 }
 0x2c7   : > { %v2828_v23 = vpack.c.bf16 %v2126_v57, %v2125_v20 }
 0x2c9   : > { %2836 = vst [vmem:[%s3949_s9 + $0x38] sm:$0xff] %v2828_v23  }
 0x2ca   : > { %3105 = shalt.err (!%p3102_p10)
}
 0x2cb   : > { %s3159_s13 = smov 64   ;;  %s3160_s26 = smov 4  }
 0x2cc   : > { %2864 = dma.vmem_to_hbm [thread:$0]  (%p3243_p11), %s2173_s29, 1024, %s2175_s8, %s2160_s22, %s3159_s13, %s3159_s13, %s3160_s26  }
 0x2cd PF: > { %s2189_s9 = sand.u32 1, %s3136_s18   ;;  %p2871_p13 = pnand %p2273_p2, %p3247_p12 }
 0x2ce   : > { %s2190_s10 = scalar_lea.sflag [#allocation4], %s2189_s9 }
 0x2cf   : > { %p2872_p1 = pneg %p2871_p13 }
 0x2d1   : > { %3131 = dma.done.wait (%p2872_p1), %s2190_s10, 1024  }
 0x2d2   : > { %3133 = vsyncadd (%p2872_p1), %s2190_s10, 4294966272  ;;  %p19_p0 = scmp.ge.s32.totalorder %s3216_s24, 4   ;;  %s4115_s18 = smov %s3140_s19 }
 0x2d3   : > { %s4116_s19 = smov %s3144_s20  ;;  %s4117_s20 = smov %s3228_s27 }
 0x2d4   : > { %s4118_s21 = smov %s3216_s24  ;;  %21 = sbr.rel (!%p19_p0) target bundleno = 6 (0x6), region = 101 }
 0x2d9   :  { %2196 = vsyncpa [#allocation3], 1 }
 0x2da   :  { %2198 = vsyncpa [#allocation3 + $0x1], 1 }
 0x2db   :  { %2199 = vsyncpa [#allocation6], 1 }
 0x2dc   :  { %2200 = vsyncpa [#allocation4], 1 }
 0x2dd   :  { %2202 = vsyncpa [#allocation4 + $0x1], 1 }

// kernel: tpu_custom_call.1
= control target key start
LH: loop header
LB: loop body
LE: loop exit
PB: predicated region body
PF: predicated region fallthrough
CT: control target
= control target key end

     0   :  { %10 = vsyncpa [#allocation3], 0  ;;  %s4071_s0 = inlined_call_operand.vmem [shape: bf16[256,64], index: 0, kind: input, shape index: {}]   ;;  %s4072_s1 = inlined_call_operand.vmem [shape: bf16[64,256], index: 1, kind: input, shape index: {}]   ;;  %s4073_s2 = inlined_call_operand.hbm [shape: bf16[3,256,128], index: 2, kind: input, shape index: {}]   ;;  %s4074_s3 = inlined_call_operand.hbm [shape: bf16[3,128,256], index: 3, kind: input, shape index: {}]   ;;  %s4075_s4 = inlined_call_operand.vmem [shape: bf16[128,128], index: 4, kind: input, shape index: {}]   ;;  %s4076_s5 = inlined_call_operand.hbm [shape: bf16[256,128], index: 5, kind: output, shape index: {}]  }
   0x1   :  { %12 = vsyncpa [#allocation3 + $0x1], 0 }
   0x2   :  { %13 = vsyncpa [#allocation6], 0 }
   0x3   :  { %14 = vsyncpa [#allocation4], 0 }
   0x4   :  { %16 = vsyncpa [#allocation4 + $0x1], 0  ;;  %s3191_s18 = smov 0   ;;  %s3193_s19 = smov 0  }
   0x5   :  { %s3195_s20 = smov 0   ;;  %s3197_s21 = smov 0  }
   0x6 LB: > { %s3212_s22 = sadd.s32 4294967295, %s3148_s21   ;;  %s2270_s23 = sadd.s32 4294967294, %s3148_s21   ;;  %s3148_s21 = sphi %s3197_s21, %s4118_s21   ;;  %s3144_s20 = sphi %s3195_s20, %s4117_s20   ;;  %s3140_s19 = sphi %s3193_s19, %s4116_s19   ;;  %s3136_s18 = sphi %s3191_s18, %s4115_s18  }
   0x7   : > { %s3216_s24 = sadd.s32 1, %s3148_s21   ;;  %s76_s25 = sadd.s32 1, %s3144_s20 }
   0x8   : > { %s73_s26 = ssub.s32 %s3148_s21, %s3216_s24  ;;  %p83_p0 = scmp.ne.s32.totalorder %s3144_s20, %s3140_s19 }
   0x9   : > { %p74_p1 = scmp.eq.s32.totalorder %s73_s26, 0  ;;  %p84_p2 = scmp.eq.s32.totalorder %s3148_s21, 0 }
   0xa   : > { %p89_p3 = scmp.ne.s32.totalorder %s3140_s19, %s3136_s18  ;;  %p90_p4 = scmp.eq.s32.totalorder %s3212_s22, 0 }
   0xb   : > { %s3228_s27 = scalar_select %p74_p1, %s3144_s20, %s76_s25  }
   0xc   : > { %p3230_p5 = por %p84_p2, %p83_p0  ;;  %p3236_p6 = por %p90_p4, %p89_p3 }
   0xd   : > { %p155_p7 = scmp.eq.s32.totalorder %s3212_s22, 1  ;;  %p161_p8 = scmp.eq.s32.totalorder %s2270_s23, 1 }
   0xe   : > { %p2271_p9 = scmp.ge.s32.totalorder %s3148_s21, 1  ;;  %p168_p10 = scmp.lt.s32.totalorder %s3148_s21, 3 }
   0xf   : > { %p3243_p11 = por %p155_p7, %p83_p0  ;;  %p3247_p12 = por %p161_p8, %p89_p3 }
  0x10   : > { %p3251_p13 = pnand %p2271_p9, %p168_p10  ;;  %s182_s10 = sshll.u32 %s4074_s3, 4  ;;  %s183_s10 = int_to_ptr.hbm [resolvable:$true] %s182_s10 }
  0x11   : > { %s3150_s11 = smov [#allocation5]   ;;  %s3151_s13 = smov 128  }
  0x12   : > { %p2866_p1 = pneg %p3251_p13  ;;  %s184_s12 = sshll.u32 %s3150_s11, 4  ;;  %s185_s12 = int_to_ptr.vmem [resolvable:$true] %s184_s12 }
  0x13   : > { %s3152_s14 = smov 8   ;;  %p2273_p2 = scmp.ge.s32.totalorder %s3148_s21, 2 }
  0x14   : > { %p2867_p0 = pnand %p2866_p1, %p90_p4 }
  0x15   : > { %197 = sbr.rel (%p2273_p2) target bundleno = 40 (0x28), region = 28 }
  0x16   : > { %2869 = dma.hbm_to_vmem [thread:$0]  (!%p2867_p0), %s183_s10, 6144, %s185_s12, [#allocation6], %s3151_s13, %s3151_s13, %s3152_s14  }
  0x1a   : > { %s210_s15 = sand.u32 1, %s3144_s20   ;;  %s2696_s16 = sshll.u32 %s3148_s21, 6 }
  0x1b   : > { %s2849_s17 = smul.u32 192, %s210_s15  ;;  %s219_s26 = scalar_lea.hbm %s4073_s2, %s2696_s16 }
  0x1c   : > { %s232_s8 = sshll.u32 %s219_s26, 4  ;;  %s3153_s13 = smov 2048   ;;  %s233_s8 = int_to_ptr.hbm [resolvable:$true] %s232_s8 }
  0x1d   : > { %s2853_s9 = scalar_select %p3230_p5, [#allocation0], [#allocation10] }
  0x1e   : > { %s214_s10 = scalar_lea.vmem [#allocation2], %s2849_s17  ;;  %2854 = sst [smem:[#allocation9]] (%p3230_p5), %s3153_s13 }
  0x1f   : > { %s234_s11 = sshll.u32 %s214_s10, 4  ;;  %s224_s12 = sld [smem:[%s2853_s9]]   ;;  %s235_s11 = int_to_ptr.vmem [resolvable:$true] %s234_s11 }
  0x20   : > { %s3154_s14 = smov 1024   ;;  %s3155_s23 = smov 16  }
  0x21   : > { %2855 = sst [smem:[#allocation9 + $0x1]] (%p3230_p5), %s3154_s14  ;;  %s3156_s16 = smov 64  }
  0x22   : > { %2856 = sst [smem:[#allocation9 + $0x2]] (%p3230_p5), %s3155_s23  ;;  %s3157_s17 = smov 4  }
  0x23   : > { %2857 = sst [smem:[#allocation9 + $0x3]] (%p3230_p5), %s3156_s16  ;;  %s211_s9 = scalar_lea.sflag [#allocation3], %s210_s15 }
  0x24   : > { %2858 = sst [smem:[#allocation9 + $0x4]] (%p3230_p5), %s3156_s16  ;;  %s3158_s10 = smov [#allocation8]  }
  0x25   : > { %s2276_s25 = sshll.u32 %s224_s12, 26  ;;  %2859 = sst [smem:[#allocation9 + $0x5]] (%p3230_p5), %s3157_s17 }
  0x26   : > { %s2277_s26 = sadd.s32 134217728, %s2276_s25 }
  0x27   : > { %2860 = dma.general (%p3230_p5), %s233_s8, 3072, %s235_s11, %s211_s9, %s3158_s10, [#allocation9], %s2277_s26, 0  }
  0x28 PF: > { %259 = sbr.rel (%p3251_p13) target bundleno = 717 (0x2cd), region = 40 }
  0x2d   : > { %s3289_s13 = sand.u32 1, %s3140_s19  }
  0x2e   : > { %s2850_s14 = smul.u32 192, %s3289_s13  ;;  %s262_s12 = scalar_lea.sflag [#allocation3], %s3289_s13 }
  0x30   : > { %s3293_s23 = scalar_lea.vmem [#allocation2], %s2850_s14 }
  0x31   : > { %3123 = dma.done.wait (%p3236_p6), %s262_s12, 3072  }
  0x32   : > { %3125 = vsyncadd (%p3236_p6), %s262_s12, 4294964224 }
  0x33   : > { %3127 = dma.done.wait (%p90_p4), [#allocation6], 6144  }
  0x34   : > { %3129 = vsyncadd (%p90_p4), [#allocation6], 4294961152  ;;  %s2281_s28 = sshll.u32 %s3212_s22, 4  ;;  %v2429_v0 = vld [vmem:[#allocation5 + $0x70] sm:$0xf]  ;;  %vm400_vm0 = vcmask 523264  }
  0x35   : > { %p3304_p3 = scmp.lt.s32.totalorder %s2281_s28, 31  ;;  %v2740_v1 = vld [vmem:[#allocation5 + $0x74] sm:$0xf0]  ;;  %v2421_v2 = vld [vmem:[#allocation5 + $0x60] sm:$0xf]  ;;  %s2280_s26 = sshll.u32 %s3289_s13, 6 }
  0x36   : > { %v2430_v3 = vor.u32 %v2740_v1, %v2429_v0  ;;  %v2738_v4 = vld [vmem:[#allocation5 + $0x64] sm:$0xf0]  ;;  %v2708_v5 = vld [vmem:[%s4072_s1 + $0x34] sm:$0xf]  ;;  %v2327_v6 = vld [vmem:[%s4072_s1 + $0x38] sm:$0xf0] }
  0x37   : > { %v2330_v7 = vor.u32 %v2708_v5, %v2327_v6  ;;  %v2707_v8 = vld [vmem:[%s4072_s1 + $0x24] sm:$0xf]  ;;  %v2422_v9 = vor.u32 %v2738_v4, %v2421_v2  ;;  %v2323_v10 = vld [vmem:[%s4072_s1 + $0x28] sm:$0xf0]  ;;  %v2413_v11 = vld [vmem:[#allocation5 + $0x50] sm:$0xf] }
  0x38   : > { %2841 = vmatpush.bf16.msra.mxu2 %v2430_v3  ;;  %650 = vmatpush.bf16.msra.mxu1 %v2430_v3  ;;  %v2736_v12 = vld [vmem:[#allocation5 + $0x54] sm:$0xf0]  ;;  %v2326_v13 = vor.u32 %v2707_v8, %v2323_v10  ;;  %v2706_v14 = vld [vmem:[%s4072_s1 + $0x14] sm:$0xf]  ;;  %v2319_v15 = vld [vmem:[%s4072_s1 + $0x18] sm:$0xf0] }
  0x39   : > { %429 = vmatpush.bf16.msra.mxu0 %v2330_v7  ;;  %2837 = vmatpush.bf16.msra.mxu3 %v2330_v7  ;;  %s4120_s28 = smov (!%p3304_p3, %s2281_s28), 31  ;;  %v2414_v16 = vor.u32 %v2736_v12, %v2413_v11  ;;  %v2405_v17 = vld [vmem:[#allocation5 + $0x40] sm:$0xf]  ;;  %v2734_v18 = vld [vmem:[#allocation5 + $0x44] sm:$0xf0]  ;;  %v2322_v19 = vor.u32 %v2706_v14, %v2319_v15  ;;  %s3949_s9 = scalar_lea.vmem [#allocation7], %s2280_s26 }
  0x3a   : > { %v2705_v20 = vld [vmem:[%s4072_s1 + $0x4] sm:$0xf]  ;;  %v2315_v21 = vld [vmem:[%s4072_s1 + $0x8] sm:$0xf0]  ;;  %s2282_s16 = sshll.u32 %s4120_s28, 2  ;;  %v2406_v22 = vor.u32 %v2734_v18, %v2405_v17  ;;  %s2789_s10 = sshll.u32 %s3212_s22, 6 }
  0x3b   : > { %v2397_v23 = vld [vmem:[#allocation5 + $0x30] sm:$0xf]  ;;  %v2732_v24 = vld [vmem:[#allocation5 + $0x34] sm:$0xf0]  ;;  %v2318_v25 = vor.u32 %v2705_v20, %v2315_v21  ;;  %s3337_s17 = scalar_lea.vmem %s4071_s0, %s2282_s16  ;;  %v2389_v28 = vld [vmem:[#allocation5 + $0x20] sm:$0xf]  ;;  %s2171_s15 = scalar_lea.hbm %s4076_s5, %s2789_s10 }
  0x3c   : > { %2842 = vmatpush.bf16.msra.mxu2 %v2422_v9  ;;  %651 = vmatpush.bf16.msra.mxu1 %v2422_v9  ;;  %v2398_v26 = vor.u32 %v2732_v24, %v2397_v23  ;;  %v2697_v27 = vld [vmem:[%s3337_s17] sm:$0xff]  ;;  %v2730_v29 = vld [vmem:[#allocation5 + $0x24] sm:$0xf0]  ;;  %v2381_v31 = vld [vmem:[#allocation5 + $0x10] sm:$0xf]  ;;  %s2172_s29 = sshll.u32 %s3949_s9, 4  ;;  %s2173_s29 = int_to_ptr.vmem [resolvable:$true] %s2172_s29 }
  0x3d   : > { %430 = vmatpush.bf16.msra.mxu0 %v2326_v13  ;;  %2838 = vmatpush.bf16.msra.mxu3 %v2326_v13  ;;  %v2390_v30 = vor.u32 %v2730_v29, %v2389_v28  ;;  %v2728_v32 = vld [vmem:[#allocation5 + $0x14] sm:$0xf0]  ;;  %v2373_v34 = vld [vmem:[#allocation5] sm:$0xf]  ;;  %v2726_v35 = vld [vmem:[#allocation5 + $0x4] sm:$0xf0] }
  0x3e   : > { %v2382_v33 = vor.u32 %v2728_v32, %v2381_v31  ;;  %v2739_v36 = vld [vmem:[#allocation5 + $0x74] sm:$0xf]  ;;  %v2431_v37 = vld [vmem:[#allocation5 + $0x78] sm:$0xf0]  ;;  %v2374_v38 = vor.u32 %v2726_v35, %v2373_v34  ;;  %v2737_v40 = vld [vmem:[#allocation5 + $0x64] sm:$0xf] }
  0x3f   : > { %v2434_v39 = vor.u32 %v2739_v36, %v2431_v37  ;;  %v2423_v41 = vld [vmem:[#allocation5 + $0x68] sm:$0xf0]  ;;  %v3342_v42 = vld [vmem:[%s3293_s23 + $0x20] sm:$0xff]  ;;  %v2735_v45 = vld [vmem:[#allocation5 + $0x54] sm:$0xf]  ;;  %s2174_s8 = sshll.u32 %s2171_s15, 4  ;;  %s2175_s8 = int_to_ptr.hbm [resolvable:$true] %s2174_s8 }
  0x40   : > { %2843 = vmatpush.bf16.msra.mxu2 %v2414_v16  ;;  %652 = vmatpush.bf16.msra.mxu1 %v2414_v16  ;;  %v2698_v43 = vld [vmem:[%s3337_s17 + $0x8] sm:$0xff]  ;;  %v2426_v44 = vor.u32 %v2737_v40, %v2423_v41  ;;  %v2415_v46 = vld [vmem:[#allocation5 + $0x58] sm:$0xf0]  ;;  %v2763_v47 = vld [vmem:[#allocation5 + $0xf4] sm:$0xf]  ;;  %s2160_s22 = scalar_lea.sflag [#allocation4], %s3289_s13 }
  0x41   : > { %431 = vmatpush.bf16.msra.mxu0 %v2322_v19  ;;  %2839 = vmatpush.bf16.msra.mxu3 %v2322_v19  ;;  %v2543_v48 = vld [vmem:[#allocation5 + $0xf8] sm:$0xf0]  ;;  %v2418_v49 = vor.u32 %v2735_v45, %v2415_v46  ;;  %v2761_v51 = vld [vmem:[#allocation5 + $0xe4] sm:$0xf]  ;;  %v2535_v52 = vld [vmem:[#allocation5 + $0xe8] sm:$0xf0] }
  0x42   : > { %v2546_v50 = vor.u32 %v2763_v47, %v2543_v48  ;;  %v2733_v53 = vld [vmem:[#allocation5 + $0x44] sm:$0xf]  ;;  %v2407_v54 = vld [vmem:[#allocation5 + $0x48] sm:$0xf0]  ;;  %v2538_v55 = vor.u32 %v2761_v51, %v2535_v52  ;;  %v2759_v56 = vld [vmem:[#allocation5 + $0xd4] sm:$0xf] }
  0x43   : > { %v2527_v57 = vld [vmem:[#allocation5 + $0xd8] sm:$0xf0]  ;;  %v2410_v58 = vor.u32 %v2733_v53, %v2407_v54  ;;  %v2731_v59 = vld [vmem:[#allocation5 + $0x34] sm:$0xf]  ;;  %v2729_v63 = vld [vmem:[#allocation5 + $0x24] sm:$0xf] }
  0x44   : > { %2844 = vmatpush.bf16.msra.mxu2 %v2406_v22  ;;  %653 = vmatpush.bf16.msra.mxu1 %v2406_v22  ;;  %v2399_v60 = vld [vmem:[#allocation5 + $0x38] sm:$0xf0]  ;;  %v2530_v61 = vor.u32 %v2759_v56, %v2527_v57  ;;  %v2391_v0 = vld [vmem:[#allocation5 + $0x28] sm:$0xf0]  ;;  %v2699_v2 = vld [vmem:[%s3337_s17 + $0x10] sm:$0xff]  ;;  %s3092_s11 = sshra.s32 %s2175_s8, 4  ;;  %s3093_s11 = int_to_ptr.hbm [resolvable:$true] %s3092_s11 }
  0x45   : > { %432 = vmatpush.bf16.msra.mxu0 %v2318_v25  ;;  %2840 = vmatpush.bf16.msra.mxu3 %v2318_v25  ;;  %v2402_v62 = vor.u32 %v2731_v59, %v2399_v60  ;;  %v3348_v1 = vld [vmem:[%s3293_s23 + $0x28] sm:$0xff]  ;;  %v2394_v3 = vor.u32 %v2729_v63, %v2391_v0  ;;  %v2727_v4 = vld [vmem:[#allocation5 + $0x14] sm:$0xf]  ;;  %v2383_v5 = vld [vmem:[#allocation5 + $0x18] sm:$0xf0]  ;;  %s3094_s16 = scalar_lea.hbm %s3093_s11, 64  ;;  %p3099_p7 = scmp.lt.s32.totalorder %s3093_s11, %s4076_s5 }
  0x46   : > { %v2757_v6 = vld [vmem:[#allocation5 + $0xc4] sm:$0xf]  ;;  %v2519_v7 = vld [vmem:[#allocation5 + $0xc8] sm:$0xf0]  ;;  %v2755_v8 = vld [vmem:[#allocation5 + $0xb4] sm:$0xf]  ;;  %v2386_v9 = vor.u32 %v2727_v4, %v2383_v5  ;;  %p3095_p4 = scmp.ne.s32.totalorder %s3093_s11, %s3094_s16 }
  0x47   : > { %v2522_v10 = vor.u32 %v2757_v6, %v2519_v7  ;;  %v2511_v11 = vld [vmem:[#allocation5 + $0xb8] sm:$0xf0]  ;;  %v2725_v12 = vld [vmem:[#allocation5 + $0x4] sm:$0xf]  ;;  %v2375_v13 = vld [vmem:[#allocation5 + $0x8] sm:$0xf0] }
  0x48   : > { %2845 = vmatpush.bf16.msra.mxu2 %v2398_v26  ;;  %2331 = vmatmul.msk.bf16.vlgmr.msra.gmra.mxu0 %vm400_vm0, %v2697_v27  ;;  %v2514_v14 = vor.u32 %v2755_v8, %v2511_v11  ;;  %v2717_v15 = vld [vmem:[%s3293_s23] sm:$0xff]  ;;  %v2503_v17 = vld [vmem:[#allocation5 + $0xa8] sm:$0xf0]  ;;  %v2378_v18 = vor.u32 %v2725_v12, %v2375_v13  ;;  %v2751_v20 = vld [vmem:[#allocation5 + $0x94] sm:$0xf]  ;;  %p3096_p5 = pnand %p3095_p4, %p3243_p11  ;;  %s3098_s25 = scalar_lea.hbm %s4076_s5, 128 }
  0x49   : > { %654 = vmatpush.bf16.msra.mxu1 %v2398_v26  ;;  %1039 = vmatpush.bf16.msrb.mxu0 %v2546_v50  ;;  %v2753_v16 = vld [vmem:[#allocation5 + $0xa4] sm:$0xf]  ;;  %v2495_v21 = vld [vmem:[#allocation5 + $0x98] sm:$0xf0]  ;;  %v3355_v22 = vld [vmem:[%s3293_s23 + $0x30] sm:$0xff]  ;;  %p3100_p8 = scmp.lt.s32.totalorder %s3098_s25, %s3094_s16 }
  0x4a   : > { %v2506_v19 = vor.u32 %v2753_v16, %v2503_v17  ;;  %v2498_v23 = vor.u32 %v2751_v20, %v2495_v21  ;;  %v2700_v24 = vld [vmem:[%s3337_s17 + $0x18] sm:$0xff]  ;;  %v2787_v25 = vld [vmem:[#allocation5 + $0x174] sm:$0xf]  ;;  %v2749_v27 = vld [vmem:[#allocation5 + $0x84] sm:$0xf]  ;;  %p3097_p6 = pneg %p3096_p5 }
  0x4b   : > { %v2655_v26 = vld [vmem:[#allocation5 + $0x178] sm:$0xf0]  ;;  %v2487_v29 = vld [vmem:[#allocation5 + $0x88] sm:$0xf0]  ;;  %v2785_v34 = vld [vmem:[#allocation5 + $0x164] sm:$0xf]  ;;  %p3101_p9 = por %p3100_p8, %p3099_p7 }
  0x4c   : > { %2846 = vmatpush.bf16.msra.mxu2 %v2390_v30  ;;  %v2658_v28 = vor.u32 %v2787_v25, %v2655_v26  ;;  %v2718_v31 = vld [vmem:[%s3293_s23 + $0x8] sm:$0xff]  ;;  %v3362_v32 = vld [vmem:[%s3293_s23 + $0x38] sm:$0xff]  ;;  %v2719_v37 = vld [vmem:[%s3293_s23 + $0x10] sm:$0xff] }
  0x4d   : > { %655 = vmatpush.bf16.msra.mxu1 %v2390_v30  ;;  %1040 = vmatpush.bf16.msrb.mxu0 %v2538_v55  ;;  %v2490_v30 = vor.u32 %v2749_v27, %v2487_v29  ;;  %v2647_v35 = vld [vmem:[#allocation5 + $0x168] sm:$0xf0]  ;;  %v2639_v40 = vld [vmem:[#allocation5 + $0x158] sm:$0xf0]  ;;  %v2781_v45 = vld [vmem:[#allocation5 + $0x144] sm:$0xf]  ;;  %p3102_p10 = pnand %p3101_p9, %p3097_p6 }
  0x4e   : > { %v2650_v36 = vor.u32 %v2785_v34, %v2647_v35  ;;  %v2631_v46 = vld [vmem:[#allocation5 + $0x148] sm:$0xf0]  ;;  %v3378_v48 = vld [vmem:[%s3293_s23 + $0x50] sm:$0xff]  ;;  %v2623_v50 = vld [vmem:[#allocation5 + $0x138] sm:$0xf0] }
  0x4f   : > { %v2634_v47 = vor.u32 %v2781_v45, %v2631_v46  ;;  %v3382_v52 = vld [vmem:[%s3293_s23 + $0x58] sm:$0xff]  ;;  %v2702_v53 = vld [vmem:[%s3337_s17 + $0x28] sm:$0xff]  ;;  %v2777_v54 = vld [vmem:[#allocation5 + $0x124] sm:$0xf] }
  0x50   : > { %2847 = vmatpush.bf16.msra.mxu2 %v2382_v33  ;;  %2336 = vmatmul.msk.bf16.vlgmr.msra.gmra.mxu3 %vm400_vm0, %v2702_v53  ;;  %v2615_v55 = vld [vmem:[#allocation5 + $0x128] sm:$0xf0]  ;;  %v3388_v57 = vld [vmem:[%s3293_s23 + $0x60] sm:$0xff]  ;;  %v2775_v59 = vld [vmem:[#allocation5 + $0x114] sm:$0xf] }
  0x51   : > { %656 = vmatpush.bf16.msra.mxu1 %v2382_v33  ;;  %1041 = vmatpush.bf16.msrb.mxu0 %v2530_v61  ;;  %v2701_v33 = vld [vmem:[%s3337_s17 + $0x20] sm:$0xff]  ;;  %v2618_v56 = vor.u32 %v2777_v54, %v2615_v55  ;;  %v2607_v60 = vld [vmem:[#allocation5 + $0x118] sm:$0xf0]  ;;  %v3399_v0 = vld [vmem:[%s3293_s23 + $0x68] sm:$0xff] }
  0x52   : > { %v2610_v61 = vor.u32 %v2775_v59, %v2607_v60  ;;  %v2653_v6 = vld [vmem:[#allocation5 + $0x170] sm:$0xf]  ;;  %v2788_v7 = vld [vmem:[#allocation5 + $0x174] sm:$0xf0]  ;;  %v2645_v12 = vld [vmem:[#allocation5 + $0x160] sm:$0xf] }
  0x53   : > { %v2654_v8 = vor.u32 %v2788_v7, %v2653_v6  ;;  %v2541_v11 = vld [vmem:[#allocation5 + $0xf0] sm:$0xf]  ;;  %v2760_v26 = vld [vmem:[#allocation5 + $0xd4] sm:$0xf0]  ;;  %v2517_v29 = vld [vmem:[#allocation5 + $0xc0] sm:$0xf] }
  0x54   : > { %2848 = vmatpush.bf16.msra.mxu2 %v2374_v38  ;;  %v2637_v21 = vld [vmem:[#allocation5 + $0x150] sm:$0xf]  ;;  %v2629_v34 = vld [vmem:[#allocation5 + $0x140] sm:$0xf]  ;;  %v2782_v35 = vld [vmem:[#allocation5 + $0x144] sm:$0xf0] }
  0x55   : > { %657 = vmatpush.bf16.msra.mxu1 %v2374_v38  ;;  %1042 = vmatpush.bf16.msrb.mxu0 %v2522_v10  ;;  %v3369_v38 = vld [vmem:[%s3293_s23 + $0x40] sm:$0xff]  ;;  %v3410_v10 = vld [vmem:[%s3293_s23 + $0x70] sm:$0xff]  ;;  %v2754_v45 = vld [vmem:[#allocation5 + $0xa4] sm:$0xf0] }
  0x56   : > { %v2621_v46 = vld [vmem:[#allocation5 + $0x130] sm:$0xf]  ;;  %v2752_v53 = vld [vmem:[#allocation5 + $0x94] sm:$0xf0]  ;;  %v2765_v54 = vld [vmem:[%s3293_s23 + $0x80] sm:$0xff] }
  0x57   : > { %678 = vmatmul.bf16.vlgmr.msra.gmra.mxu2 %v3342_v42  ;;  %v2485_v59 = vld [vmem:[#allocation5 + $0x80] sm:$0xf]  ;;  %v2776_v6 = vld [vmem:[#allocation5 + $0x114] sm:$0xf0] }
  0x58   : > { %699 = vmatpush.bf16.msrb.mxu2 %v2434_v39  ;;  %2332 = vmatmul.msk.bf16.gmra.mxu0 %vm400_vm0, %v2698_v43  ;;  %v2783_v39 = vld [vmem:[#allocation5 + $0x154] sm:$0xf]  ;;  %v2720_v43 = vld [vmem:[%s3293_s23 + $0x18] sm:$0xff] }
  0x59   : > { %658 = vmatmul.bf16.vlgmr.msra.gmra.mxu1 %v2717_v15  ;;  %1043 = vmatpush.bf16.msrb.mxu0 %v2514_v14  ;;  %v2642_v41 = vor.u32 %v2783_v39, %v2639_v40  ;;  %v2786_v14 = vld [vmem:[#allocation5 + $0x164] sm:$0xf0]  ;;  %v2509_v39 = vld [vmem:[#allocation5 + $0xb0] sm:$0xf]  ;;  %v2756_v40 = vld [vmem:[#allocation5 + $0xb4] sm:$0xf0] }
  0x5a   : > { %1330 = vmatpush.bf16.msrb.mxu1 %v2654_v8  ;;  %v2597_v8 = vld [vmem:[#allocation5 + $0x100] sm:$0xf] }
  0x5c   : > { %700 = vmatpush.bf16.msrb.mxu2 %v2426_v44  ;;  %v3374_v44 = vld [vmem:[%s3293_s23 + $0x48] sm:$0xff] }
  0x5d   : > { %1044 = vmatpush.bf16.msrb.mxu0 %v2506_v19  ;;  %v2762_v19 = vld [vmem:[#allocation5 + $0xe4] sm:$0xf0] }
  0x60   : > { %701 = vmatpush.bf16.msrb.mxu2 %v2418_v49  ;;  %v2779_v49 = vld [vmem:[#allocation5 + $0x134] sm:$0xf] }
  0x61   : > { %1045 = vmatpush.bf16.msrb.mxu0 %v2498_v23  ;;  %v2626_v51 = vor.u32 %v2779_v49, %v2623_v50  ;;  %v2784_v23 = vld [vmem:[#allocation5 + $0x154] sm:$0xf0] }
  0x62   : > { %v2638_v25 = vor.u32 %v2784_v23, %v2637_v21  ;;  %v2715_v23 = vld [vmem:[%s4075_s4 + $0x30] sm:$0xff] }
  0x64   : > { %702 = vmatpush.bf16.msrb.mxu2 %v2410_v58  ;;  %v2703_v58 = vld [vmem:[%s3337_s17 + $0x30] sm:$0xff] }
  0x65   : > { %1046 = vmatpush.bf16.msrb.mxu0 %v2490_v30  ;;  %2337 = vmatmul.msk.bf16.gmra.mxu3 %vm400_vm0, %v2703_v58  ;;  %v2758_v30 = vld [vmem:[#allocation5 + $0xc4] sm:$0xf0] }
  0x66   : > { %v2778_v58 = vld [vmem:[#allocation5 + $0x124] sm:$0xf0] }
  0x67   : > { %683 = vmatmul.bf16.gmra.mxu2 %v3348_v1 }
  0x68   : > { %703 = vmatpush.bf16.msrb.mxu2 %v2402_v62  ;;  %2333 = vmatmul.msk.bf16.gmra.mxu0 %vm400_vm0, %v2699_v2  ;;  %v2704_v2 = vld [vmem:[%s3337_s17 + $0x38] sm:$0xff] }
  0x69   : > { %663 = vmatmul.bf16.gmra.mxu1 %v2718_v31 }
  0x6c   : > { %704 = vmatpush.bf16.msrb.mxu2 %v2394_v3  ;;  %v2599_v3 = vld [vmem:[#allocation5 + $0x108] sm:$0xf0] }
  0x70   : > { %705 = vmatpush.bf16.msrb.mxu2 %v2386_v9 }
  0x74   : > { %706 = vmatpush.bf16.msrb.mxu2 %v2378_v18  ;;  %v2533_v18 = vld [vmem:[#allocation5 + $0xe0] sm:$0xf] }
  0x75   : > { %2338 = vmatmul.msk.bf16.gmra.mxu3 %vm400_vm0, %v2704_v2  ;;  %v2534_v20 = vor.u32 %v2762_v19, %v2533_v18 }
  0x77   : > { %688 = vmatmul.bf16.gmra.mxu2 %v3355_v22 }
  0x78   : > { %2334 = vmatmul.msk.bf16.gmra.mxu0 %vm400_vm0, %v2700_v24  ;;  %1379 = vmatpush.bf16.msra.mxu2 %v2658_v28  ;;  %v2525_v24 = vld [vmem:[#allocation5 + $0xd0] sm:$0xf]  ;;  %v3421_v28 = vld [vmem:[%s3293_s23 + $0x78] sm:$0xff] }
  0x79   : > { %668 = vmatmul.bf16.gmra.mxu1 %v2719_v37  ;;  %v2526_v27 = vor.u32 %v2760_v26, %v2525_v24  ;;  %v2768_v26 = vld [vmem:[%s3293_s23 + $0x98] sm:$0xff] }
  0x7c   : > { %1380 = vmatpush.bf16.msra.mxu2 %v2650_v36  ;;  %v2630_v36 = vor.u32 %v2782_v35, %v2629_v34  ;;  %v2713_v35 = vld [vmem:[%s4075_s4 + $0x20] sm:$0xff] }
  0x80   : > { %1381 = vmatpush.bf16.msra.mxu2 %v2642_v41  ;;  %v2510_v41 = vor.u32 %v2756_v40, %v2509_v39 }
  0x84   : > { %1382 = vmatpush.bf16.msra.mxu2 %v2634_v47  ;;  %v2780_v47 = vld [vmem:[#allocation5 + $0x134] sm:$0xf0] }
  0x85   : > { %v2622_v49 = vor.u32 %v2780_v47, %v2621_v46 }
  0x87   : > { %693 = vmatmul.bf16.gmra.mxu2 %v3362_v32 }
  0x88   : > { %2335 = vmatmul.msk.bf16.gmra.mxu0 %vm400_vm0, %v2701_v33  ;;  %1383 = vmatpush.bf16.msra.mxu2 %v2626_v51  ;;  %v2493_v51 = vld [vmem:[#allocation5 + $0x90] sm:$0xf] }
  0x89   : > { %673 = vmatmul.bf16.gmra.mxu1 %v2720_v43  ;;  %v2494_v55 = vor.u32 %v2752_v53, %v2493_v51  ;;  %v2771_v51 = vld [vmem:[%s3293_s23 + $0xb0] sm:$0xff] }
  0x8c   : > { %1384 = vmatpush.bf16.msra.mxu2 %v2618_v56  ;;  %v2613_v56 = vld [vmem:[#allocation5 + $0x120] sm:$0xf] }
  0x8d   : > { %v2614_v60 = vor.u32 %v2778_v58, %v2613_v56 }
  0x90   : > { %1385 = vmatpush.bf16.msra.mxu2 %v2610_v61  ;;  %v2750_v61 = vld [vmem:[#allocation5 + $0x84] sm:$0xf0] }
  0x91   : > { %v2486_v2 = vor.u32 %v2750_v61, %v2485_v59 }
  0x97   : > { %707 = vmatmul.bf16.vlgmr.msrb.gmra.mxu2 %v2717_v15  ;;  %v2646_v15 = vor.u32 %v2786_v14, %v2645_v12 }
  0x98   : > { %1047 = vmatmul.bf16.vlgmr.msrb.gmra.mxu0 %v3369_v38 }
  0x99   : > { %1331 = vmatpush.bf16.msrb.mxu1 %v2646_v15  ;;  %v2716_v15 = vld [vmem:[%s4075_s4 + $0x38] sm:$0xff] }
  0x9a   : > { %1909 = vmatpush.bf16.msra.mxu0 %v2716_v15 }
  0x9d   : > { %1332 = vmatpush.bf16.msrb.mxu1 %v2638_v25 }
  0x9e   : > { %1910 = vmatpush.bf16.msra.mxu0 %v2715_v23 }
  0xa1   : > { %1333 = vmatpush.bf16.msrb.mxu1 %v2630_v36 }
  0xa5   : > { %1334 = vmatpush.bf16.msrb.mxu1 %v2622_v49 }
  0xa7   : > { %712 = vmatmul.bf16.gmra.mxu2 %v2718_v31  ;;  %v2518_v31 = vor.u32 %v2758_v30, %v2517_v29 }
  0xa8   : > { %1052 = vmatmul.bf16.gmra.mxu0 %v3374_v44 }
  0xa9   : > { %1335 = vmatpush.bf16.msrb.mxu1 %v2614_v60  ;;  %v2772_v60 = vld [vmem:[%s3293_s23 + $0xb8] sm:$0xff] }
  0xb7   : > { %717 = vmatmul.bf16.gmra.mxu2 %v2719_v37 }
  0xb8   : > { %1057 = vmatmul.bf16.gmra.mxu0 %v3378_v48 }
  0xc5   : > { %v3416_v17 = vpop.f32.mrf.mxu0 }
  0xc7   : > { %722 = vmatmul.bf16.gmra.mxu2 %v2720_v43  ;;  %v2501_v43 = vld [vmem:[#allocation5 + $0xa0] sm:$0xf] }
  0xc8   : > { %1062 = vmatmul.bf16.gmra.mxu0 %v3382_v52 }
  0xcd   : > { %v3424_v33 = vpop.f32.mrf.mxu0 }
  0xd7   : > { %727 = vmatmul.bf16.gmra.mxu2 %v3342_v42  ;;  %v2773_v42 = vld [vmem:[#allocation5 + $0x104] sm:$0xf] }
  0xd8   : > { %1067 = vmatmul.bf16.gmra.mxu0 %v3388_v57  ;;  %v2602_v4 = vor.u32 %v2773_v42, %v2599_v3  ;;  %v3432_v42 = vpop.f32.mrf.mxu0 }
  0xda   : > { %v3394_v62 = vpop.f32.mrf.mxu2  ;;  %1386 = vmatpush.bf16.msra.mxu2 %v2602_v4  ;;  %v2605_v4 = vld [vmem:[#allocation5 + $0x110] sm:$0xf] }
  0xdb   : > { %4083 = vst [vmem:[#allocation14_spill] sm:$0xff] %v3394_v62  ;;  %v2606_v7 = vor.u32 %v2776_v6, %v2605_v4 }
  0xdd   : > { %1336 = vmatpush.bf16.msrb.mxu1 %v2606_v7 }
  0xe0   : > { %v3440_v14 = vpop.f32.mrf.mxu0 }
  0xe2   : > { %v3396_v63 = vpop.f32.mrf.mxu2 }
  0xe3   : > { %4084 = vst [vmem:[#allocation15_spill] sm:$0xff] %v3396_v63 }
  0xe7   : > { %732 = vmatmul.bf16.gmra.mxu2 %v3348_v1  ;;  %v2764_v1 = vld [vmem:[#allocation5 + $0xf4] sm:$0xf0] }
  0xe8   : > { %1072 = vmatmul.bf16.gmra.mxu0 %v3399_v0  ;;  %v2542_v13 = vor.u32 %v2764_v1, %v2541_v11  ;;  %v2774_v11 = vld [vmem:[#allocation5 + $0x104] sm:$0xf0] }
  0xe9   : > { %v2598_v1 = vor.u32 %v2774_v11, %v2597_v8 }
  0xea   : > { %v3405_v5 = vpop.f32.mrf.mxu2  ;;  %990 = vmatpush.bf16.msrb.mxu3 %v2542_v13  ;;  %v2766_v13 = vld [vmem:[%s3293_s23 + $0x88] sm:$0xff] }
  0xeb   : > { %4085 = vst [vmem:[#allocation16_spill] sm:$0xff] %v3405_v5  ;;  %1337 = vmatpush.bf16.msrb.mxu1 %v2598_v1 }
  0xee   : > { %991 = vmatpush.bf16.msrb.mxu3 %v2534_v20  ;;  %1338 = vmatmul.bf16.vlgmr.msrb.gmra.mxu1 %v2765_v54  ;;  %v2767_v20 = vld [vmem:[%s3293_s23 + $0x90] sm:$0xff] }
  0xef   : > { %2030 = vmatpush.bf16.msra.mxu1 %v2716_v15 }
  0xf2   : > { %v3407_v9 = vpop.f32.mrf.mxu2  ;;  %992 = vmatpush.bf16.msrb.mxu3 %v2526_v27  ;;  %v2714_v27 = vld [vmem:[%s4075_s4 + $0x28] sm:$0xff] }
  0xf3   : > { %4086 = vst [vmem:[#allocation17_spill] sm:$0xff] %v3407_v9  ;;  %2031 = vmatpush.bf16.msra.mxu1 %v2715_v23  ;;  %1911 = vmatpush.bf16.msra.mxu0 %v2714_v27 }
  0xf6   : > { %993 = vmatpush.bf16.msrb.mxu3 %v2518_v31  ;;  %v2769_v31 = vld [vmem:[%s3293_s23 + $0xa0] sm:$0xff] }
  0xf7   : > { %737 = vmatmul.bf16.gmra.mxu2 %v3355_v22  ;;  %2032 = vmatpush.bf16.msra.mxu1 %v2714_v27 }
  0xf8   : > { %1077 = vmatmul.bf16.gmra.mxu0 %v3410_v10 }
  0xf9   : > { %1912 = vmatpush.bf16.msra.mxu0 %v2713_v35 }
  0xfa   : > { %v3414_v16 = vpop.f32.mrf.mxu2  ;;  %994 = vmatpush.bf16.msrb.mxu3 %v2510_v41  ;;  %v2770_v41 = vld [vmem:[%s3293_s23 + $0xa8] sm:$0xff] }
  0xfb   : > { %4087 = vst [vmem:[#allocation18_spill] sm:$0xff] %v3414_v16  ;;  %2033 = vmatpush.bf16.msra.mxu1 %v2713_v35 }
  0xfe   : > { %1343 = vmatmul.bf16.gmra.mxu1 %v2766_v13 }
 0x102   : > { %v3418_v22 = vpop.f32.mrf.mxu2 }
 0x103   : > { %4088 = vst [vmem:[#allocation19_spill] sm:$0xff] %v3418_v22 }
 0x107   : > { %742 = vmatmul.bf16.gmra.mxu2 %v3362_v32  ;;  %v2502_v32 = vor.u32 %v2754_v45, %v2501_v43  ;;  %v2712_v43 = vld [vmem:[%s4075_s4 + $0x18] sm:$0xff] }
 0x108   : > { %1082 = vmatmul.bf16.gmra.mxu0 %v3421_v28  ;;  %2034 = vmatpush.bf16.msra.mxu1 %v2712_v43 }
 0x109   : > { %995 = vmatpush.bf16.msrb.mxu3 %v2502_v32  ;;  %1913 = vmatpush.bf16.msra.mxu0 %v2712_v43 }
 0x10a   : > { %v3427_v37 = vpop.f32.mrf.mxu2 }
 0x10b   : > { %4089 = vst [vmem:[#allocation20_spill] sm:$0xff] %v3427_v37 }
 0x10d   : > { %996 = vmatpush.bf16.msrb.mxu3 %v2494_v55 }
 0x10e   : > { %1348 = vmatmul.bf16.gmra.mxu1 %v2767_v20 }
 0x111   : > { %997 = vmatpush.bf16.msrb.mxu3 %v2486_v2 }
 0x112   : > { %v3429_v50 = vpop.f32.mrf.mxu2 }
 0x113   : > { %4090 = vst [vmem:[#allocation21_spill] sm:$0xff] %v3429_v50 }
 0x114   : > { %998 = vmatmul.bf16.vlgmr.msrb.gmra.mxu3 %v3369_v38  ;;  %v3448_v38 = vpop.f32.mrf.mxu0 }
 0x115   : > { %1804 = vmatpush.bf16.msra.mxu3 %v2716_v15 }
 0x117   : > { %1387 = vmatmul.bf16.vlgmr.msra.gmra.mxu2 %v2765_v54  ;;  %v2711_v54 = vld [vmem:[%s4075_s4 + $0x10] sm:$0xff] }
 0x118   : > { %1914 = vmatpush.bf16.msra.mxu0 %v2711_v54  ;;  %2035 = vmatpush.bf16.msra.mxu1 %v2711_v54 }
 0x119   : > { %1805 = vmatpush.bf16.msra.mxu3 %v2715_v23 }
 0x11a   : > { %v3434_v3 = vpop.f32.mrf.mxu2 }
 0x11b   : > { %v748_v1 = vadd.f32 %v3434_v3, %v3416_v17  ;;  %v2710_v3 = vld [vmem:[%s4075_s4 + $0x8] sm:$0xff] }
 0x11c   : > { %v3453_v21 = vpop.f32.mrf.mxu0  ;;  %1915 = vmatpush.bf16.msra.mxu0 %v2710_v3  ;;  %2036 = vmatpush.bf16.msra.mxu1 %v2710_v3 }
 0x11d   : > { %1806 = vmatpush.bf16.msra.mxu3 %v2714_v27  ;;  %vm764_vm1 = vcmp.gt.f32.partialorder %v748_v1, 0.0 }
 0x11e   : > { %1353 = vmatmul.bf16.gmra.mxu1 %v2768_v26 }
 0x121   : > { %1807 = vmatpush.bf16.msra.mxu3 %v2713_v35 }
 0x122   : > { %v3437_v12 = vpop.f32.mrf.mxu2 }
 0x123   : > { %v749_v27 = vadd.f32 %v3437_v12, %v3424_v33 }
 0x124   : > { %1003 = vmatmul.bf16.gmra.mxu3 %v3374_v44  ;;  %v3461_v44 = vpop.f32.mrf.mxu0 }
 0x125   : > { %1808 = vmatpush.bf16.msra.mxu3 %v2712_v43  ;;  %vm765_vm5 = vcmp.gt.f32.partialorder %v749_v27, 0.0 }
 0x127   : > { %1392 = vmatmul.bf16.gmra.mxu2 %v2766_v13 }
 0x129   : > { %1809 = vmatpush.bf16.msra.mxu3 %v2711_v54 }
 0x12a   : > { %v3445_v18 = vpop.f32.mrf.mxu2 }
 0x12c   : > { %v3471_v30 = vpop.f32.mrf.mxu0 }
 0x12d   : > { %1810 = vmatpush.bf16.msra.mxu3 %v2710_v3 }
 0x12e   : > { %1358 = vmatmul.bf16.gmra.mxu1 %v2769_v31 }
 0x132   : > { %v3450_v19 = vpop.f32.mrf.mxu2 }
 0x134   : > { %1008 = vmatmul.bf16.gmra.mxu3 %v3378_v48  ;;  %v3477_v34 = vpop.f32.mrf.mxu0 }
 0x137   : > { %1397 = vmatmul.bf16.gmra.mxu2 %v2767_v20  ;;  %v780_v20 = vmul.f32 0.2, %v748_v1 }
 0x139   : > { %v796_v35 = vsel %vm764_vm1, %v748_v1, %v780_v20 }
 0x13a   : > { %v3458_v24 = vpop.f32.mrf.mxu2 }
 0x13c   : > { %v3485_v39 = vpop.f32.mrf.mxu0 }
 0x13e   : > { %1363 = vmatmul.bf16.gmra.mxu1 %v2770_v41 }
 0x142   : > { %v3463_v25 = vpop.f32.mrf.mxu2 }
 0x144   : > { %1013 = vmatmul.bf16.gmra.mxu3 %v3382_v52  ;;  %v3487_v52 = vpop.f32.mrf.mxu1  ;;  %v1048_v32 = vpop.f32.mrf.mxu0 }
 0x145   : > { %v1088_v13 = vadd.f32 %v1048_v32, %v3416_v17 }
 0x147   : > { %1402 = vmatmul.bf16.gmra.mxu2 %v2768_v26  ;;  %v1120_v23 = vmul.f32 0.2, %v1088_v13  ;;  %vm1104_vm2 = vcmp.gt.f32.partialorder %v1088_v13, 0.0 }
 0x14a   : > { %v3469_v29 = vpop.f32.mrf.mxu2 }
 0x14c   : > { %v3495_v45 = vpop.f32.mrf.mxu1  ;;  %v1050_v53 = vpop.f32.mrf.mxu0 }
 0x14e   : > { %1368 = vmatmul.bf16.gmra.mxu1 %v2771_v51 }
 0x152   : > { %v3474_v48 = vpop.f32.mrf.mxu2 }
 0x154   : > { %1018 = vmatmul.bf16.gmra.mxu3 %v3388_v57  ;;  %v3500_v57 = vpop.f32.mrf.mxu3  ;;  %v3502_v47 = vpop.f32.mrf.mxu1 }
 0x155   : > { %4091 = vst [vmem:[#allocation22_spill] sm:$0xff] %v3502_v47  ;;  %v1053_v58 = vpop.f32.mrf.mxu0 }
 0x156   : > { %v1090_v1 = vadd.f32 %v1053_v58, %v3432_v42 }
 0x157   : > { %1407 = vmatmul.bf16.gmra.mxu2 %v2769_v31 }
 0x158   : > { %vm1106_vm8 = vcmp.gt.f32.partialorder %v1090_v1, 0.0 }
 0x15a   : > { %v3482_v36 = vpop.f32.mrf.mxu2 }
 0x15c   : > { %v3510_v55 = vpop.f32.mrf.mxu1  ;;  %v3512_v56 = vpop.f32.mrf.mxu3 }
 0x15d   : > { %4092 = vst [vmem:[#allocation23_spill] sm:$0xff] %v3510_v55  ;;  %v3524_v4 = vpop.f32.mrf.mxu0 }
 0x15e   : > { %1373 = vmatmul.bf16.gmra.mxu1 %v2772_v60 }
 0x162   : > { %v3489_v40 = vpop.f32.mrf.mxu2 }
 0x164   : > { %1023 = vmatmul.bf16.gmra.mxu3 %v3399_v0  ;;  %v3520_v61 = vpop.f32.mrf.mxu1  ;;  %v3522_v2 = vpop.f32.mrf.mxu3 }
 0x165   : > { %4093 = vst [vmem:[#allocation24_spill] sm:$0xff] %v3520_v61 }
 0x167   : > { %1412 = vmatmul.bf16.gmra.mxu2 %v2770_v41  ;;  %v1136_v41 = vsel %vm1104_vm2, %v1088_v13, %v1120_v23  ;;  %v2709_v23 = vld [vmem:[%s4075_s4] sm:$0xff] }
 0x168   : > { %v1508_v12 = vmax.f32 %v796_v35, %v1136_v41  ;;  %1811 = vmatpush.bf16.msra.mxu3 %v2709_v23  ;;  %1916 = vmatpush.bf16.msra.mxu0 %v2709_v23 }
 0x169   : > { %2037 = vmatpush.bf16.msra.mxu1 %v2709_v23 }
 0x16a   : > { %v3497_v46 = vpop.f32.mrf.mxu2 }
 0x16c   : > { %v3528_v7 = vpop.f32.mrf.mxu1  ;;  %v3531_v8 = vpop.f32.mrf.mxu3 }
 0x16d   : > { %4094 = vst [vmem:[#allocation25_spill] sm:$0xff] %v3528_v7 }
 0x172   : > { %v3504_v49 = vpop.f32.mrf.mxu2 }
 0x174   : > { %1028 = vmatmul.bf16.gmra.mxu3 %v3410_v10  ;;  %v3533_v10 = vpop.f32.mrf.mxu0  ;;  %v3540_v15 = vpop.f32.mrf.mxu1 }
 0x175   : > { %4095 = vst [vmem:[#allocation26_spill] sm:$0xff] %v3540_v15  ;;  %v3542_v26 = vpop.f32.mrf.mxu3 }
 0x177   : > { %1417 = vmatmul.bf16.gmra.mxu2 %v2771_v51 }
 0x17a   : > { %v3514_v0 = vpop.f32.mrf.mxu2 }
 0x17c   : > { %v3551_v32 = vpop.f32.mrf.mxu1  ;;  %v3553_v51 = vpop.f32.mrf.mxu0 }
 0x17d   : > { %4096 = vst [vmem:[#allocation27_spill] sm:$0xff] %v3551_v32  ;;  %v3561_v37 = vpop.f32.mrf.mxu3 }
 0x182   : > { %v3517_v59 = vpop.f32.mrf.mxu2 }
 0x184   : > { %1033 = vmatmul.bf16.gmra.mxu3 %v3421_v28  ;;  %v1089_v28 = vadd.f32 %v1050_v53, %v3424_v33  ;;  %v3564_v58 = vpop.f32.mrf.mxu1 }
 0x186   : > { %v1121_v54 = vmul.f32 0.2, %v1089_v28  ;;  %vm1105_vm4 = vcmp.gt.f32.partialorder %v1089_v28, 0.0 }
 0x187   : > { %1422 = vmatmul.bf16.gmra.mxu2 %v2772_v60  ;;  %v781_v60 = vmul.f32 0.2, %v749_v27 }
 0x188   : > { %v1137_v20 = vsel %vm1105_vm4, %v1089_v28, %v1121_v54  ;;  %v1122_v28 = vmul.f32 0.2, %v1090_v1 }
 0x18a   : > { %v3526_v6 = vpop.f32.mrf.mxu2 }
 0x192   : > { %v3535_v11 = vpop.f32.mrf.mxu2 }
 0x197   : > { %v3572_v62 = vpop.f32.mrf.mxu3 }
 0x19a   : > { %v1388_v31 = vpop.f32.mrf.mxu2 }
 0x19b   : > { %v1428_v43 = vadd.f32 %v1388_v31, %v3416_v17  ;;  %v750_v17 = vadd.f32 %v3445_v18, %v3432_v42  ;;  %v797_v31 = vsel %vm765_vm5, %v749_v27, %v781_v60 }
 0x19d   : > { %vm1444_vm3 = vcmp.gt.f32.partialorder %v1428_v43, 0.0  ;;  %v1460_v53 = vmul.f32 0.2, %v1428_v43  ;;  %vm766_vm7 = vcmp.gt.f32.partialorder %v750_v17, 0.0 }
 0x19f   : > { %v1476_v50 = vsel %vm1444_vm3, %v1428_v43, %v1460_v53  ;;  %v1509_v53 = vmax.f32 %v797_v31, %v1137_v20 }
 0x1a0   : > { %v1524_v13 = vmax.f32 %v1508_v12, %v1476_v50  ;;  %v782_v12 = vmul.f32 0.2, %v750_v17 }
 0x1a2   : > { %v1540_v3 = vsub.f32 %v796_v35, %v1524_v13  ;;  %v1588_v22 = vsub.f32 %v1136_v41, %v1524_v13  ;;  %v1636_v16 = vsub.f32 %v1476_v50, %v1524_v13  ;;  %v1390_v9 = vpop.f32.mrf.mxu2  ;;  %v3566_v35 = vpop.f32.mrf.mxu0  ;;  %v751_v41 = vadd.f32 %v3450_v19, %v3440_v14 }
 0x1a3   : > { %v1429_v43 = vadd.f32 %v1390_v9, %v3424_v33  ;;  %v1091_v9 = vadd.f32 %v3524_v4, %v3440_v14  ;;  %v798_v60 = vsel %vm766_vm7, %v750_v17, %v782_v12  ;;  %v1138_v13 = vsel %vm1106_vm8, %v1090_v1, %v1122_v28 }
 0x1a4   : > { %v1556_v54 = vmul.f32 1.442695, %v1540_v3  ;;  %v1604_v18 = vmul.f32 1.442695, %v1588_v22  ;;  %v1652_v50 = vmul.f32 1.442695, %v1636_v16  ;;  %v1510_v4 = vmax.f32 %v798_v60, %v1138_v13 }
 0x1a5   : > { %vm1445_vm6 = vcmp.gt.f32.partialorder %v1429_v43, 0.0  ;;  %v1461_v27 = vmul.f32 0.2, %v1429_v43  ;;  %vm1107_vm9 = vcmp.gt.f32.partialorder %v1091_v9, 0.0  ;;  %vm767_vm11 = vcmp.gt.f32.partialorder %v751_v41, 0.0 }
 0x1a6   : > { %2920 = vpow2.f32 %v1556_v54  ;;  %v1123_v54 = vmul.f32 0.2, %v1091_v9 }
 0x1a7   : > { %2922 = vpow2.f32 %v1604_v18  ;;  %v1477_v33 = vsel %vm1445_vm6, %v1429_v43, %v1461_v27  ;;  %v783_v43 = vmul.f32 0.2, %v751_v41 }
 0x1a8   : > { %v1525_v22 = vmax.f32 %v1509_v53, %v1477_v33  ;;  %2924 = vpow2.f32 %v1652_v50 }
 0x1a9   : > { %v799_v50 = vsel %vm767_vm11, %v751_v41, %v783_v43  ;;  %v753_v41 = vadd.f32 %v3463_v25, %v3453_v21  ;;  %v3600_v43 = vpop.f32.mrf.mxu3 }
 0x1aa   : > { %v1541_v23 = vsub.f32 %v797_v31, %v1525_v22  ;;  %v1589_v3 = vsub.f32 %v1137_v20, %v1525_v22  ;;  %v1637_v5 = vsub.f32 %v1477_v33, %v1525_v22  ;;  %v1393_v63 = vpop.f32.mrf.mxu2  ;;  %v3579_v20 = vpop.f32.mrf.mxu1  ;;  %v1092_v31 = vadd.f32 %v3533_v10, %v3448_v38 }
 0x1ab   : > { %v1430_v16 = vadd.f32 %v1393_v63, %v3432_v42  ;;  %v752_v42 = vadd.f32 %v3458_v24, %v3448_v38  ;;  %v1139_v33 = vsel %vm1107_vm9, %v1091_v9, %v1123_v54  ;;  %v1093_v9 = vadd.f32 %v3553_v51, %v3453_v21 }
 0x1ac   : > { %v3575_v32 = vpop.eup %2920  ;;  %v1558_v18 = vmul.f32 1.442695, %v1541_v23  ;;  %v1606_v27 = vmul.f32 1.442695, %v1589_v3  ;;  %v1654_v1 = vmul.f32 1.442695, %v1637_v5  ;;  %v3589_v5 = vpop.f32.mrf.mxu0 }
 0x1ad   : > { %v3577_v19 = vpop.eup %2922  ;;  %vm1446_vm10 = vcmp.gt.f32.partialorder %v1430_v16, 0.0  ;;  %v1462_v17 = vmul.f32 0.2, %v1430_v16  ;;  %vm1108_vm12 = vcmp.gt.f32.partialorder %v1092_v31, 0.0  ;;  %vm768_vm13 = vcmp.gt.f32.partialorder %v752_v42, 0.0 }
 0x1ae   : > { %v1684_v63 = vadd.f32 %v3577_v19, %v3575_v32  ;;  %2926 = vpow2.f32 %v1558_v18  ;;  %v3587_v53 = vpop.eup %2924  ;;  %v784_v24 = vmul.f32 0.2, %v752_v42  ;;  %vm1109_vm15 = vcmp.gt.f32.partialorder %v1093_v9, 0.0 }
 0x1af   : > { %2928 = vpow2.f32 %v1606_v27  ;;  %v1478_v28 = vsel %vm1446_vm10, %v1430_v16, %v1462_v17  ;;  %v1124_v27 = vmul.f32 0.2, %v1092_v31  ;;  %vm769_vm0 = vcmp.gt.f32.partialorder %v753_v41, 0.0 }
 0x1b0   : > { %v1526_v12 = vmax.f32 %v1510_v4, %v1478_v28  ;;  %v1700_v22 = vadd.f32 %v3587_v53, %v1684_v63  ;;  %2930 = vpow2.f32 %v1654_v1  ;;  %v1511_v63 = vmax.f32 %v799_v50, %v1139_v33 }
 0x1b1   : > { %v3607_v25 = vsel %vm1108_vm12, %v1092_v31, %v1124_v27 }
 0x1b2   : > { %v1542_v10 = vsub.f32 %v798_v60, %v1526_v12  ;;  %v1590_v23 = vsub.f32 %v1138_v13, %v1526_v12  ;;  %v1638_v3 = vsub.f32 %v1478_v28, %v1526_v12  ;;  %v1395_v18 = vpop.f32.mrf.mxu2  ;;  %2932 = vrcp.f32 %v1700_v22 }
 0x1b3   : > { %v1431_v16 = vadd.f32 %v1395_v18, %v3440_v14  ;;  %v3604_v12 = vsel %vm768_vm13, %v752_v42, %v784_v24  ;;  %v1125_v22 = vmul.f32 0.2, %v1093_v9  ;;  %v785_v18 = vmul.f32 0.2, %v753_v41 }
 0x1b4   : > { %v3594_v17 = vpop.eup %2926  ;;  %v1560_v54 = vmul.f32 1.442695, %v1542_v10  ;;  %v1608_v4 = vmul.f32 1.442695, %v1590_v23  ;;  %v1656_v13 = vmul.f32 1.442695, %v1638_v3  ;;  %v3609_v10 = vpop.f32.mrf.mxu1 }
 0x1b5   : > { %v2929_v60 = vpop.eup %2928  ;;  %vm1447_vm14 = vcmp.gt.f32.partialorder %v1431_v16, 0.0  ;;  %v1463_v1 = vmul.f32 0.2, %v1431_v16  ;;  %4097 = vst [vmem:[#allocation28_spill] sm:$0xff] %v3609_v10  ;;  %v3615_v42 = vpop.f32.mrf.mxu0 }
 0x1b6   : > { %v1685_v14 = vadd.f32 %v2929_v60, %v3594_v17  ;;  %2934 = vpow2.f32 %v1560_v54  ;;  %v2931_v28 = vpop.eup %2930  ;;  %v3613_v54 = vadd.f32 %v3566_v35, %v3461_v44  ;;  %v1512_v35 = vmax.f32 %v3604_v12, %v3607_v25 }
 0x1b7   : > { %2936 = vpow2.f32 %v1608_v4  ;;  %v1479_v51 = vsel %vm1447_vm14, %v1431_v16, %v1463_v1  ;;  %v754_v1 = vadd.f32 %v3469_v29, %v3461_v44 }
 0x1b8   : > { %v1701_v23 = vadd.f32 %v2931_v28, %v1685_v14  ;;  %v1527_v3 = vmax.f32 %v1511_v63, %v1479_v51  ;;  %2938 = vpow2.f32 %v1656_v13  ;;  %v2933_v4 = vpop.eup %2932  ;;  %v3625_v13 = vsel %vm1109_vm15, %v1093_v9, %v1125_v22  ;;  %v3636_v9 = vpop.f32.mrf.mxu3 }
 0x1b9   : > { %vm1110_vm2 = vcmp.gt.f32.partialorder %v3613_v54, 0.0  ;;  %4098 = vst [vmem:[#allocation29_spill] sm:$0xff] %v3636_v9  ;;  %vm770_vm3 = vcmp.gt.f32.partialorder %v754_v1, 0.0  ;;  %v2006_v7 = vmul.f32 %v2933_v4, %v3587_v53  ;;  %v786_v9 = vmul.f32 0.2, %v754_v1 }
 0x1ba   : > { %2940 = vrcp.f32 %v1701_v23  ;;  %v1543_v31 = vsub.f32 %v799_v50, %v1527_v3  ;;  %v1591_v24 = vsub.f32 %v1139_v33, %v1527_v3  ;;  %v1639_v27 = vsub.f32 %v1479_v51, %v1527_v3  ;;  %v1398_v16 = vpop.f32.mrf.mxu2 }
 0x1bb   : > { %v1432_v63 = vadd.f32 %v1398_v16, %v3448_v38  ;;  %v3630_v33 = vsel %vm769_vm0, %v753_v41, %v785_v18  ;;  %v1126_v38 = vmul.f32 0.2, %v3613_v54  ;;  %v1732_v41 = vmul.f32 %v2933_v4, %v3575_v32 }
 0x1bc   : > { %v3620_v14 = vpop.eup %2934  ;;  %v1562_v15 = vmul.f32 1.442695, %v1543_v31  ;;  %v1610_v23 = vmul.f32 1.442695, %v1591_v24  ;;  %v1658_v51 = vmul.f32 1.442695, %v1639_v27  ;;  %v1885_v16 = vmul.f32 %v2933_v4, %v3577_v19  ;;  %v3645_v10 = vpop.f32.mrf.mxu1 }
 0x1bd   : > { %v3627_v50 = vpop.eup %2936  ;;  %vm1448_vm1 = vcmp.gt.f32.partialorder %v1432_v63, 0.0  ;;  %v1464_v29 = vmul.f32 0.2, %v1432_v63 }
 0x1be   : > { %v1686_v3 = vadd.f32 %v3627_v50, %v3620_v14  ;;  %2942 = vpow2.f32 %v1562_v15  ;;  %v3638_v22 = vpop.eup %2938 }
 0x1bf   : > { %2944 = vpow2.f32 %v1610_v23  ;;  %v1480_v31 = vsel %vm1448_vm1, %v1432_v63, %v1464_v29 }
 0x1c0   : > { %v2941_v18 = vpop.eup %2940  ;;  %v1702_v24 = vadd.f32 %v3638_v22, %v1686_v3  ;;  %v1528_v27 = vmax.f32 %v1512_v35, %v1480_v31  ;;  %2946 = vpow2.f32 %v1658_v51 }
 0x1c1   : > { %v1733_v15 = vmul.f32 %v2941_v18, %v3594_v17  ;;  %v1886_v61 = vmul.f32 %v2941_v18, %v2929_v60  ;;  %v2007_v55 = vmul.f32 %v2941_v18, %v2931_v28  ;;  %v755_v17 = vadd.f32 %v3474_v48, %v3471_v30  ;;  %v3656_v28 = vpop.f32.mrf.mxu0 }
 0x1c2   : > { %v1544_v63 = vsub.f32 %v3604_v12, %v1528_v27  ;;  %v1592_v32 = vsub.f32 %v3607_v25, %v1528_v27  ;;  %v1640_v23 = vsub.f32 %v1480_v31, %v1528_v27  ;;  %v1400_v29 = vpop.f32.mrf.mxu2  ;;  %v1095_v60 = vadd.f32 %v3589_v5, %v3471_v30  ;;  %v3669_v27 = vpop.f32.mrf.mxu3 }
 0x1c3   : > { %v1433_v35 = vadd.f32 %v1400_v29, %v3453_v21  ;;  %v1748_v3 = vpack.c.bf16 %v1733_v15, %v1732_v41  ;;  %v1901_v19 = vpack.c.bf16 %v1886_v61, %v1885_v16  ;;  %v2022_v47 = vpack.c.bf16 %v2007_v55, %v2006_v7 }
 0x1c4   : > { %v3650_v53 = vpop.eup %2942  ;;  %v1564_v12 = vmul.f32 1.442695, %v1544_v63  ;;  %v1612_v4 = vmul.f32 1.442695, %v1592_v32  ;;  %2948 = vrcp.f32 %v1702_v24  ;;  %v1660_v51 = vmul.f32 1.442695, %v1640_v23  ;;  %v3680_v23 = vpop.f32.mrf.mxu1 }
 0x1c5   : > { %v2945_v25 = vpop.eup %2944  ;;  %vm1449_vm4 = vcmp.gt.f32.partialorder %v1433_v35, 0.0  ;;  %v1465_v21 = vmul.f32 0.2, %v1433_v35  ;;  %1812 = vmatmul.bf16.vlgmr.msra.gmra.mxu3 %v1748_v3  ;;  %1917 = vmatmul.bf16.vlgmr.msra.gmra.mxu0 %v1901_v19  ;;  %v1513_v55 = vmax.f32 %v3630_v33, %v3625_v13  ;;  %v3662_v7 = vsel %vm770_vm3, %v754_v1, %v786_v9 }
 0x1c6   : > { %v1687_v61 = vadd.f32 %v2945_v25, %v3650_v53  ;;  %2950 = vpow2.f32 %v1564_v12  ;;  %2038 = vmatmul.bf16.vlgmr.msra.gmra.mxu1 %v2022_v47  ;;  %v2947_v48 = vpop.eup %2946  ;;  %v3667_v5 = vsel %vm1110_vm2, %v3613_v54, %v1126_v38  ;;  %vm1111_vm5 = vcmp.gt.f32.partialorder %v1095_v60, 0.0 }
 0x1c7   : > { %2952 = vpow2.f32 %v1612_v4  ;;  %v1481_v31 = vsel %vm1449_vm4, %v1433_v35, %v1465_v21  ;;  %v1127_v41 = vmul.f32 0.2, %v1095_v60  ;;  %vm771_vm6 = vcmp.gt.f32.partialorder %v755_v17, 0.0 }
 0x1c8   : > { %v1703_v18 = vadd.f32 %v2947_v48, %v1687_v61  ;;  %v1529_v24 = vmax.f32 %v1513_v55, %v1481_v31  ;;  %v787_v16 = vmul.f32 0.2, %v755_v17  ;;  %v3673_v47 = vadd.f32 %v3615_v42, %v3477_v34 }
 0x1c9   : > { %2954 = vpow2.f32 %v1660_v51  ;;  %v756_v63 = vadd.f32 %v3482_v36, %v3477_v34  ;;  %v1514_v42 = vmax.f32 %v3662_v7, %v3667_v5  ;;  %v3687_v35 = vsel %vm1111_vm5, %v1095_v60, %v1127_v41  ;;  %v1073_v4 = vpop.f32.mrf.mxu0 }
 0x1ca   : > { %2956 = vrcp.f32 %v1703_v18  ;;  %v1545_v1 = vsub.f32 %v3630_v33, %v1529_v24  ;;  %v1593_v54 = vsub.f32 %v3625_v13, %v1529_v24  ;;  %v1641_v38 = vsub.f32 %v1481_v31, %v1529_v24  ;;  %v1403_v9 = vpop.f32.mrf.mxu2  ;;  %v2949_v15 = vpop.eup %2948 }
 0x1cb   : > { %v1434_v32 = vadd.f32 %v1403_v9, %v3461_v44  ;;  %v3692_v19 = vsel %vm771_vm6, %v755_v17, %v787_v16  ;;  %vm1112_vm8 = vcmp.gt.f32.partialorder %v3673_v47, 0.0  ;;  %v1128_v12 = vmul.f32 0.2, %v3673_v47 }
 0x1cc   : > { %v3682_v29 = vpop.eup %2950  ;;  %v1566_v33 = vmul.f32 1.442695, %v1545_v1  ;;  %v1614_v13 = vmul.f32 1.442695, %v1593_v54  ;;  %v1662_v36 = vmul.f32 1.442695, %v1641_v38  ;;  %v1734_v17 = vmul.f32 %v2949_v15, %v3620_v14 }
 0x1cd   : > { %v3689_v3 = vpop.eup %2952  ;;  %vm1450_vm7 = vcmp.gt.f32.partialorder %v1434_v32, 0.0  ;;  %v1466_v44 = vmul.f32 0.2, %v1434_v32  ;;  %vm772_vm9 = vcmp.gt.f32.partialorder %v756_v63, 0.0  ;;  %v1887_v41 = vmul.f32 %v2949_v15, %v3627_v50 }
 0x1ce   : > { %v1688_v51 = vadd.f32 %v3689_v3, %v3682_v29  ;;  %2958 = vpow2.f32 %v1566_v33  ;;  %v2008_v18 = vmul.f32 %v2949_v15, %v3638_v22  ;;  %v788_v54 = vmul.f32 0.2, %v756_v63  ;;  %v3707_v33 = vpop.f32.mrf.mxu3 }
 0x1cf   : > { %v3698_v60 = vpop.eup %2954  ;;  %2960 = vpow2.f32 %v1614_v13  ;;  %v1482_v21 = vsel %vm1450_vm7, %v1434_v32, %v1466_v44 }
 0x1d0   : > { %v2957_v55 = vpop.eup %2956  ;;  %v1704_v61 = vadd.f32 %v3698_v60, %v1688_v51  ;;  %v1530_v31 = vmax.f32 %v1514_v42, %v1482_v21  ;;  %2962 = vpow2.f32 %v1662_v36  ;;  %v1515_v51 = vmax.f32 %v3692_v19, %v3687_v35 }
 0x1d1   : > { %v1735_v24 = vmul.f32 %v2957_v55, %v3650_v53  ;;  %v1888_v16 = vmul.f32 %v2957_v55, %v2945_v25  ;;  %v2009_v1 = vmul.f32 %v2957_v55, %v2947_v48  ;;  %v757_v53 = vadd.f32 %v3489_v40, %v3485_v39 }
 0x1d2   : > { %v1546_v38 = vsub.f32 %v3662_v7, %v1530_v31  ;;  %v1594_v9 = vsub.f32 %v3667_v5, %v1530_v31  ;;  %v1642_v32 = vsub.f32 %v1482_v21, %v1530_v31  ;;  %v1405_v14 = vpop.f32.mrf.mxu2  ;;  %v1097_v25 = vadd.f32 %v3656_v28, %v3485_v39  ;;  %v1075_v31 = vpop.f32.mrf.mxu0 }
 0x1d3   : > { %v1435_v42 = vadd.f32 %v1405_v14, %v3471_v30  ;;  %v1749_v13 = vpack.c.bf16 %v1735_v24, %v1734_v17  ;;  %v1902_v50 = vpack.c.bf16 %v1888_v16, %v1887_v41  ;;  %v2023_v44 = vpack.c.bf16 %v2009_v1, %v2008_v18  ;;  %v3716_v30 = vpop.f32.mrf.mxu1 }
 0x1d4   : > { %v3710_v22 = vpop.eup %2958  ;;  %v1568_v48 = vmul.f32 1.442695, %v1546_v38  ;;  %v1616_v7 = vmul.f32 1.442695, %v1594_v9  ;;  %2964 = vrcp.f32 %v1704_v61  ;;  %v1664_v15 = vmul.f32 1.442695, %v1642_v32 }
 0x1d5   : > { %v2961_v5 = vpop.eup %2960  ;;  %vm1451_vm10 = vcmp.gt.f32.partialorder %v1435_v42, 0.0  ;;  %v1467_v36 = vmul.f32 0.2, %v1435_v42  ;;  %1817 = vmatmul.bf16.gmra.mxu3 %v1749_v13  ;;  %1922 = vmatmul.bf16.gmra.mxu0 %v1902_v50  ;;  %v3722_v28 = vsel %vm772_vm9, %v756_v63, %v788_v54  ;;  %v3727_v17 = vsel %vm1112_vm8, %v3673_v47, %v1128_v12 }
 0x1d6   : > { %v1689_v21 = vadd.f32 %v2961_v5, %v3710_v22  ;;  %2966 = vpow2.f32 %v1568_v48  ;;  %2043 = vmatmul.bf16.gmra.mxu1 %v2023_v44  ;;  %v2963_v40 = vpop.eup %2962  ;;  %vm1113_vm11 = vcmp.gt.f32.partialorder %v1097_v25, 0.0  ;;  %v1129_v61 = vmul.f32 0.2, %v1097_v25  ;;  %v3744_v13 = vpop.f32.mrf.mxu3 }
 0x1d7   : > { %2968 = vpow2.f32 %v1616_v7  ;;  %v1483_v55 = vsel %vm1451_vm10, %v1435_v42, %v1467_v36  ;;  %vm773_vm12 = vcmp.gt.f32.partialorder %v757_v53, 0.0  ;;  %v789_v24 = vmul.f32 0.2, %v757_v53 }
 0x1d8   : > { %v1705_v41 = vadd.f32 %v2963_v40, %v1689_v21  ;;  %v1531_v18 = vmax.f32 %v1515_v51, %v1483_v55  ;;  %v3730_v16 = vadd.f32 %v1073_v4, %v3500_v57  ;;  %2970 = vpow2.f32 %v1664_v15 }
 0x1d9   : > { %v758_v38 = vadd.f32 %v3497_v46, %v3500_v57  ;;  %v1516_v4 = vmax.f32 %v3722_v28, %v3727_v17  ;;  %v3742_v14 = vsel %vm1113_vm11, %v1097_v25, %v1129_v61  ;;  %v3749_v50 = vsel %vm773_vm12, %v757_v53, %v789_v24 }
 0x1da   : > { %2972 = vrcp.f32 %v1705_v41  ;;  %v1547_v63 = vsub.f32 %v3692_v19, %v1531_v18  ;;  %v1595_v1 = vsub.f32 %v3687_v35, %v1531_v18  ;;  %v1643_v47 = vsub.f32 %v1483_v55, %v1531_v18  ;;  %v1408_v12 = vpop.f32.mrf.mxu2  ;;  %v2965_v54 = vpop.eup %2964 }
 0x1db   : > { %v1436_v9 = vadd.f32 %v1408_v12, %v3477_v34  ;;  %vm1114_vm14 = vcmp.gt.f32.partialorder %v3730_v16, 0.0  ;;  %v1130_v44 = vmul.f32 0.2, %v3730_v16  ;;  %vm774_vm15 = vcmp.gt.f32.partialorder %v758_v38, 0.0  ;;  %v3758_v53 = vpop.f32.mrf.mxu1 }
 0x1dc   : > { %v3737_v32 = vpop.eup %2966  ;;  %v1570_v42 = vmul.f32 1.442695, %v1547_v63  ;;  %v1618_v19 = vmul.f32 1.442695, %v1595_v1  ;;  %v1666_v46 = vmul.f32 1.442695, %v1643_v47  ;;  %v1736_v15 = vmul.f32 %v2965_v54, %v3682_v29  ;;  %v1078_v1 = vpop.f32.mrf.mxu0 }
 0x1dd   : > { %v3746_v35 = vpop.eup %2968  ;;  %vm1452_vm13 = vcmp.gt.f32.partialorder %v1436_v9, 0.0  ;;  %v1468_v34 = vmul.f32 0.2, %v1436_v9  ;;  %v1889_v55 = vmul.f32 %v2965_v54, %v3689_v3  ;;  %v2010_v61 = vmul.f32 %v2965_v54, %v3698_v60 }
 0x1de   : > { %v1690_v25 = vadd.f32 %v3746_v35, %v3737_v32  ;;  %2974 = vpow2.f32 %v1570_v42  ;;  %v3755_v48 = vpop.eup %2970  ;;  %v790_v63 = vmul.f32 0.2, %v758_v38  ;;  %v759_v60 = vadd.f32 %v3504_v49, %v3512_v56 }
 0x1df   : > { %2976 = vpow2.f32 %v1618_v19  ;;  %v1484_v7 = vsel %vm1452_vm13, %v1436_v9, %v1468_v34 }
 0x1e0   : > { %v2973_v36 = vpop.eup %2972  ;;  %v1706_v51 = vadd.f32 %v3755_v48, %v1690_v25  ;;  %v1532_v21 = vmax.f32 %v1516_v4, %v1484_v7  ;;  %2978 = vpow2.f32 %v1666_v46  ;;  %v3775_v25 = vpop.f32.mrf.mxu3  ;;  %vm775_vm2 = vcmp.gt.f32.partialorder %v759_v60, 0.0 }
 0x1e1   : > { %v1737_v41 = vmul.f32 %v2973_v36, %v3710_v22  ;;  %v1890_v18 = vmul.f32 %v2973_v36, %v2961_v5  ;;  %v2011_v24 = vmul.f32 %v2973_v36, %v2963_v40  ;;  %v1099_v22 = vadd.f32 %v1075_v31, %v3512_v56 }
 0x1e2   : > { %v1548_v47 = vsub.f32 %v3722_v28, %v1532_v21  ;;  %v1596_v29 = vsub.f32 %v3727_v17, %v1532_v21  ;;  %v1644_v12 = vsub.f32 %v1484_v7, %v1532_v21  ;;  %v1410_v9 = vpop.f32.mrf.mxu2  ;;  %2980 = vrcp.f32 %v1706_v51 }
 0x1e3   : > { %v1437_v42 = vadd.f32 %v1410_v9, %v3485_v39  ;;  %v1750_v4 = vpack.c.bf16 %v1737_v41, %v1736_v15  ;;  %v1903_v19 = vpack.c.bf16 %v1890_v18, %v1889_v55  ;;  %v2024_v3 = vpack.c.bf16 %v2011_v24, %v2010_v61  ;;  %v3788_v41 = vpop.f32.mrf.mxu1 }
 0x1e4   : > { %v3767_v34 = vpop.eup %2974  ;;  %v1572_v5 = vmul.f32 1.442695, %v1548_v47  ;;  %v1620_v40 = vmul.f32 1.442695, %v1596_v29  ;;  %v1668_v28 = vmul.f32 1.442695, %v1644_v12  ;;  %v1517_v39 = vmax.f32 %v3749_v50, %v3742_v14 }
 0x1e5   : > { %v2977_v54 = vpop.eup %2976  ;;  %vm1453_vm0 = vcmp.gt.f32.partialorder %v1437_v42, 0.0  ;;  %v1469_v17 = vmul.f32 0.2, %v1437_v42  ;;  %1822 = vmatmul.bf16.gmra.mxu3 %v1750_v4  ;;  %1927 = vmatmul.bf16.gmra.mxu0 %v1903_v19  ;;  %v3778_v31 = vsel %vm774_vm15, %v758_v38, %v790_v63  ;;  %v3783_v7 = vsel %vm1114_vm14, %v3730_v16, %v1130_v44 }
 0x1e6   : > { %v1691_v46 = vadd.f32 %v2977_v54, %v3767_v34  ;;  %2982 = vpow2.f32 %v1572_v5  ;;  %2048 = vmatmul.bf16.gmra.mxu1 %v2024_v3  ;;  %v2979_v49 = vpop.eup %2978  ;;  %vm1115_vm1 = vcmp.gt.f32.partialorder %v1099_v22, 0.0  ;;  %v1131_v36 = vmul.f32 0.2, %v1099_v22 }
 0x1e7   : > { %2984 = vpow2.f32 %v1620_v40  ;;  %v1485_v15 = vsel %vm1453_vm0, %v1437_v42, %v1469_v17  ;;  %v791_v55 = vmul.f32 0.2, %v759_v60  ;;  %v3786_v61 = vadd.f32 %v1078_v1, %v3522_v2 }
 0x1e8   : > { %v1707_v51 = vadd.f32 %v2979_v49, %v1691_v46  ;;  %v1533_v21 = vmax.f32 %v1517_v39, %v1485_v15  ;;  %2986 = vpow2.f32 %v1668_v28  ;;  %v2981_v24 = vpop.eup %2980  ;;  %v3794_v63 = vadd.f32 %v3514_v0, %v3522_v2 }
 0x1e9   : > { %v1518_v1 = vmax.f32 %v3778_v31, %v3783_v7  ;;  %v3802_v12 = vsel %vm1115_vm1, %v1099_v22, %v1131_v36  ;;  %v3807_v4 = vsel %vm775_vm2, %v759_v60, %v791_v55  ;;  %vm1116_vm4 = vcmp.gt.f32.partialorder %v3786_v61, 0.0 }
 0x1ea   : > { %2988 = vrcp.f32 %v1707_v51  ;;  %v1549_v38 = vsub.f32 %v3749_v50, %v1533_v21  ;;  %v1597_v16 = vsub.f32 %v3742_v14, %v1533_v21  ;;  %v1645_v44 = vsub.f32 %v1485_v15, %v1533_v21  ;;  %v1413_v18 = vpop.f32.mrf.mxu2  ;;  %v1080_v50 = vpop.f32.mrf.mxu0 }
 0x1eb   : > { %v1438_v47 = vadd.f32 %v1413_v18, %v3500_v57  ;;  %v1132_v57 = vmul.f32 0.2, %v3786_v61  ;;  %vm776_vm5 = vcmp.gt.f32.partialorder %v3794_v63, 0.0  ;;  %v1738_v60 = vmul.f32 %v2981_v24, %v3737_v32  ;;  %v3820_v15 = vpop.f32.mrf.mxu3 }
 0x1ec   : > { %v3797_v29 = vpop.eup %2982  ;;  %v1574_v9 = vmul.f32 1.442695, %v1549_v38  ;;  %v1622_v14 = vmul.f32 1.442695, %v1597_v16  ;;  %v1670_v0 = vmul.f32 1.442695, %v1645_v44  ;;  %v1891_v39 = vmul.f32 %v2981_v24, %v3746_v35 }
 0x1ed   : > { %v3804_v42 = vpop.eup %2984  ;;  %vm1454_vm3 = vcmp.gt.f32.partialorder %v1438_v47, 0.0  ;;  %v1470_v19 = vmul.f32 0.2, %v1438_v47  ;;  %v2012_v46 = vmul.f32 %v2981_v24, %v3755_v48  ;;  %v792_v55 = vmul.f32 0.2, %v3794_v63  ;;  %v3827_v24 = vpop.f32.mrf.mxu1 }
 0x1ee   : > { %v1692_v3 = vadd.f32 %v3804_v42, %v3797_v29  ;;  %2990 = vpow2.f32 %v1574_v9  ;;  %v3813_v22 = vpop.eup %2986 }
 0x1ef   : > { %2992 = vpow2.f32 %v1622_v14  ;;  %v1486_v5 = vsel %vm1454_vm3, %v1438_v47, %v1470_v19 }
 0x1f0   : > { %v2989_v40 = vpop.eup %2988  ;;  %v1708_v28 = vadd.f32 %v3813_v22, %v1692_v3  ;;  %v1534_v17 = vmax.f32 %v1518_v1, %v1486_v5  ;;  %2994 = vpow2.f32 %v1670_v0 }
 0x1f1   : > { %v1739_v36 = vmul.f32 %v2989_v40, %v3767_v34  ;;  %v1892_v51 = vmul.f32 %v2989_v40, %v2977_v54  ;;  %v2013_v21 = vmul.f32 %v2989_v40, %v2979_v49  ;;  %v761_v34 = vadd.f32 %v3517_v59, %v3531_v8 }
 0x1f2   : > { %v1550_v38 = vsub.f32 %v3778_v31, %v1534_v17  ;;  %v1598_v32 = vsub.f32 %v3783_v7, %v1534_v17  ;;  %v1646_v16 = vsub.f32 %v1486_v5, %v1534_v17  ;;  %v1415_v44 = vpop.f32.mrf.mxu2  ;;  %v1101_v54 = vadd.f32 %v1080_v50, %v3531_v8  ;;  %v1083_v0 = vpop.f32.mrf.mxu0 }
 0x1f3   : > { %v1439_v18 = vadd.f32 %v1415_v44, %v3512_v56  ;;  %v1751_v35 = vpack.c.bf16 %v1739_v36, %v1738_v60  ;;  %v1904_v47 = vpack.c.bf16 %v1892_v51, %v1891_v39  ;;  %v2025_v48 = vpack.c.bf16 %v2013_v21, %v2012_v46  ;;  %v3848_v51 = vpop.f32.mrf.mxu3 }
 0x1f4   : > { %v3829_v1 = vpop.eup %2990  ;;  %v1576_v49 = vmul.f32 1.442695, %v1550_v38  ;;  %v1624_v31 = vmul.f32 1.442695, %v1598_v32  ;;  %2996 = vrcp.f32 %v1708_v28  ;;  %v1672_v7 = vmul.f32 1.442695, %v1646_v16 }
 0x1f5   : > { %v2993_v9 = vpop.eup %2992  ;;  %vm1455_vm6 = vcmp.gt.f32.partialorder %v1439_v18, 0.0  ;;  %v1471_v14 = vmul.f32 0.2, %v1439_v18  ;;  %1827 = vmatmul.bf16.gmra.mxu3 %v1751_v35  ;;  %1932 = vmatmul.bf16.gmra.mxu0 %v1904_v47  ;;  %v1519_v56 = vmax.f32 %v3807_v4, %v3802_v12  ;;  %v1148_v50 = vsel %vm1116_vm4, %v3786_v61, %v1132_v57  ;;  %v3858_v35 = vpop.f32.mrf.mxu1 }
 0x1f6   : > { %v1693_v19 = vadd.f32 %v2993_v9, %v3829_v1  ;;  %2998 = vpow2.f32 %v1576_v49  ;;  %2053 = vmatmul.bf16.gmra.mxu1 %v2025_v48  ;;  %v2995_v59 = vpop.eup %2994  ;;  %v808_v5 = vsel %vm776_vm5, %v3794_v63, %v792_v55  ;;  %vm1117_vm7 = vcmp.gt.f32.partialorder %v1101_v54, 0.0 }
 0x1f7   : > { %3000 = vpow2.f32 %v1624_v31  ;;  %v1487_v3 = vsel %vm1455_vm6, %v1439_v18, %v1471_v14  ;;  %v793_v28 = vmul.f32 0.2, %v761_v34  ;;  %v1133_v17 = vmul.f32 0.2, %v1101_v54 }
 0x1f8   : > { %v1709_v60 = vadd.f32 %v2995_v59, %v1693_v19  ;;  %v1535_v40 = vmax.f32 %v1519_v56, %v1487_v3  ;;  %v3844_v39 = vadd.f32 %v1083_v0, %v3542_v26  ;;  %3002 = vpow2.f32 %v1672_v7 }
 0x1f9   : > { %vm777_vm8 = vcmp.gt.f32.partialorder %v761_v34, 0.0  ;;  %v1520_v38 = vmax.f32 %v808_v5, %v1148_v50  ;;  %v3856_v18 = vsel %vm1117_vm7, %v1101_v54, %v1133_v17  ;;  %v762_v49 = vadd.f32 %v3526_v6, %v3542_v26 }
 0x1fa   : > { %3004 = vrcp.f32 %v1709_v60  ;;  %v1551_v46 = vsub.f32 %v3807_v4, %v1535_v40  ;;  %v1599_v61 = vsub.f32 %v3802_v12, %v1535_v40  ;;  %v1647_v57 = vsub.f32 %v1487_v3, %v1535_v40  ;;  %v1418_v36 = vpop.f32.mrf.mxu2  ;;  %v2997_v21 = vpop.eup %2996 }
 0x1fb   : > { %v1440_v63 = vadd.f32 %v1418_v36, %v3522_v2  ;;  %v3860_v47 = vsel %vm777_vm8, %v761_v34, %v793_v28  ;;  %vm1118_vm10 = vcmp.gt.f32.partialorder %v3844_v39, 0.0  ;;  %v1740_v31 = vmul.f32 %v2997_v21, %v3797_v29 }
 0x1fc   : > { %v3851_v55 = vpop.eup %2998  ;;  %v1578_v32 = vmul.f32 1.442695, %v1551_v46  ;;  %v1626_v16 = vmul.f32 1.442695, %v1599_v61  ;;  %v1674_v4 = vmul.f32 1.442695, %v1647_v57  ;;  %v1893_v56 = vmul.f32 %v2997_v21, %v3804_v42 }
 0x1fd   : > { %v3853_v44 = vpop.eup %3000  ;;  %vm1456_vm9 = vcmp.gt.f32.partialorder %v1440_v63, 0.0  ;;  %v1472_v12 = vmul.f32 0.2, %v1440_v63  ;;  %v2014_v0 = vmul.f32 %v2997_v21, %v3813_v22  ;;  %v1134_v40 = vmul.f32 0.2, %v3844_v39  ;;  %v3876_v21 = vpop.f32.mrf.mxu3 }
 0x1fe   : > { %v1694_v2 = vadd.f32 %v3853_v44, %v3851_v55  ;;  %3006 = vpow2.f32 %v1578_v32  ;;  %v3865_v48 = vpop.eup %3002  ;;  %v794_v42 = vmul.f32 0.2, %v762_v49  ;;  %vm778_vm12 = vcmp.gt.f32.partialorder %v762_v49, 0.0 }
 0x1ff   : > { %3008 = vpow2.f32 %v1626_v16  ;;  %v1488_v54 = vsel %vm1456_vm9, %v1440_v63, %v1472_v12  ;;  %v1150_v12 = vsel %vm1118_vm10, %v3844_v39, %v1134_v40 }
 0x200   : > { %v3005_v7 = vpop.eup %3004  ;;  %v1710_v14 = vadd.f32 %v3865_v48, %v1694_v2  ;;  %v1536_v34 = vmax.f32 %v1520_v38, %v1488_v54  ;;  %3010 = vpow2.f32 %v1674_v4  ;;  %v3880_v4 = vpop.f32.mrf.mxu1 }
 0x201   : > { %v1741_v19 = vmul.f32 %v3005_v7, %v3829_v1  ;;  %v1894_v3 = vmul.f32 %v3005_v7, %v2993_v9  ;;  %v2015_v60 = vmul.f32 %v3005_v7, %v2995_v59  ;;  %v763_v7 = vadd.f32 %v3535_v11, %v3561_v37 }
 0x202   : > { %v1552_v6 = vsub.f32 %v808_v5, %v1536_v34  ;;  %v1600_v28 = vsub.f32 %v1148_v50, %v1536_v34  ;;  %v1648_v17 = vsub.f32 %v1488_v54, %v1536_v34  ;;  %v1420_v46 = vpop.f32.mrf.mxu2  ;;  %3012 = vrcp.f32 %v1710_v14 }
 0x203   : > { %v1441_v29 = vadd.f32 %v1420_v46, %v3531_v8  ;;  %v1752_v61 = vpack.c.bf16 %v1741_v19, %v1740_v31  ;;  %v1905_v57 = vpack.c.bf16 %v1894_v3, %v1893_v56  ;;  %v2026_v36 = vpack.c.bf16 %v2015_v60, %v2014_v0  ;;  %v1085_v8 = vpop.f32.mrf.mxu0 }
 0x204   : > { %v3007_v63 = vpop.eup %3006  ;;  %v1580_v38 = vmul.f32 1.442695, %v1552_v6  ;;  %v1628_v22 = vmul.f32 1.442695, %v1600_v28  ;;  %v1676_v9 = vmul.f32 1.442695, %v1648_v17  ;;  %v1521_v50 = vmax.f32 %v3860_v47, %v3856_v18 }
 0x205   : > { %v3009_v1 = vpop.eup %3008  ;;  %vm1457_vm11 = vcmp.gt.f32.partialorder %v1441_v29, 0.0  ;;  %v1473_v59 = vmul.f32 0.2, %v1441_v29  ;;  %1832 = vmatmul.bf16.gmra.mxu3 %v1752_v61  ;;  %1937 = vmatmul.bf16.gmra.mxu0 %v1905_v57  ;;  %v810_v31 = vsel %vm778_vm12, %v762_v49, %v794_v42  ;;  %v1103_v14 = vadd.f32 %v1085_v8, %v3561_v37 }
 0x206   : > { %v1695_v5 = vadd.f32 %v3009_v1, %v3007_v63  ;;  %3014 = vpow2.f32 %v1580_v38  ;;  %2058 = vmatmul.bf16.gmra.mxu1 %v2026_v36  ;;  %v3011_v32 = vpop.eup %3010  ;;  %v1522_v40 = vmax.f32 %v810_v31, %v1150_v12  ;;  %v795_v46 = vmul.f32 0.2, %v763_v7 }
 0x207   : > { %3016 = vpow2.f32 %v1628_v22  ;;  %v1489_v16 = vsel %vm1457_vm11, %v1441_v29, %v1473_v59  ;;  %vm1119_vm13 = vcmp.gt.f32.partialorder %v1103_v14, 0.0  ;;  %v3897_v29 = vpop.f32.mrf.mxu3  ;;  %vm779_vm15 = vcmp.gt.f32.partialorder %v763_v7, 0.0 }
 0x208   : > { %v1711_v2 = vadd.f32 %v3011_v32, %v1695_v5  ;;  %v1537_v54 = vmax.f32 %v1521_v50, %v1489_v16  ;;  %3018 = vpow2.f32 %v1676_v9  ;;  %v3013_v3 = vpop.eup %3012  ;;  %v3905_v5 = vpop.f32.mrf.mxu1 }
 0x209   : > { %v1742_v57 = vmul.f32 %v3013_v3, %v3851_v55  ;;  %v1895_v22 = vmul.f32 %v3013_v3, %v3853_v44  ;;  %v2016_v9 = vmul.f32 %v3013_v3, %v3865_v48 }
 0x20a   : > { %3020 = vrcp.f32 %v1711_v2  ;;  %v1553_v34 = vsub.f32 %v3860_v47, %v1537_v54  ;;  %v1601_v56 = vsub.f32 %v3856_v18, %v1537_v54  ;;  %v1649_v0 = vsub.f32 %v1489_v16, %v1537_v54  ;;  %v1423_v19 = vpop.f32.mrf.mxu2 }
 0x20b   : > { %v1442_v60 = vadd.f32 %v1423_v19, %v3542_v26  ;;  %v1135_v47 = vmul.f32 0.2, %v1103_v14  ;;  %v811_v16 = vsel %vm779_vm15, %v763_v7, %v795_v46 }
 0x20c   : > { %v3891_v39 = vpop.eup %3014  ;;  %v1582_v49 = vmul.f32 1.442695, %v1553_v34  ;;  %v1630_v6 = vmul.f32 1.442695, %v1601_v56  ;;  %v1678_v11 = vmul.f32 1.442695, %v1649_v0 }
 0x20d   : > { %v3893_v28 = vpop.eup %3016  ;;  %vm1458_vm14 = vcmp.gt.f32.partialorder %v1442_v60, 0.0  ;;  %v1474_v17 = vmul.f32 0.2, %v1442_v60  ;;  %v1151_v2 = vsel %vm1119_vm13, %v1103_v14, %v1135_v47 }
 0x20e   : > { %v1696_v18 = vadd.f32 %v3893_v28, %v3891_v39  ;;  %3022 = vpow2.f32 %v1582_v49  ;;  %v3899_v26 = vpop.eup %3018 }
 0x20f   : > { %3024 = vpow2.f32 %v1630_v6  ;;  %v1490_v61 = vsel %vm1458_vm14, %v1442_v60, %v1474_v17  ;;  %v3909_v6 = vpop.f32.mrf.mxu3 }
 0x210   : > { %v3021_v36 = vpop.eup %3020  ;;  %v1712_v42 = vadd.f32 %v3899_v26, %v1696_v18  ;;  %v1538_v38 = vmax.f32 %v1522_v40, %v1490_v61  ;;  %3026 = vpow2.f32 %v1678_v11  ;;  %v3911_v18 = vpop.f32.mrf.mxu1 }
 0x211   : > { %v1743_v59 = vmul.f32 %v3021_v36, %v3007_v63  ;;  %v1896_v50 = vmul.f32 %v3021_v36, %v3009_v1  ;;  %v2017_v8 = vmul.f32 %v3021_v36, %v3011_v32  ;;  %v1523_v32 = vmax.f32 %v811_v16, %v1151_v2 }
 0x212   : > { %v1554_v54 = vsub.f32 %v810_v31, %v1538_v38  ;;  %v1602_v34 = vsub.f32 %v1150_v12, %v1538_v38  ;;  %v1425_v55 = vpop.f32.mrf.mxu2  ;;  %v1650_v3 = vsub.f32 %v1490_v61, %v1538_v38  ;;  %3028 = vrcp.f32 %v1712_v42 }
 0x213   : > { %v1443_v56 = vadd.f32 %v1425_v55, %v3561_v37  ;;  %v1753_v0 = vpack.c.bf16 %v1743_v59, %v1742_v57  ;;  %v1906_v19 = vpack.c.bf16 %v1896_v50, %v1895_v22  ;;  %v2027_v60 = vpack.c.bf16 %v2017_v8, %v2016_v9 }
 0x214   : > { %v3023_v44 = vpop.eup %3022  ;;  %v1584_v40 = vmul.f32 1.442695, %v1554_v54  ;;  %v1632_v48 = vmul.f32 1.442695, %v1602_v34  ;;  %v1680_v14 = vmul.f32 1.442695, %v1650_v3 }
 0x215   : > { %v3025_v63 = vpop.eup %3024  ;;  %vm1459_vm0 = vcmp.gt.f32.partialorder %v1443_v56, 0.0  ;;  %v1475_v1 = vmul.f32 0.2, %v1443_v56  ;;  %1837 = vmatmul.bf16.gmra.mxu3 %v1753_v0  ;;  %1942 = vmatmul.bf16.gmra.mxu0 %v1906_v19 }
 0x216   : > { %v1697_v7 = vadd.f32 %v3025_v63, %v3023_v44  ;;  %3030 = vpow2.f32 %v1584_v40  ;;  %2063 = vmatmul.bf16.gmra.mxu1 %v2027_v60  ;;  %v3027_v12 = vpop.eup %3026 }
 0x217   : > { %3032 = vpow2.f32 %v1632_v48  ;;  %v1491_v37 = vsel %vm1459_vm0, %v1443_v56, %v1475_v1  ;;  %v3916_v55 = vpop.f32.mrf.mxu3 }
 0x218   : > { %v1713_v31 = vadd.f32 %v3027_v12, %v1697_v7  ;;  %v1539_v49 = vmax.f32 %v1523_v32, %v1491_v37  ;;  %v3029_v47 = vpop.eup %3028 }
 0x219   : > { %v1744_v59 = vmul.f32 %v3029_v47, %v3891_v39  ;;  %v1897_v50 = vmul.f32 %v3029_v47, %v3893_v28  ;;  %v2018_v8 = vmul.f32 %v3029_v47, %v3899_v26  ;;  %v3918_v39 = vpop.f32.mrf.mxu1 }
 0x21a   : > { %3034 = vrcp.f32 %v1713_v31  ;;  %v1555_v11 = vsub.f32 %v811_v16, %v1539_v49  ;;  %v1603_v17 = vsub.f32 %v1151_v2, %v1539_v49  ;;  %v1651_v46 = vsub.f32 %v1491_v37, %v1539_v49 }
 0x21b   : > { %3036 = vpow2.f32 %v1680_v14 }
 0x21c   : > { %v3031_v61 = vpop.eup %3030  ;;  %v1586_v57 = vmul.f32 1.442695, %v1555_v11  ;;  %v1634_v36 = vmul.f32 1.442695, %v1603_v17  ;;  %v1682_v38 = vmul.f32 1.442695, %v1651_v46 }
 0x21d   : > { %v3033_v42 = vpop.eup %3032 }
 0x21e   : > { %3038 = vpow2.f32 %v1586_v57  ;;  %v1698_v22 = vadd.f32 %v3033_v42, %v3031_v61 }
 0x21f   : > { %3040 = vpow2.f32 %v1634_v36  ;;  %v3920_v3 = vpop.f32.mrf.mxu3 }
 0x220   : > { %v3035_v9 = vpop.eup %3034  ;;  %3042 = vpow2.f32 %v1682_v38 }
 0x221   : > { %v1745_v16 = vmul.f32 %v3035_v9, %v3023_v44  ;;  %v1898_v2 = vmul.f32 %v3035_v9, %v3025_v63  ;;  %v2019_v54 = vmul.f32 %v3035_v9, %v3027_v12  ;;  %v3037_v34 = vpop.eup %3036  ;;  %v3922_v1 = vpop.f32.mrf.mxu1  ;;  %v1492_v9 = vpack.c.bf16 %v3564_v58, %v3564_v58 }
 0x222   : > { %v1714_v56 = vadd.f32 %v3037_v34, %v1698_v22  ;;  %v1493_v58 = vpack.c.bf16 %v3579_v20, %v3579_v20 }
 0x223   : > { %v1754_v0 = vpack.c.bf16 %v1745_v16, %v1744_v59  ;;  %v1907_v19 = vpack.c.bf16 %v1898_v2, %v1897_v50  ;;  %v2028_v60 = vpack.c.bf16 %v2019_v54, %v2018_v8  ;;  %v2079_v16 = vunpack.c.l.bf16 %v1492_v9 }
 0x224   : > { %v3039_v40 = vpop.eup %3038  ;;  %3044 = vrcp.f32 %v1714_v56  ;;  %v813_v56 = vpack.c.bf16 %v3495_v45, %v3495_v45 }
 0x225   : > { %v3041_v48 = vpop.eup %3040  ;;  %1842 = vmatmul.bf16.gmra.mxu3 %v1754_v0  ;;  %1947 = vmatmul.bf16.gmra.mxu0 %v1907_v19 }
 0x226   : > { %v1699_v28 = vadd.f32 %v3041_v48, %v3039_v40  ;;  %2068 = vmatmul.bf16.gmra.mxu1 %v2028_v60  ;;  %v3043_v26 = vpop.eup %3042 }
 0x227   : > { %v3924_v47 = vpop.f32.mrf.mxu3 }
 0x228   : > { %v1715_v44 = vadd.f32 %v3043_v26, %v1699_v28 }
 0x229   : > { %v3926_v57 = vpop.f32.mrf.mxu1 }
 0x22a   : > { %3046 = vrcp.f32 %v1715_v44  ;;  %v3045_v63 = vpop.eup %3044 }
 0x22b   : > { %v1746_v7 = vmul.f32 %v3045_v63, %v3031_v61  ;;  %v1899_v12 = vmul.f32 %v3045_v63, %v3033_v42  ;;  %v2020_v14 = vmul.f32 %v3045_v63, %v3037_v34  ;;  %v812_v61 = vpack.c.bf16 %v3487_v52, %v3487_v52 }
 0x22c   : > { %v1152_v42 = vpack.c.bf16 %v3572_v62, %v3572_v62  ;;  %v1153_v52 = vpack.c.bf16 %v3600_v43, %v3600_v43 }
 0x22d   : > { %v1853_v59 = vunpack.c.l.bf16 %v812_v61 }
 0x22e   : > { %v1958_v50 = vunpack.c.l.bf16 %v1152_v42 }
 0x22f   : > { %v3928_v36 = vpop.f32.mrf.mxu3 }
 0x230   : > { %v3047_v32 = vpop.eup %3046 }
 0x231   : > { %v1747_v37 = vmul.f32 %v3047_v32, %v3039_v40  ;;  %v1900_v31 = vmul.f32 %v3047_v32, %v3041_v48  ;;  %v2021_v49 = vmul.f32 %v3047_v32, %v3043_v26  ;;  %v1854_v40 = vunpack.c.l.bf16 %v813_v56 }
 0x232   : > { %v1959_v48 = vunpack.c.l.bf16 %v1153_v52  ;;  %v2080_v26 = vunpack.c.l.bf16 %v1493_v58  ;;  %v1495_v56 = vpack.c.bf16 %v3645_v10, %v3645_v10  ;;  %v1496_v10 = vpack.c.bf16 %v3680_v23, %v3680_v23 }
 0x233   : > { %v1755_v11 = vpack.c.bf16 %v1747_v37, %v1746_v7  ;;  %v1908_v17 = vpack.c.bf16 %v1900_v31, %v1899_v12  ;;  %v2029_v46 = vpack.c.bf16 %v2021_v49, %v2020_v14  ;;  %v4099_v7 = vld [vmem:[#allocation22_spill] sm:$0xff]  ;;  %v4100_v12 = vld [vmem:[#allocation29_spill] sm:$0xff]  ;;  %v4101_v49 = vld [vmem:[#allocation28_spill] sm:$0xff]  ;;  %v1497_v23 = vpack.c.bf16 %v3716_v30, %v3716_v30 }
 0x234   : > { %v814_v45 = vpack.c.bf16 %v4099_v7, %v4099_v7  ;;  %v1154_v43 = vpack.c.bf16 %v4100_v12, %v4100_v12  ;;  %v1494_v20 = vpack.c.bf16 %v4101_v49, %v4101_v49  ;;  %v2082_v58 = vunpack.c.l.bf16 %v1495_v56 }
 0x235   : > { %1847 = vmatmul.bf16.gmra.mxu3 %v1755_v11  ;;  %1952 = vmatmul.bf16.gmra.mxu0 %v1908_v17  ;;  %v1498_v30 = vpack.c.bf16 %v3758_v53, %v3758_v53  ;;  %v1499_v53 = vpack.c.bf16 %v3788_v41, %v3788_v41  ;;  %v1500_v41 = vpack.c.bf16 %v3827_v24, %v3827_v24 }
 0x236   : > { %2073 = vmatmul.bf16.gmra.mxu1 %v2029_v46  ;;  %v1855_v17 = vunpack.c.l.bf16 %v814_v45  ;;  %v1960_v46 = vunpack.c.l.bf16 %v1154_v43  ;;  %v2081_v42 = vunpack.c.l.bf16 %v1494_v20  ;;  %v1501_v24 = vpack.c.bf16 %v3858_v35, %v3858_v35 }
 0x237   : > { %v1502_v35 = vpack.c.bf16 %v3880_v4, %v3880_v4  ;;  %v1503_v4 = vpack.c.bf16 %v3905_v5, %v3905_v5  ;;  %v1504_v5 = vpack.c.bf16 %v3911_v18, %v3911_v18  ;;  %v1505_v18 = vpack.c.bf16 %v3918_v39, %v3918_v39 }
 0x238   : > { %v1506_v39 = vpack.c.bf16 %v3922_v1, %v3922_v1 }
 0x242   : > { %v1918_v38 = vpop.f32.mrf.mxu0 }
 0x243   : > { %v2039_v22 = vpop.f32.mrf.mxu1  ;;  %v1974_v2 = vmul.f32 %v1958_v50, %v1918_v38  ;;  %v4102_v50 = vld [vmem:[#allocation23_spill] sm:$0xff] }
 0x244   : > { %v2095_v0 = vmul.f32 %v2079_v16, %v2039_v22  ;;  %v1155_v16 = vpack.c.bf16 %v3669_v27, %v3669_v27  ;;  %v1156_v27 = vpack.c.bf16 %v3707_v33, %v3707_v33  ;;  %v1157_v33 = vpack.c.bf16 %v3744_v13, %v3744_v13 }
 0x245   : > { %v1158_v13 = vpack.c.bf16 %v3775_v25, %v3775_v25  ;;  %v1159_v25 = vpack.c.bf16 %v3820_v15, %v3820_v15  ;;  %v1160_v15 = vpack.c.bf16 %v3848_v51, %v3848_v51  ;;  %v1161_v51 = vpack.c.bf16 %v3876_v21, %v3876_v21 }
 0x246   : > { %v1962_v12 = vunpack.c.l.bf16 %v1156_v27  ;;  %v1162_v21 = vpack.c.bf16 %v3897_v29, %v3897_v29  ;;  %v1163_v29 = vpack.c.bf16 %v3909_v6, %v3909_v6  ;;  %v1164_v6 = vpack.c.bf16 %v3916_v55, %v3916_v55 }
 0x247   : > { %v1165_v55 = vpack.c.bf16 %v3920_v3, %v3920_v3  ;;  %v1166_v3 = vpack.c.bf16 %v3924_v47, %v3924_v47 }
 0x248   : > { %v1813_v8 = vpop.f32.mrf.mxu3 }
 0x249   : > { %v1869_v54 = vmul.f32 %v1853_v59, %v1813_v8  ;;  %v815_v8 = vpack.c.bf16 %v4102_v50, %v4102_v50  ;;  %v2084_v50 = vunpack.c.l.bf16 %v1497_v23 }
 0x24a   : > { %v1920_v34 = vpop.f32.mrf.mxu0 }
 0x24b   : > { %v1990_v62 = vadd.f32 %v1974_v2, %v1869_v54  ;;  %v2041_v19 = vpop.f32.mrf.mxu1  ;;  %v1975_v44 = vmul.f32 %v1959_v48, %v1920_v34 }
 0x24c   : > { %v2096_v37 = vmul.f32 %v2080_v26, %v2041_v19 }
 0x24d   : > { %v2111_v60 = vadd.f32 %v2095_v0, %v1990_v62  ;;  %v1856_v0 = vunpack.c.l.bf16 %v815_v8  ;;  %v1961_v62 = vunpack.c.l.bf16 %v1155_v16 }
 0x250   : > { %v1815_v28 = vpop.f32.mrf.mxu3 }
 0x251   : > { %v1870_v63 = vmul.f32 %v1854_v40, %v1815_v28  ;;  %v4103_v28 = vld [vmem:[#allocation24_spill] sm:$0xff] }
 0x252   : > { %v1923_v32 = vpop.f32.mrf.mxu0  ;;  %v816_v26 = vpack.c.bf16 %v4103_v28, %v4103_v28 }
 0x253   : > { %v1991_v31 = vadd.f32 %v1975_v44, %v1870_v63  ;;  %v2044_v14 = vpop.f32.mrf.mxu1  ;;  %v1976_v22 = vmul.f32 %v1960_v46, %v1923_v32 }
 0x254   : > { %v2097_v2 = vmul.f32 %v2081_v42, %v2044_v14  ;;  %v1857_v45 = vunpack.c.l.bf16 %v816_v26 }
 0x255   : > { %v2112_v11 = vadd.f32 %v2096_v37, %v1991_v31  ;;  %v2083_v31 = vunpack.c.l.bf16 %v1496_v10 }
 0x257   : > { %v2793_v38 = vpack.c.bf16 %v2112_v11, %v2111_v60  ;;  %v4104_v11 = vld [vmem:[#allocation25_spill] sm:$0xff] }
 0x258   : > { %v1818_v61 = vpop.f32.mrf.mxu3 }
 0x259   : > { %2794 = vst [vmem:[%s3949_s9] sm:$0xff] %v2793_v38   ;;  %v1871_v9 = vmul.f32 %v1855_v17, %v1818_v61  ;;  %v817_v17 = vpack.c.bf16 %v4104_v11, %v4104_v11  ;;  %v4107_v11 = vld [vmem:[#allocation14_spill] sm:$0xff] }
 0x25a   : > { %v1925_v59 = vpop.f32.mrf.mxu0 }
 0x25b   : > { %v1992_v54 = vadd.f32 %v1976_v22, %v1871_v9  ;;  %v2046_v34 = vpop.f32.mrf.mxu1  ;;  %v1977_v60 = vmul.f32 %v1961_v62, %v1925_v59  ;;  %v1858_v22 = vunpack.c.l.bf16 %v817_v17  ;;  %v1963_v9 = vunpack.c.l.bf16 %v1157_v33 }
 0x25c   : > { %v2098_v44 = vmul.f32 %v2082_v58, %v2046_v34  ;;  %v1964_v58 = vunpack.c.l.bf16 %v1158_v13  ;;  %v820_v17 = vpack.c.bf16 %v4107_v11, %v4107_v11 }
 0x25d   : > { %v2113_v52 = vadd.f32 %v2097_v2, %v1992_v54  ;;  %v4105_v54 = vld [vmem:[#allocation26_spill] sm:$0xff] }
 0x25e   : > { %v818_v34 = vpack.c.bf16 %v4105_v54, %v4105_v54  ;;  %v1861_v23 = vunpack.c.l.bf16 %v820_v17 }
 0x260   : > { %v1820_v19 = vpop.f32.mrf.mxu3 }
 0x261   : > { %v1872_v40 = vmul.f32 %v1856_v0, %v1820_v19  ;;  %v1859_v19 = vunpack.c.l.bf16 %v818_v34 }
 0x262   : > { %v1928_v48 = vpop.f32.mrf.mxu0 }
 0x263   : > { %v1993_v63 = vadd.f32 %v1977_v60, %v1872_v40  ;;  %v2049_v32 = vpop.f32.mrf.mxu1  ;;  %v1978_v14 = vmul.f32 %v1962_v12, %v1928_v48  ;;  %v2085_v48 = vunpack.c.l.bf16 %v1498_v30  ;;  %v1967_v30 = vunpack.c.l.bf16 %v1161_v51 }
 0x264   : > { %v2099_v46 = vmul.f32 %v2083_v31, %v2049_v32  ;;  %v2086_v31 = vunpack.c.l.bf16 %v1499_v53  ;;  %v2089_v53 = vunpack.c.l.bf16 %v1502_v35  ;;  %v2091_v51 = vunpack.c.l.bf16 %v1504_v5 }
 0x265   : > { %v2114_v7 = vadd.f32 %v2098_v44, %v1993_v63  ;;  %v4106_v44 = vld [vmem:[#allocation27_spill] sm:$0xff] }
 0x266   : > { %v819_v63 = vpack.c.bf16 %v4106_v44, %v4106_v44 }
 0x267   : > { %v2798_v43 = vpack.c.bf16 %v2114_v7, %v2113_v52 }
 0x268   : > { %v1823_v37 = vpop.f32.mrf.mxu3  ;;  %v1860_v12 = vunpack.c.l.bf16 %v819_v63 }
 0x269   : > { %2830 = vst [vmem:[%s3949_s9 + $0x8] sm:$0xff] %v2798_v43   ;;  %v1873_v49 = vmul.f32 %v1857_v45, %v1823_v37  ;;  %v1965_v43 = vunpack.c.l.bf16 %v1159_v25 }
 0x26a   : > { %v1930_v20 = vpop.f32.mrf.mxu0 }
 0x26b   : > { %v1994_v38 = vadd.f32 %v1978_v14, %v1873_v49  ;;  %v2051_v61 = vpop.f32.mrf.mxu1  ;;  %v1979_v8 = vmul.f32 %v1963_v9, %v1930_v20 }
 0x26c   : > { %v2100_v56 = vmul.f32 %v2084_v50, %v2051_v61 }
 0x26d   : > { %v2115_v42 = vadd.f32 %v2099_v46, %v1994_v38 }
 0x270   : > { %v1825_v59 = vpop.f32.mrf.mxu3 }
 0x271   : > { %v1874_v16 = vmul.f32 %v1858_v22, %v1825_v59  ;;  %v2087_v59 = vunpack.c.l.bf16 %v1500_v41 }
 0x272   : > { %v1933_v2 = vpop.f32.mrf.mxu0 }
 0x273   : > { %v1995_v52 = vadd.f32 %v1979_v8, %v1874_v16  ;;  %v2054_v0 = vpop.f32.mrf.mxu1  ;;  %v1980_v28 = vmul.f32 %v1964_v58, %v1933_v2  ;;  %v4108_v2 = vld [vmem:[#allocation15_spill] sm:$0xff] }
 0x274   : > { %v2101_v32 = vmul.f32 %v2085_v48, %v2054_v0  ;;  %v821_v54 = vpack.c.bf16 %v4108_v2, %v4108_v2  ;;  %v4109_v48 = vld [vmem:[#allocation16_spill] sm:$0xff] }
 0x275   : > { %v2116_v62 = vadd.f32 %v2100_v56, %v1995_v52 }
 0x276   : > { %v1862_v0 = vunpack.c.l.bf16 %v821_v54 }
 0x277   : > { %v2803_v60 = vpack.c.bf16 %v2116_v62, %v2115_v42  ;;  %v1966_v42 = vunpack.c.l.bf16 %v1160_v15  ;;  %v1969_v15 = vunpack.c.l.bf16 %v1163_v29  ;;  %v1167_v29 = vpack.c.bf16 %v3928_v36, %v3928_v36 }
 0x278   : > { %v1828_v40 = vpop.f32.mrf.mxu3 }
 0x279   : > { %2831 = vst [vmem:[%s3949_s9 + $0x10] sm:$0xff] %v2803_v60   ;;  %v1875_v26 = vmul.f32 %v1859_v19, %v1828_v40  ;;  %v2088_v19 = vunpack.c.l.bf16 %v1501_v24  ;;  %v4112_v24 = vld [vmem:[#allocation19_spill] sm:$0xff] }
 0x27a   : > { %v1935_v27 = vpop.f32.mrf.mxu0 }
 0x27b   : > { %v1996_v10 = vadd.f32 %v1980_v28, %v1875_v26  ;;  %v2056_v7 = vpop.f32.mrf.mxu1  ;;  %v1981_v14 = vmul.f32 %v1965_v43, %v1935_v27  ;;  %v822_v28 = vpack.c.bf16 %v4109_v48, %v4109_v48  ;;  %v2092_v48 = vunpack.c.l.bf16 %v1505_v18 }
 0x27c   : > { %v2102_v33 = vmul.f32 %v2086_v31, %v2056_v7 }
 0x27d   : > { %v2117_v45 = vadd.f32 %v2101_v32, %v1996_v10  ;;  %v1863_v25 = vunpack.c.l.bf16 %v822_v28  ;;  %v1968_v32 = vunpack.c.l.bf16 %v1162_v21 }
 0x280   : > { %v1830_v37 = vpop.f32.mrf.mxu3 }
 0x281   : > { %v1876_v49 = vmul.f32 %v1860_v12, %v1830_v37  ;;  %v4110_v37 = vld [vmem:[#allocation17_spill] sm:$0xff] }
 0x282   : > { %v1938_v20 = vpop.f32.mrf.mxu0  ;;  %v823_v31 = vpack.c.bf16 %v4110_v37, %v4110_v37 }
 0x283   : > { %v1997_v46 = vadd.f32 %v1981_v14, %v1876_v49  ;;  %v2059_v38 = vpop.f32.mrf.mxu1  ;;  %v1982_v50 = vmul.f32 %v1966_v42, %v1938_v20 }
 0x284   : > { %v2103_v34 = vmul.f32 %v2087_v59, %v2059_v38  ;;  %v1864_v17 = vunpack.c.l.bf16 %v823_v31  ;;  %v4114_v31 = vld [vmem:[#allocation21_spill] sm:$0xff] }
 0x285   : > { %v2118_v61 = vadd.f32 %v2102_v33, %v1997_v46  ;;  %v2090_v46 = vunpack.c.l.bf16 %v1503_v4  ;;  %v827_v47 = vpack.c.bf16 %v4114_v31, %v4114_v31 }
 0x287   : > { %v2808_v22 = vpack.c.bf16 %v2118_v61, %v2117_v45 }
 0x288   : > { %v1833_v9 = vpop.f32.mrf.mxu3 }
 0x289   : > { %2832 = vst [vmem:[%s3949_s9 + $0x18] sm:$0xff] %v2808_v22   ;;  %v1877_v8 = vmul.f32 %v1861_v23, %v1833_v9  ;;  %v4111_v23 = vld [vmem:[#allocation18_spill] sm:$0xff] }
 0x28a   : > { %v1940_v16 = vpop.f32.mrf.mxu0  ;;  %v824_v42 = vpack.c.bf16 %v4111_v23, %v4111_v23 }
 0x28b   : > { %v1998_v13 = vadd.f32 %v1982_v50, %v1877_v8  ;;  %v2061_v56 = vpop.f32.mrf.mxu1  ;;  %v1983_v58 = vmul.f32 %v1967_v30, %v1940_v16  ;;  %v1970_v16 = vunpack.c.l.bf16 %v1164_v6 }
 0x28c   : > { %v2104_v26 = vmul.f32 %v2088_v19, %v2061_v56  ;;  %v1865_v8 = vunpack.c.l.bf16 %v824_v42 }
 0x28d   : > { %v2119_v52 = vadd.f32 %v2103_v34, %v1998_v13 }
 0x290   : > { %v1835_v62 = vpop.f32.mrf.mxu3 }
 0x291   : > { %v1878_v60 = vmul.f32 %v1862_v0, %v1835_v62 }
 0x292   : > { %v1943_v40 = vpop.f32.mrf.mxu0 }
 0x293   : > { %v1999_v27 = vadd.f32 %v1983_v58, %v1878_v60  ;;  %v2064_v44 = vpop.f32.mrf.mxu1  ;;  %v1984_v45 = vmul.f32 %v1968_v32, %v1943_v40  ;;  %v1971_v60 = vunpack.c.l.bf16 %v1165_v55 }
 0x294   : > { %v2105_v14 = vmul.f32 %v2089_v53, %v2064_v44 }
 0x295   : > { %v2120_v63 = vadd.f32 %v2104_v26, %v1999_v27  ;;  %v4113_v26 = vld [vmem:[#allocation20_spill] sm:$0xff] }
 0x296   : > { %v826_v27 = vpack.c.bf16 %v4113_v26, %v4113_v26 }
 0x297   : > { %v2813_v10 = vpack.c.bf16 %v2120_v63, %v2119_v52  ;;  %v825_v52 = vpack.c.bf16 %v4112_v24, %v4112_v24 }
 0x298   : > { %v1838_v7 = vpop.f32.mrf.mxu3 }
 0x299   : > { %2833 = vst [vmem:[%s3949_s9 + $0x20] sm:$0xff] %v2813_v10   ;;  %v1879_v12 = vmul.f32 %v1863_v25, %v1838_v7  ;;  %v1866_v58 = vunpack.c.l.bf16 %v825_v52  ;;  %v1867_v10 = vunpack.c.l.bf16 %v826_v27  ;;  %v1972_v7 = vunpack.c.l.bf16 %v1166_v3 }
 0x29a   : > { %v1945_v43 = vpop.f32.mrf.mxu0 }
 0x29b   : > { %v2000_v49 = vadd.f32 %v1984_v45, %v1879_v12  ;;  %v2066_v20 = vpop.f32.mrf.mxu1  ;;  %v1985_v38 = vmul.f32 %v1969_v15, %v1945_v43  ;;  %v2093_v12 = vunpack.c.l.bf16 %v1506_v39 }
 0x29c   : > { %v2106_v22 = vmul.f32 %v2090_v46, %v2066_v20 }
 0x29d   : > { %v2121_v11 = vadd.f32 %v2105_v14, %v2000_v49  ;;  %v1507_v49 = vpack.c.bf16 %v3926_v57, %v3926_v57 }
 0x29f   : > { %v2094_v36 = vunpack.c.l.bf16 %v1507_v49 }
 0x2a0   : > { %v1840_v33 = vpop.f32.mrf.mxu3 }
 0x2a1   : > { %v1880_v41 = vmul.f32 %v1864_v17, %v1840_v33  ;;  %v1973_v17 = vunpack.c.l.bf16 %v1167_v29 }
 0x2a2   : > { %v1948_v61 = vpop.f32.mrf.mxu0 }
 0x2a3   : > { %v2001_v9 = vadd.f32 %v1985_v38, %v1880_v41  ;;  %v2069_v59 = vpop.f32.mrf.mxu1  ;;  %v1986_v34 = vmul.f32 %v1970_v16, %v1948_v61 }
 0x2a4   : > { %v2107_v0 = vmul.f32 %v2091_v51, %v2069_v59 }
 0x2a5   : > { %v2122_v50 = vadd.f32 %v2106_v22, %v2001_v9 }
 0x2a7   : > { %v2818_v2 = vpack.c.bf16 %v2122_v50, %v2121_v11  ;;  %v1868_v11 = vunpack.c.l.bf16 %v827_v47 }
 0x2a8   : > { %v1843_v54 = vpop.f32.mrf.mxu3 }
 0x2a9   : > { %2834 = vst [vmem:[%s3949_s9 + $0x28] sm:$0xff] %v2818_v2   ;;  %v1881_v13 = vmul.f32 %v1865_v8, %v1843_v54 }
 0x2aa   : > { %v1950_v56 = vpop.f32.mrf.mxu0 }
 0x2ab   : > { %v2002_v30 = vadd.f32 %v1986_v34, %v1881_v13  ;;  %v2071_v62 = vpop.f32.mrf.mxu1  ;;  %v1987_v28 = vmul.f32 %v1971_v60, %v1950_v56 }
 0x2ac   : > { %v2108_v44 = vmul.f32 %v2092_v48, %v2071_v62 }
 0x2ad   : > { %v2123_v19 = vadd.f32 %v2107_v0, %v2002_v30 }
 0x2b0   : > { %v1845_v40 = vpop.f32.mrf.mxu3 }
 0x2b1   : > { %v1882_v21 = vmul.f32 %v1866_v58, %v1845_v40 }
 0x2b2   : > { %v1953_v63 = vpop.f32.mrf.mxu0 }
 0x2b3   : > { %v2003_v35 = vadd.f32 %v1987_v28, %v1882_v21  ;;  %v2074_v32 = vpop.f32.mrf.mxu1  ;;  %v1988_v43 = vmul.f32 %v1972_v7, %v1953_v63 }
 0x2b4   : > { %v2109_v14 = vmul.f32 %v2093_v12, %v2074_v32 }
 0x2b5   : > { %v2124_v25 = vadd.f32 %v2108_v44, %v2003_v35 }
 0x2b7   : > { %v2823_v53 = vpack.c.bf16 %v2124_v25, %v2123_v19 }
 0x2b8   : > { %v1848_v45 = vpop.f32.mrf.mxu3 }
 0x2b9   : > { %2835 = vst [vmem:[%s3949_s9 + $0x30] sm:$0xff] %v2823_v53   ;;  %v1883_v37 = vmul.f32 %v1867_v10, %v1848_v45 }
 0x2ba   : > { %v1955_v4 = vpop.f32.mrf.mxu0 }
 0x2bb   : > { %v2004_v1 = vadd.f32 %v1988_v43, %v1883_v37  ;;  %v2076_v15 = vpop.f32.mrf.mxu1  ;;  %v1989_v46 = vmul.f32 %v1973_v17, %v1955_v4 }
 0x2bc   : > { %v2110_v41 = vmul.f32 %v2094_v36, %v2076_v15 }
 0x2bd   : > { %v2125_v20 = vadd.f32 %v2109_v14, %v2004_v1 }
 0x2c0   : > { %v1850_v33 = vpop.f32.mrf.mxu3 }
 0x2c1   : > { %v1884_v38 = vmul.f32 %v1868_v11, %v1850_v33 }
 0x2c3   : > { %v2005_v61 = vadd.f32 %v1989_v46, %v1884_v38 }
 0x2c5   : > { %v2126_v57 = vadd.f32 %v2110_v41, %v2005_v61 }
 0x2c7   : > { %v2828_v23 = vpack.c.bf16 %v2126_v57, %v2125_v20 }
 0x2c9   : > { %2836 = vst [vmem:[%s3949_s9 + $0x38] sm:$0xff] %v2828_v23  }
 0x2ca   : > { %3105 = shalt.err (!%p3102_p10)
}
 0x2cb   : > { %s3159_s13 = smov 64   ;;  %s3160_s26 = smov 4  }
 0x2cc   : > { %2864 = dma.vmem_to_hbm [thread:$0]  (%p3243_p11), %s2173_s29, 1024, %s2175_s8, %s2160_s22, %s3159_s13, %s3159_s13, %s3160_s26  }
 0x2cd PF: > { %s2189_s9 = sand.u32 1, %s3136_s18   ;;  %p2871_p13 = pnand %p2273_p2, %p3247_p12 }
 0x2ce   : > { %s2190_s10 = scalar_lea.sflag [#allocation4], %s2189_s9 }
 0x2cf   : > { %p2872_p1 = pneg %p2871_p13 }
 0x2d1   : > { %3131 = dma.done.wait (%p2872_p1), %s2190_s10, 1024  }
 0x2d2   : > { %3133 = vsyncadd (%p2872_p1), %s2190_s10, 4294966272  ;;  %p19_p0 = scmp.ge.s32.totalorder %s3216_s24, 4   ;;  %s4115_s18 = smov %s3140_s19 }
 0x2d3   : > { %s4116_s19 = smov %s3144_s20  ;;  %s4117_s20 = smov %s3228_s27 }
 0x2d4   : > { %s4118_s21 = smov %s3216_s24  ;;  %21 = sbr.rel (!%p19_p0) target bundleno = 6 (0x6), region = 101 }
 0x2d9   :  { %2196 = vsyncpa [#allocation3], 1 }
 0x2da   :  { %2198 = vsyncpa [#allocation3 + $0x1], 1 }
 0x2db   :  { %2199 = vsyncpa [#allocation6], 1 }
 0x2dc   :  { %2200 = vsyncpa [#allocation4], 1 }
 0x2dd   :  { %2202 = vsyncpa [#allocation4 + $0x1], 1 }

</bundles_post_ra>
